<compile_context>
chip_gen: v7x
topology: tpu7x:2x2x1
jax: 0.10.0
libtpu: 0.0.40
codegen_flags: <defaults>
</compile_context>

<pallas_src>
import functools
import math

import jax
import jax.numpy as jnp
from jax.experimental import pallas as pl
from jax.experimental.pallas import tpu as pltpu

_INV_SQRT2 = 0.7071067811865476


def _round_up(x, m):
    return ((x + m - 1) // m) * m


def _erf_f32(x):
    # Abramowitz & Stegun 7.1.26 (max abs err ~1.5e-7).  Implemented with exp/div/mul
    # only so it always lowers on Mosaic (lax.erf has no guaranteed TPU-Pallas rule).
    p = 0.3275911
    a1, a2, a3, a4, a5 = 0.254829592, -0.284496736, 1.421413741, -1.453152027, 1.061405429
    sgn = jnp.where(x >= 0.0, 1.0, -1.0)
    ax = jnp.abs(x)
    t = 1.0 / (1.0 + p * ax)
    poly = ((((a5 * t + a4) * t + a3) * t + a2) * t + a1) * t
    return sgn * (1.0 - poly * jnp.exp(-(ax * ax)))


def _gelu_exact(x):
    # Matches torch.nn.GELU() default (exact / erf form), not the tanh approximation.
    return x * 0.5 * (1.0 + _erf_f32(x * _INV_SQRT2))


def _postproc_kernel(col1_ref, w1_ref, b1_ref, w2_ref, b2_ref, o_ref, *, h1, w1k, h, w):
    """One batch element per grid step.

    col1_ref : (h1*w1k, 9*Cin) f32   im2col patches for conv1 (pad=2 output grid,
                                     grid width w1k padded to a multiple of 8)
    w1_ref   : (9*Cin, Chid)   bf16  conv1 weights, (dy,dx,ci) flattened on K
    b1_ref   : (1, Chid)       f32
    w2_ref   : (9, Chid, Cp)   bf16  conv2 per-tap weights, out-channels zero-padded to Cp
    b2_ref   : (1, Cp)         f32
    o_ref    : (h*w, Cp)       f32   lane-dense output slab
    """
    chid = w1_ref.shape[1]

    # ---- conv1 (+bias) as ONE im2col MXU matmul (bf16 operands, f32 accum), then GELU.
    col1 = col1_ref[...].astype(jnp.bfloat16)
    mid = jnp.dot(col1, w1_ref[...], preferred_element_type=jnp.float32) + b1_ref[...]
    mid = _gelu_exact(mid).reshape(h1, w1k, chid)          # f32, (h1, w1k, Chid)

    # TODO(synk): nn.Dropout / checkpoint_sequential only act in training mode; this
    # kernel implements inference (eval) semantics, where both are identity.

    # ---- conv2 (valid 3x3): 9 statically-unrolled accumulating tap matmuls.
    def tap_dot(k):
        dy, dx = divmod(k, 3)
        tap = mid[dy:dy + h, dx:dx + w, :].reshape(h * w, chid)
        return jnp.dot(tap.astype(jnp.bfloat16), w2_ref[k],
                       preferred_element_type=jnp.float32)

    acc = tap_dot(0)
    for k in range(1, 9):
        acc = acc + tap_dot(k)
    o_ref[...] = acc + b2_ref[...]


def prepare_params(w1, b1, w2, b2):
    """One-time weight preprocessing (kept OUTSIDE the jitted forward):
    PyTorch Conv2d layouts -> pre-transposed, lane-padded, bf16 MXU operands."""
    n_hidden, n_target = w1.shape[0], w1.shape[1]
    n_out = w2.shape[0]
    cout_pad = _round_up(n_out, 128)                       # lane-dense output slab width
    w1c = jnp.transpose(w1, (2, 3, 1, 0)).reshape(9 * n_target, n_hidden)
    w2c = jnp.transpose(w2, (2, 3, 1, 0)).reshape(9, n_hidden, n_out)
    w2c = jnp.pad(w2c, ((0, 0), (0, 0), (0, cout_pad - n_out)))
    return {
        "w1": w1c.astype(jnp.bfloat16),
        "b1": b1.reshape(1, n_hidden).astype(jnp.float32),
        "w2": w2c.astype(jnp.bfloat16),
        "b2": jnp.pad(b2, (0, cout_pad - n_out)).reshape(1, cout_pad).astype(jnp.float32),
    }


def score_matrix_post_process(S, params, *, n_target):
    """Eval-mode forward of ScoreMatrixPostProcessor.  S: (H, W, N, nTarget)."""
    H, W, N, Cin = S.shape
    Chid = params["w1"].shape[1]
    Coutp = params["w2"].shape[-1]
    H1, W1 = H + 2, W + 2                   # conv1 (padding=2) output spatial size
    W1k = _round_up(W1, 8)                  # widen so in-kernel reshapes are layout no-ops

    # NHWC + zero padding; the extra right padding covers the widened conv1 grid.
    x = jnp.transpose(S, (2, 0, 1, 3)).astype(jnp.float32)          # (N, H, W, Cin)
    xpad = jnp.pad(x, ((0, 0), (2, 2), (2, W1k - W), (0, 0)))       # (N, H+4, W1k+2, Cin)

    # im2col patches for conv1 (pure XLA layout plumbing, done once per forward).
    taps = [xpad[:, dy:dy + H1, dx:dx + W1k, :] for dy in range(3) for dx in range(3)]
    col1 = jnp.concatenate(taps, axis=-1).reshape(N, H1 * W1k, 9 * Cin)

    # NOTE: per-step VMEM footprint is per-image; very large H*W would additionally
    # need row tiling (not required at these shapes).
    out = pl.pallas_call(
        functools.partial(_postproc_kernel, h1=H1, w1k=W1k, h=H, w=W),
        grid=(N,),
        out_shape=jax.ShapeDtypeStruct((N, H * W, Coutp), jnp.float32),
        in_specs=[
            pl.BlockSpec((None, H1 * W1k, 9 * Cin), lambda n: (n, 0, 0)),
            pl.BlockSpec((9 * Cin, Chid), lambda n: (0, 0)),
            pl.BlockSpec((1, Chid), lambda n: (0, 0)),
            pl.BlockSpec((9, Chid, Coutp), lambda n: (0, 0, 0)),
            pl.BlockSpec((1, Coutp), lambda n: (0, 0)),
        ],
        out_specs=pl.BlockSpec((None, H * W, Coutp), lambda n: (n, 0, 0)),
        compiler_params=pltpu.CompilerParams(
            dimension_semantics=("parallel",)),    # batch items independent (megacore / v7x 2-TC)
    )(col1, params["w1"], params["b1"], params["w2"], params["b2"])

    out = out.reshape(N, H, W, Coutp)[..., :n_target]               # drop lane padding
    return jnp.transpose(out, (1, 2, 0, 3))                         # back to (H, W, N, C)


# ----------------------------------------------------------------------------
# Pure-JAX references (PyTorch eval semantics) for verification
# ----------------------------------------------------------------------------
def _reference(S, w1, b1, w2, b2, mxu_bf16):
    """If mxu_bf16, mirror the kernel's precision (bf16 conv operands, f32 accumulation,
    f32 elementwise); otherwise full f32 (exact PyTorch eval semantics)."""
    cast = (lambda a: a.astype(jnp.bfloat16)) if mxu_bf16 else (lambda a: a)
    x = jnp.transpose(S, (2, 3, 0, 1))                              # (N, C, H, W)
    y = jax.lax.conv_general_dilated(
        cast(x), cast(w1), (1, 1), ((2, 2), (2, 2)),
        dimension_numbers=("NCHW", "OIHW", "NCHW"),
        preferred_element_type=jnp.float32)
    y = y + b1[None, :, None, None]
    y = jax.nn.gelu(y, approximate=False)
    y = jax.lax.conv_general_dilated(
        cast(y), cast(w2), (1, 1), ((0, 0), (0, 0)),
        dimension_numbers=("NCHW", "OIHW", "NCHW"),
        preferred_element_type=jnp.float32)
    y = y + b2[None, :, None, None]
    return jnp.transpose(y, (2, 3, 0, 1))                           # (H, W, N, C)


if __name__ == "__main__":
    # Module hyperparameters (small, consistent with ScoreMatrixPostProcessor.__init__)
    nTarget, nHidden, dropoutProb = 4, 32, 0.0      # dropout is identity in eval mode
    H, W, N = 16, 16, 2                             # 16x16 score matrix, batch 2

    key = jax.random.PRNGKey(0)
    ks, k1, k2, k3, k4 = jax.random.split(key, 5)
    S = jax.random.normal(ks, (H, W, N, nTarget), jnp.float32)

    # PyTorch Conv2d default init: U(-1/sqrt(fan_in), 1/sqrt(fan_in))
    bound1 = 1.0 / math.sqrt(nTarget * 9)
    w1 = jax.random.uniform(k1, (nHidden, nTarget, 3, 3), jnp.float32, -bound1, bound1)
    b1 = jax.random.uniform(k2, (nHidden,), jnp.float32, -bound1, bound1)
    bound2 = 1.0 / math.sqrt(nHidden * 9)
    w2 = jax.random.uniform(k3, (nTarget, nHidden, 3, 3), jnp.float32, -bound2, bound2)
    b2 = jax.random.uniform(k4, (nTarget,), jnp.float32, -bound2, bound2)

    params = prepare_params(w1, b1, w2, b2)         # one-time weight prep (outside jit)
    fwd = jax.jit(functools.partial(score_matrix_post_process, n_target=nTarget))

    out = jax.block_until_ready(fwd(S, params))
    assert out.shape == (H, W, N, nTarget), out.shape

    # Tight check vs a precision-mirrored reference (bf16 MXU operands, f32 accumulation).
    ref_bf16 = _reference(S, w1, b1, w2, b2, mxu_bf16=True)
    err_bf16 = float(jnp.max(jnp.abs(out - ref_bf16)))
    assert jnp.allclose(out, ref_bf16, atol=1e-3, rtol=1e-3), err_bf16

    # Loose sanity check vs exact-f32 PyTorch eval semantics.
    ref_f32 = _reference(S, w1, b1, w2, b2, mxu_bf16=False)
    err_f32 = float(jnp.max(jnp.abs(out - ref_f32)))
    assert jnp.allclose(out, ref_f32, atol=1e-1, rtol=1e-1), err_f32

    print("KERNEL_OK")
</pallas_src>

<mosaic_0001>
module attributes {stable_mosaic.version = 11 : i64} {
  func.func @_postproc_kernel(%arg0: i32, %arg1: memref<1x432x36xf32, #tpu.memory_space<vmem>>, %arg2: memref<36x32xbf16, #tpu.memory_space<vmem>>, %arg3: memref<1x32xf32, #tpu.memory_space<vmem>>, %arg4: memref<9x32x128xbf16, #tpu.memory_space<vmem>>, %arg5: memref<1x128xf32, #tpu.memory_space<vmem>>, %arg6: memref<1x256x128xf32, #tpu.memory_space<vmem>>) attributes {dimension_semantics = [#tpu.dimension_semantics<parallel>], iteration_bounds = array<i64: 2>, scalar_prefetch = 0 : i64, scratch_operands = 0 : i64, tpu.core_type = #tpu.core_type<tc>, window_params = [{transform_indices = @transform_0, window_bounds = array<i64: 1, 432, 36>}, {pipeline_mode = #tpu.pipeline_mode<synchronous>, transform_indices = @transform_1, window_bounds = array<i64: 36, 32>}, {pipeline_mode = #tpu.pipeline_mode<synchronous>, transform_indices = @transform_2, window_bounds = array<i64: 1, 32>}, {pipeline_mode = #tpu.pipeline_mode<synchronous>, transform_indices = @transform_3, window_bounds = array<i64: 9, 32, 128>}, {pipeline_mode = #tpu.pipeline_mode<synchronous>, transform_indices = @transform_4, window_bounds = array<i64: 1, 128>}, {transform_indices = @transform_5, window_bounds = array<i64: 1, 256, 128>}]} {
    %c0 = arith.constant 0 : index
    %c0_0 = arith.constant 0 : index
    %c0_1 = arith.constant 0 : index
    %0 = vector.load %arg1[%c0, %c0_0, %c0_1] : memref<1x432x36xf32, #tpu.memory_space<vmem>>, vector<1x432x36xf32>
    %1 = vector.shape_cast %0 : vector<1x432x36xf32> to vector<432x36xf32>
    %2 = arith.truncf %1 : vector<432x36xf32> to vector<432x36xbf16>
    %c0_2 = arith.constant 0 : index
    %c0_3 = arith.constant 0 : index
    %3 = vector.load %arg2[%c0_2, %c0_3] : memref<36x32xbf16, #tpu.memory_space<vmem>>, vector<36x32xbf16>
    %cst = arith.constant dense<0.000000e+00> : vector<432x32xf32>
    %4 = tpu.matmul %2, %3, %cst {dimension_numbers = #tpu.dot_dimension_numbers<[1], [0], [0], [1], [0, 0, 1, 1], [], []>} : vector<432x36xbf16>, vector<36x32xbf16>, vector<432x32xf32> -> vector<432x32xf32>
    %c0_4 = arith.constant 0 : index
    %c0_5 = arith.constant 0 : index
    %5 = vector.load %arg3[%c0_4, %c0_5] : memref<1x32xf32, #tpu.memory_space<vmem>>, vector<1x32xf32>
    %6 = vector.broadcast %5 : vector<1x32xf32> to vector<432x32xf32>
    %7 = arith.addf %4, %6 : vector<432x32xf32>
    %cst_6 = arith.constant 5.000000e-01 : f32
    %8 = vector.broadcast %cst_6 : f32 to vector<432x32xf32>
    %9 = arith.mulf %7, %8 : vector<432x32xf32>
    %cst_7 = arith.constant 0.707106769 : f32
    %10 = vector.broadcast %cst_7 : f32 to vector<432x32xf32>
    %11 = arith.mulf %7, %10 : vector<432x32xf32>
    %cst_8 = arith.constant 0.000000e+00 : f32
    %12 = vector.broadcast %cst_8 : f32 to vector<432x32xf32>
    %13 = arith.cmpf oge, %11, %12 : vector<432x32xf32>
    %cst_9 = arith.constant 1.000000e+00 : f32
    %cst_10 = arith.constant -1.000000e+00 : f32
    %14 = vector.broadcast %cst_9 : f32 to vector<432x32xf32>
    %15 = vector.broadcast %cst_10 : f32 to vector<432x32xf32>
    %16 = arith.select %13, %14, %15 : vector<432x32xi1>, vector<432x32xf32>
    %17 = math.absf %11 : vector<432x32xf32>
    %cst_11 = arith.constant 0.327591091 : f32
    %18 = vector.broadcast %cst_11 : f32 to vector<432x32xf32>
    %19 = arith.mulf %18, %17 : vector<432x32xf32>
    %cst_12 = arith.constant 1.000000e+00 : f32
    %20 = vector.broadcast %cst_12 : f32 to vector<432x32xf32>
    %21 = arith.addf %20, %19 : vector<432x32xf32>
    %cst_13 = arith.constant 1.000000e+00 : f32
    %22 = vector.broadcast %cst_13 : f32 to vector<432x32xf32>
    %23 = arith.divf %22, %21 : vector<432x32xf32>
    %cst_14 = arith.constant 1.06140542 : f32
    %24 = vector.broadcast %cst_14 : f32 to vector<432x32xf32>
    %25 = arith.mulf %24, %23 : vector<432x32xf32>
    %cst_15 = arith.constant -1.45315206 : f32
    %26 = vector.broadcast %cst_15 : f32 to vector<432x32xf32>
    %27 = arith.addf %25, %26 : vector<432x32xf32>
    %28 = arith.mulf %27, %23 : vector<432x32xf32>
    %cst_16 = arith.constant 1.42141378 : f32
    %29 = vector.broadcast %cst_16 : f32 to vector<432x32xf32>
    %30 = arith.addf %28, %29 : vector<432x32xf32>
    %31 = arith.mulf %30, %23 : vector<432x32xf32>
    %cst_17 = arith.constant -0.284496725 : f32
    %32 = vector.broadcast %cst_17 : f32 to vector<432x32xf32>
    %33 = arith.addf %31, %32 : vector<432x32xf32>
    %34 = arith.mulf %33, %23 : vector<432x32xf32>
    %cst_18 = arith.constant 0.254829586 : f32
    %35 = vector.broadcast %cst_18 : f32 to vector<432x32xf32>
    %36 = arith.addf %34, %35 : vector<432x32xf32>
    %37 = arith.mulf %36, %23 : vector<432x32xf32>
    %38 = arith.mulf %17, %17 : vector<432x32xf32>
    %cst_19 = arith.constant 0.000000e+00 : f32
    %39 = vector.broadcast %cst_19 : f32 to vector<432x32xf32>
    %40 = arith.subf %39, %38 : vector<432x32xf32>
    %41 = math.exp %40 : vector<432x32xf32>
    %42 = arith.mulf %37, %41 : vector<432x32xf32>
    %cst_20 = arith.constant 1.000000e+00 : f32
    %43 = vector.broadcast %cst_20 : f32 to vector<432x32xf32>
    %44 = arith.subf %43, %42 : vector<432x32xf32>
    %45 = arith.mulf %16, %44 : vector<432x32xf32>
    %cst_21 = arith.constant 1.000000e+00 : f32
    %46 = vector.broadcast %cst_21 : f32 to vector<432x32xf32>
    %47 = arith.addf %46, %45 : vector<432x32xf32>
    %48 = arith.mulf %9, %47 : vector<432x32xf32>
    %49 = vector.shape_cast %48 : vector<432x32xf32> to vector<18x24x32xf32>
    %50 = vector.extract_strided_slice %49 {offsets = [0, 0, 0], sizes = [16, 16, 32], strides = [1, 1, 1]} : vector<18x24x32xf32> to vector<16x16x32xf32>
    %51 = vector.shape_cast %50 : vector<16x16x32xf32> to vector<256x32xf32>
    %52 = arith.truncf %51 : vector<256x32xf32> to vector<256x32xbf16>
    %c0_22 = arith.constant 0 : index
    %c0_23 = arith.constant 0 : index
    %c0_24 = arith.constant 0 : index
    %53 = vector.load %arg4[%c0_22, %c0_23, %c0_24] : memref<9x32x128xbf16, #tpu.memory_space<vmem>>, vector<1x32x128xbf16>
    %54 = vector.shape_cast %53 : vector<1x32x128xbf16> to vector<32x128xbf16>
    %cst_25 = arith.constant dense<0.000000e+00> : vector<256x128xf32>
    %55 = tpu.matmul %52, %54, %cst_25 {dimension_numbers = #tpu.dot_dimension_numbers<[1], [0], [0], [1], [0, 0, 1, 1], [], []>} : vector<256x32xbf16>, vector<32x128xbf16>, vector<256x128xf32> -> vector<256x128xf32>
    %56 = vector.extract_strided_slice %49 {offsets = [0, 1, 0], sizes = [16, 16, 32], strides = [1, 1, 1]} : vector<18x24x32xf32> to vector<16x16x32xf32>
    %57 = vector.shape_cast %56 : vector<16x16x32xf32> to vector<256x32xf32>
    %58 = arith.truncf %57 : vector<256x32xf32> to vector<256x32xbf16>
    %c1 = arith.constant 1 : index
    %c0_26 = arith.constant 0 : index
    %c0_27 = arith.constant 0 : index
    %59 = vector.load %arg4[%c1, %c0_26, %c0_27] : memref<9x32x128xbf16, #tpu.memory_space<vmem>>, vector<1x32x128xbf16>
    %60 = vector.shape_cast %59 : vector<1x32x128xbf16> to vector<32x128xbf16>
    %cst_28 = arith.constant dense<0.000000e+00> : vector<256x128xf32>
    %61 = tpu.matmul %58, %60, %cst_28 {dimension_numbers = #tpu.dot_dimension_numbers<[1], [0], [0], [1], [0, 0, 1, 1], [], []>} : vector<256x32xbf16>, vector<32x128xbf16>, vector<256x128xf32> -> vector<256x128xf32>
    %62 = arith.addf %55, %61 : vector<256x128xf32>
    %63 = vector.extract_strided_slice %49 {offsets = [0, 2, 0], sizes = [16, 16, 32], strides = [1, 1, 1]} : vector<18x24x32xf32> to vector<16x16x32xf32>
    %64 = vector.shape_cast %63 : vector<16x16x32xf32> to vector<256x32xf32>
    %65 = arith.truncf %64 : vector<256x32xf32> to vector<256x32xbf16>
    %c2 = arith.constant 2 : index
    %c0_29 = arith.constant 0 : index
    %c0_30 = arith.constant 0 : index
    %66 = vector.load %arg4[%c2, %c0_29, %c0_30] : memref<9x32x128xbf16, #tpu.memory_space<vmem>>, vector<1x32x128xbf16>
    %67 = vector.shape_cast %66 : vector<1x32x128xbf16> to vector<32x128xbf16>
    %cst_31 = arith.constant dense<0.000000e+00> : vector<256x128xf32>
    %68 = tpu.matmul %65, %67, %cst_31 {dimension_numbers = #tpu.dot_dimension_numbers<[1], [0], [0], [1], [0, 0, 1, 1], [], []>} : vector<256x32xbf16>, vector<32x128xbf16>, vector<256x128xf32> -> vector<256x128xf32>
    %69 = arith.addf %62, %68 : vector<256x128xf32>
    %70 = vector.extract_strided_slice %49 {offsets = [1, 0, 0], sizes = [16, 16, 32], strides = [1, 1, 1]} : vector<18x24x32xf32> to vector<16x16x32xf32>
    %71 = vector.shape_cast %70 : vector<16x16x32xf32> to vector<256x32xf32>
    %72 = arith.truncf %71 : vector<256x32xf32> to vector<256x32xbf16>
    %c3 = arith.constant 3 : index
    %c0_32 = arith.constant 0 : index
    %c0_33 = arith.constant 0 : index
    %73 = vector.load %arg4[%c3, %c0_32, %c0_33] : memref<9x32x128xbf16, #tpu.memory_space<vmem>>, vector<1x32x128xbf16>
    %74 = vector.shape_cast %73 : vector<1x32x128xbf16> to vector<32x128xbf16>
    %cst_34 = arith.constant dense<0.000000e+00> : vector<256x128xf32>
    %75 = tpu.matmul %72, %74, %cst_34 {dimension_numbers = #tpu.dot_dimension_numbers<[1], [0], [0], [1], [0, 0, 1, 1], [], []>} : vector<256x32xbf16>, vector<32x128xbf16>, vector<256x128xf32> -> vector<256x128xf32>
    %76 = arith.addf %69, %75 : vector<256x128xf32>
    %77 = vector.extract_strided_slice %49 {offsets = [1, 1, 0], sizes = [16, 16, 32], strides = [1, 1, 1]} : vector<18x24x32xf32> to vector<16x16x32xf32>
    %78 = vector.shape_cast %77 : vector<16x16x32xf32> to vector<256x32xf32>
    %79 = arith.truncf %78 : vector<256x32xf32> to vector<256x32xbf16>
    %c4 = arith.constant 4 : index
    %c0_35 = arith.constant 0 : index
    %c0_36 = arith.constant 0 : index
    %80 = vector.load %arg4[%c4, %c0_35, %c0_36] : memref<9x32x128xbf16, #tpu.memory_space<vmem>>, vector<1x32x128xbf16>
    %81 = vector.shape_cast %80 : vector<1x32x128xbf16> to vector<32x128xbf16>
    %cst_37 = arith.constant dense<0.000000e+00> : vector<256x128xf32>
    %82 = tpu.matmul %79, %81, %cst_37 {dimension_numbers = #tpu.dot_dimension_numbers<[1], [0], [0], [1], [0, 0, 1, 1], [], []>} : vector<256x32xbf16>, vector<32x128xbf16>, vector<256x128xf32> -> vector<256x128xf32>
    %83 = arith.addf %76, %82 : vector<256x128xf32>
    %84 = vector.extract_strided_slice %49 {offsets = [1, 2, 0], sizes = [16, 16, 32], strides = [1, 1, 1]} : vector<18x24x32xf32> to vector<16x16x32xf32>
    %85 = vector.shape_cast %84 : vector<16x16x32xf32> to vector<256x32xf32>
    %86 = arith.truncf %85 : vector<256x32xf32> to vector<256x32xbf16>
    %c5 = arith.constant 5 : index
    %c0_38 = arith.constant 0 : index
    %c0_39 = arith.constant 0 : index
    %87 = vector.load %arg4[%c5, %c0_38, %c0_39] : memref<9x32x128xbf16, #tpu.memory_space<vmem>>, vector<1x32x128xbf16>
    %88 = vector.shape_cast %87 : vector<1x32x128xbf16> to vector<32x128xbf16>
    %cst_40 = arith.constant dense<0.000000e+00> : vector<256x128xf32>
    %89 = tpu.matmul %86, %88, %cst_40 {dimension_numbers = #tpu.dot_dimension_numbers<[1], [0], [0], [1], [0, 0, 1, 1], [], []>} : vector<256x32xbf16>, vector<32x128xbf16>, vector<256x128xf32> -> vector<256x128xf32>
    %90 = arith.addf %83, %89 : vector<256x128xf32>
    %91 = vector.extract_strided_slice %49 {offsets = [2, 0, 0], sizes = [16, 16, 32], strides = [1, 1, 1]} : vector<18x24x32xf32> to vector<16x16x32xf32>
    %92 = vector.shape_cast %91 : vector<16x16x32xf32> to vector<256x32xf32>
    %93 = arith.truncf %92 : vector<256x32xf32> to vector<256x32xbf16>
    %c6 = arith.constant 6 : index
    %c0_41 = arith.constant 0 : index
    %c0_42 = arith.constant 0 : index
    %94 = vector.load %arg4[%c6, %c0_41, %c0_42] : memref<9x32x128xbf16, #tpu.memory_space<vmem>>, vector<1x32x128xbf16>
    %95 = vector.shape_cast %94 : vector<1x32x128xbf16> to vector<32x128xbf16>
    %cst_43 = arith.constant dense<0.000000e+00> : vector<256x128xf32>
    %96 = tpu.matmul %93, %95, %cst_43 {dimension_numbers = #tpu.dot_dimension_numbers<[1], [0], [0], [1], [0, 0, 1, 1], [], []>} : vector<256x32xbf16>, vector<32x128xbf16>, vector<256x128xf32> -> vector<256x128xf32>
    %97 = arith.addf %90, %96 : vector<256x128xf32>
    %98 = vector.extract_strided_slice %49 {offsets = [2, 1, 0], sizes = [16, 16, 32], strides = [1, 1, 1]} : vector<18x24x32xf32> to vector<16x16x32xf32>
    %99 = vector.shape_cast %98 : vector<16x16x32xf32> to vector<256x32xf32>
    %100 = arith.truncf %99 : vector<256x32xf32> to vector<256x32xbf16>
    %c7 = arith.constant 7 : index
    %c0_44 = arith.constant 0 : index
    %c0_45 = arith.constant 0 : index
    %101 = vector.load %arg4[%c7, %c0_44, %c0_45] : memref<9x32x128xbf16, #tpu.memory_space<vmem>>, vector<1x32x128xbf16>
    %102 = vector.shape_cast %101 : vector<1x32x128xbf16> to vector<32x128xbf16>
    %cst_46 = arith.constant dense<0.000000e+00> : vector<256x128xf32>
    %103 = tpu.matmul %100, %102, %cst_46 {dimension_numbers = #tpu.dot_dimension_numbers<[1], [0], [0], [1], [0, 0, 1, 1], [], []>} : vector<256x32xbf16>, vector<32x128xbf16>, vector<256x128xf32> -> vector<256x128xf32>
    %104 = arith.addf %97, %103 : vector<256x128xf32>
    %105 = vector.extract_strided_slice %49 {offsets = [2, 2, 0], sizes = [16, 16, 32], strides = [1, 1, 1]} : vector<18x24x32xf32> to vector<16x16x32xf32>
    %106 = vector.shape_cast %105 : vector<16x16x32xf32> to vector<256x32xf32>
    %107 = arith.truncf %106 : vector<256x32xf32> to vector<256x32xbf16>
    %c8 = arith.constant 8 : index
    %c0_47 = arith.constant 0 : index
    %c0_48 = arith.constant 0 : index
    %108 = vector.load %arg4[%c8, %c0_47, %c0_48] : memref<9x32x128xbf16, #tpu.memory_space<vmem>>, vector<1x32x128xbf16>
    %109 = vector.shape_cast %108 : vector<1x32x128xbf16> to vector<32x128xbf16>
    %cst_49 = arith.constant dense<0.000000e+00> : vector<256x128xf32>
    %110 = tpu.matmul %107, %109, %cst_49 {dimension_numbers = #tpu.dot_dimension_numbers<[1], [0], [0], [1], [0, 0, 1, 1], [], []>} : vector<256x32xbf16>, vector<32x128xbf16>, vector<256x128xf32> -> vector<256x128xf32>
    %111 = arith.addf %104, %110 : vector<256x128xf32>
    %c0_50 = arith.constant 0 : index
    %c0_51 = arith.constant 0 : index
    %112 = vector.load %arg5[%c0_50, %c0_51] : memref<1x128xf32, #tpu.memory_space<vmem>>, vector<1x128xf32>
    %113 = vector.broadcast %112 : vector<1x128xf32> to vector<256x128xf32>
    %114 = arith.addf %111, %113 : vector<256x128xf32>
    %c0_52 = arith.constant 0 : index
    %c0_53 = arith.constant 0 : index
    %c0_54 = arith.constant 0 : index
    %115 = vector.load %arg6[%c0_52, %c0_53, %c0_54] : memref<1x256x128xf32, #tpu.memory_space<vmem>>, vector<1x256x128xf32>
    %116 = vector.shape_cast %115 : vector<1x256x128xf32> to vector<256x128xf32>
    %117 = vector.shape_cast %114 : vector<256x128xf32> to vector<1x256x128xf32>
    tpu.vector_store %arg6[%c0_52, %c0_53, %c0_54], %117 {strides = array<i32>} : memref<1x256x128xf32, #tpu.memory_space<vmem>>, vector<1x256x128xf32>,
    return
  }
  func.func @transform_0(%arg0: i32) -> (i32, i32, i32) {
    %c0_i32 = arith.constant 0 : i32
    %c0_i32_0 = arith.constant 0 : i32
    %c0_i32_1 = arith.constant 0 : i32
    return %arg0, %c0_i32, %c0_i32_0 : i32, i32, i32
  }
  func.func @transform_1(%arg0: i32) -> (i32, i32) {
    %c0_i32 = arith.constant 0 : i32
    %c0_i32_0 = arith.constant 0 : i32
    %c0_i32_1 = arith.constant 0 : i32
    return %c0_i32, %c0_i32_0 : i32, i32
  }
  func.func @transform_2(%arg0: i32) -> (i32, i32) {
    %c0_i32 = arith.constant 0 : i32
    %c0_i32_0 = arith.constant 0 : i32
    %c0_i32_1 = arith.constant 0 : i32
    return %c0_i32, %c0_i32_0 : i32, i32
  }
  func.func @transform_3(%arg0: i32) -> (i32, i32, i32) {
    %c0_i32 = arith.constant 0 : i32
    %c0_i32_0 = arith.constant 0 : i32
    %c0_i32_1 = arith.constant 0 : i32
    %c0_i32_2 = arith.constant 0 : i32
    return %c0_i32, %c0_i32_0, %c0_i32_1 : i32, i32, i32
  }
  func.func @transform_4(%arg0: i32) -> (i32, i32) {
    %c0_i32 = arith.constant 0 : i32
    %c0_i32_0 = arith.constant 0 : i32
    %c0_i32_1 = arith.constant 0 : i32
    return %c0_i32, %c0_i32_0 : i32, i32
  }
  func.func @transform_5(%arg0: i32) -> (i32, i32, i32) {
    %c0_i32 = arith.constant 0 : i32
    %c0_i32_0 = arith.constant 0 : i32
    %c0_i32_1 = arith.constant 0 : i32
    return %arg0, %c0_i32, %c0_i32_0 : i32, i32, i32
  }
}

</mosaic_0001>

<bundles_post_ra>
// kernel: score_matrix_post_process.1
= control target key start
LH: loop header
LB: loop body
LE: loop exit
PB: predicated region body
PF: predicated region fallthrough
CT: control target
= control target key end

     0   :  { %s6025_s18 = smov 0   ;;  %s8727_s0 = inlined_call_operand.vmem [shape: f32[2,432,36], index: 0, kind: input, shape index: {}]   ;;  %s8728_s1 = inlined_call_operand.vmem [shape: bf16[36,32], index: 1, kind: input, shape index: {}]   ;;  %s8729_s2 = inlined_call_operand.vmem [shape: f32[1,32], index: 2, kind: input, shape index: {}]   ;;  %s8730_s3 = inlined_call_operand.vmem [shape: bf16[9,32,128], index: 3, kind: input, shape index: {}]   ;;  %s8731_s4 = inlined_call_operand.vmem [shape: f32[1,128], index: 4, kind: input, shape index: {}]   ;;  %s8732_s5 = inlined_call_operand.vmem [shape: f32[2,256,128], index: 5, kind: output, shape index: {}]  }
   0x1 LB: > { %s4603_s19 = sadd.s32 4294967295, %s5990_s18   ;;  %p4607_p0 = scmp.ge.s32.totalorder %s5990_s18, 1  ;;  %s5990_s18 = sphi %s6025_s18, %s15_s18  }
   0x2   : > { %p187_p1 = scmp.lt.s32.totalorder %s5990_s18, 3 }
   0x4   : > { %p188_p2 = pnand %p4607_p0, %p187_p1 }
   0x6   : > { %191 = sbr.rel (%p188_p2) target bundleno = 1235 (0x4d3), region = 40 }
   0xd   : > { %v5742_v0 = vld [vmem:[%s8728_s1] sm:$0xff]   ;;  %v5992_v1 = vmov 0.0   ;;  %v5743_v2 = vld [vmem:[%s8728_s1 + $0x8] sm:$0xff]   ;;  %v5744_v3 = vld [vmem:[%s8728_s1 + $0x10] ss:$0 sps:$4 sm:$0x33]  }
   0xe   : > { %5032 = vmatprep.subr.bf16.mxu0 %v5992_v1  ;;  %vm5993_vm0 = vmmov 0   ;;  %p215_p3 = scmp.lt.s32.totalorder %s4603_s19, 1  ;;  %vm416_vm1 = vcmask 1041408   ;;  %vm334_vm2 = vcmask 293888   ;;  %vm2195_vm12 = vcmask 1046528  }
   0xf   : > { %5033 = vmatpush3.bf16.msra.mxu0 %v5742_v0  ;;  %5038 = vmatprep.mubr.msk.bf16.mxu0 %vm5993_vm0, %v5992_v1  ;;  %v418_v4 = vsel %vm416_vm1, %v5744_v3, 0 }
  0x10   : > { %5034 = vmatprep.subr.bf16.mxu0 %v5992_v1  ;;  %s8959_s19 = smov (!%p215_p3, %s4603_s19), 1 }
  0x11   : > { %s5730_s26 = smul.u32 432, %s8959_s19  ;;  %s4839_s7 = sshll.u32 %s8959_s19, 8 }
  0x12   : > { %s8627_s12 = scalar_lea.vmem %s8732_s5, %s4839_s7 }
  0x13   : > { %5035 = vmatpush3.bf16.msra.mxu0 %v5743_v2  ;;  %s6053_s29 = scalar_lea.vmem %s8727_s0, %s5730_s26 }
  0x14   : > { %5036 = vmatprep.subr.bf16.mxu0 %v5992_v1  ;;  %v226_v5 = vld [vmem:[%s6053_s29] sm:$0xff]  ;;  %v227_v6 = vld [vmem:[%s6053_s29 + $0x8] sm:$0xff]  ;;  %v228_v8 = vld [vmem:[%s6053_s29 + $0x10] sm:$0xff] }
  0x15   : > { %v280_v7 = vpack.c.bf16 %v227_v6, %v226_v5  ;;  %v229_v9 = vld [vmem:[%s6053_s29 + $0x18] sm:$0xff]  ;;  %v230_v11 = vld [vmem:[%s6053_s29 + $0x20] sm:$0xff]  ;;  %v231_v12 = vld [vmem:[%s6053_s29 + $0x28] sm:$0xff] }
  0x16   : > { %v281_v10 = vpack.c.bf16 %v229_v9, %v228_v8  ;;  %v282_v13 = vpack.c.bf16 %v231_v12, %v230_v11  ;;  %v232_v14 = vld [vmem:[%s6053_s29 + $0x30] sm:$0xff]  ;;  %v233_v15 = vld [vmem:[%s6053_s29 + $0x38] sm:$0xff]  ;;  %v234_v17 = vld [vmem:[%s6053_s29 + $0x40] sm:$0xff] }
  0x17   : > { %5037 = vmatpush3.bf16.msra.mxu0 %v418_v4  ;;  %v283_v16 = vpack.c.bf16 %v233_v15, %v232_v14  ;;  %v235_v18 = vld [vmem:[%s6053_s29 + $0x48] sm:$0xff]  ;;  %v236_v20 = vld [vmem:[%s6053_s29 + $0x50] sm:$0xff]  ;;  %v237_v21 = vld [vmem:[%s6053_s29 + $0x58] sm:$0xff] }
  0x18   : > { %v284_v19 = vpack.c.bf16 %v235_v18, %v234_v17  ;;  %v285_v22 = vpack.c.bf16 %v237_v21, %v236_v20  ;;  %v238_v23 = vld [vmem:[%s6053_s29 + $0x60] sm:$0xff]  ;;  %v239_v24 = vld [vmem:[%s6053_s29 + $0x68] sm:$0xff]  ;;  %v240_v26 = vld [vmem:[%s6053_s29 + $0x70] sm:$0xff] }
  0x19   : > { %v286_v25 = vpack.c.bf16 %v239_v24, %v238_v23  ;;  %v241_v27 = vld [vmem:[%s6053_s29 + $0x78] sm:$0xff]  ;;  %v242_v29 = vld [vmem:[%s6053_s29 + $0x80] sm:$0xff]  ;;  %v243_v30 = vld [vmem:[%s6053_s29 + $0x88] sm:$0xff] }
  0x1a   : > { %5039 = vmatmul.mubr.msk.bf16.vlgmr.msra.gmra.mrb[0].mxu0 %vm334_vm2, %v280_v7  ;;  %v287_v28 = vpack.c.bf16 %v241_v27, %v240_v26  ;;  %v288_v31 = vpack.c.bf16 %v243_v30, %v242_v29  ;;  %v244_v32 = vld [vmem:[%s6053_s29 + $0x90] sm:$0xff]  ;;  %v245_v33 = vld [vmem:[%s6053_s29 + $0x98] sm:$0xff]  ;;  %v246_v35 = vld [vmem:[%s6053_s29 + $0xa0] sm:$0xff] }
  0x1b   : > { %5042 = vmatprep.mubr.msk.bf16.mxu0 %vm5993_vm0, %v5992_v1  ;;  %v289_v34 = vpack.c.bf16 %v245_v33, %v244_v32  ;;  %v247_v36 = vld [vmem:[%s6053_s29 + $0xa8] sm:$0xff]  ;;  %v248_v38 = vld [vmem:[%s6053_s29 + $0xb0] sm:$0xff]  ;;  %v249_v39 = vld [vmem:[%s6053_s29 + $0xb8] sm:$0xff] }
  0x1c   : > { %v290_v37 = vpack.c.bf16 %v247_v36, %v246_v35  ;;  %v291_v40 = vpack.c.bf16 %v249_v39, %v248_v38  ;;  %v250_v41 = vld [vmem:[%s6053_s29 + $0xc0] sm:$0xff]  ;;  %v251_v42 = vld [vmem:[%s6053_s29 + $0xc8] sm:$0xff]  ;;  %v252_v44 = vld [vmem:[%s6053_s29 + $0xd0] sm:$0xff] }
  0x1d   : > { %v292_v43 = vpack.c.bf16 %v251_v42, %v250_v41  ;;  %v253_v45 = vld [vmem:[%s6053_s29 + $0xd8] sm:$0xff]  ;;  %v254_v47 = vld [vmem:[%s6053_s29 + $0xe0] sm:$0xff]  ;;  %v255_v48 = vld [vmem:[%s6053_s29 + $0xe8] sm:$0xff] }
  0x1e   : > { %v293_v46 = vpack.c.bf16 %v253_v45, %v252_v44  ;;  %v294_v49 = vpack.c.bf16 %v255_v48, %v254_v47  ;;  %v256_v50 = vld [vmem:[%s6053_s29 + $0xf0] sm:$0xff]  ;;  %v257_v51 = vld [vmem:[%s6053_s29 + $0xf8] sm:$0xff]  ;;  %v258_v53 = vld [vmem:[%s6053_s29 + $0x100] sm:$0xff] }
  0x1f   : > { %v295_v52 = vpack.c.bf16 %v257_v51, %v256_v50  ;;  %v259_v54 = vld [vmem:[%s6053_s29 + $0x108] sm:$0xff]  ;;  %v260_v56 = vld [vmem:[%s6053_s29 + $0x110] sm:$0xff]  ;;  %v261_v57 = vld [vmem:[%s6053_s29 + $0x118] sm:$0xff] }
  0x20   : > { %v296_v55 = vpack.c.bf16 %v259_v54, %v258_v53  ;;  %v297_v58 = vpack.c.bf16 %v261_v57, %v260_v56  ;;  %v262_v59 = vld [vmem:[%s6053_s29 + $0x120] sm:$0xff]  ;;  %v263_v60 = vld [vmem:[%s6053_s29 + $0x128] sm:$0xff]  ;;  %v264_v62 = vld [vmem:[%s6053_s29 + $0x130] sm:$0xff] }
  0x21   : > { %v298_v61 = vpack.c.bf16 %v263_v60, %v262_v59  ;;  %v265_v63 = vld [vmem:[%s6053_s29 + $0x138] sm:$0xff]  ;;  %v266_v2 = vld [vmem:[%s6053_s29 + $0x140] sm:$0xff]  ;;  %v267_v3 = vld [vmem:[%s6053_s29 + $0x148] sm:$0xff] }
  0x22   : > { %5043 = vmatmul.mubr.msk.bf16.gmra.mrb[4].mxu0 %vm334_vm2, %v281_v10  ;;  %v299_v0 = vpack.c.bf16 %v265_v63, %v264_v62  ;;  %v300_v4 = vpack.c.bf16 %v267_v3, %v266_v2  ;;  %v268_v5 = vld [vmem:[%s6053_s29 + $0x150] sm:$0xff]  ;;  %v269_v6 = vld [vmem:[%s6053_s29 + $0x158] sm:$0xff]  ;;  %v270_v8 = vld [vmem:[%s6053_s29 + $0x160] sm:$0xff] }
  0x23   : > { %5046 = vmatprep.mubr.msk.bf16.mxu0 %vm5993_vm0, %v5992_v1  ;;  %v301_v7 = vpack.c.bf16 %v269_v6, %v268_v5  ;;  %v271_v9 = vld [vmem:[%s6053_s29 + $0x168] sm:$0xff]  ;;  %v272_v11 = vld [vmem:[%s6053_s29 + $0x170] sm:$0xff]  ;;  %v273_v12 = vld [vmem:[%s6053_s29 + $0x178] sm:$0xff] }
  0x24   : > { %v302_v10 = vpack.c.bf16 %v271_v9, %v270_v8  ;;  %v274_v14 = vld [vmem:[%s6053_s29 + $0x180] sm:$0xff]  ;;  %v275_v15 = vld [vmem:[%s6053_s29 + $0x188] sm:$0xff]  ;;  %v276_v17 = vld [vmem:[%s6053_s29 + $0x190] sm:$0xff] }
  0x25   : > { %v277_v18 = vld [vmem:[%s6053_s29 + $0x198] sm:$0xff]  ;;  %v278_v21 = vld [vmem:[%s6053_s29 + $0x1a0] sm:$0xff] }
  0x26   : > { %v305_v20 = vpack.c.bf16 %v277_v18, %v276_v17  ;;  %v5746_v23 = vld [vmem:[%s8730_s3 + $0x18] sm:$0xff]  }
  0x2a   : > { %5047 = vmatmul.mubr.msk.bf16.gmra.mrb[8].mxu0 %vm334_vm2, %v282_v13  ;;  %v303_v13 = vpack.c.bf16 %v273_v12, %v272_v11 }
  0x2b   : > { %5050 = vmatprep.mubr.msk.bf16.mxu0 %vm5993_vm0, %v5992_v1 }
  0x32   : > { %5051 = vmatmul.mubr.msk.bf16.gmra.mrb[12].mxu0 %vm334_vm2, %v283_v16  ;;  %v304_v16 = vpack.c.bf16 %v275_v15, %v274_v14 }
  0x33   : > { %5054 = vmatprep.mubr.msk.bf16.mxu0 %vm5993_vm0, %v5992_v1 }
  0x3a   : > { %5055 = vmatmul.mubr.msk.bf16.gmra.mrb[16].mxu0 %vm334_vm2, %v284_v19  ;;  %v5745_v19 = vld [vmem:[%s8730_s3 + $0x10] sm:$0xff]  }
  0x3b   : > { %5058 = vmatprep.mubr.msk.bf16.mxu0 %vm5993_vm0, %v5992_v1  ;;  %5146 = vmatprep.subr.bf16.mxu0 %v5745_v19 }
  0x3c   : > { %5147 = vmatpush3.bf16.msra.mxu0 %v5745_v19 }
  0x3d   : > { %5148 = vmatprep.subr.bf16.mxu0 %v5746_v23 }
  0x40   : > { %5149 = vmatpush3.bf16.msra.mxu0 %v5746_v23 }
  0x42   : > { %5059 = vmatmul.mubr.msk.bf16.gmra.mrb[20].mxu0 %vm334_vm2, %v285_v22  ;;  %v279_v22 = vld [vmem:[%s6053_s29 + $0x1a8] sm:$0xff] }
  0x43   : > { %5062 = vmatprep.mubr.msk.bf16.mxu0 %vm5993_vm0, %v5992_v1  ;;  %v306_v24 = vpack.c.bf16 %v279_v22, %v278_v21 }
  0x4a   : > { %5063 = vmatmul.mubr.msk.bf16.gmra.mrb[24].mxu0 %vm334_vm2, %v286_v25  ;;  %v6197_v25 = vld [vmem:[%s8729_s2] ss:$0 sm:$0xff] }
  0x4b   : > { %5066 = vmatprep.mubr.msk.bf16.mxu0 %vm5993_vm0, %v5992_v1 }
  0x52   : > { %5067 = vmatmul.mubr.msk.bf16.gmra.mrb[28].mxu0 %vm334_vm2, %v287_v28 }
  0x53   : > { %5070 = vmatprep.mubr.msk.bf16.mxu0 %vm5993_vm0, %v5992_v1 }
  0x5a   : > { %5071 = vmatmul.mubr.msk.bf16.gmra.mrb[32].mxu0 %vm334_vm2, %v288_v31 }
  0x5b   : > { %5074 = vmatprep.mubr.msk.bf16.mxu0 %vm5993_vm0, %v5992_v1 }
  0x62   : > { %5075 = vmatmul.mubr.msk.bf16.gmra.mrb[36].mxu0 %vm334_vm2, %v289_v34 }
  0x63   : > { %5078 = vmatprep.mubr.msk.bf16.mxu0 %vm5993_vm0, %v5992_v1 }
  0x6a   : > { %5079 = vmatmul.mubr.msk.bf16.gmra.mrb[40].mxu0 %vm334_vm2, %v290_v37 }
  0x6b   : > { %5082 = vmatprep.mubr.msk.bf16.mxu0 %vm5993_vm0, %v5992_v1 }
  0x72   : > { %5083 = vmatmul.mubr.msk.bf16.gmra.mrb[44].mxu0 %vm334_vm2, %v291_v40 }
  0x73   : > { %5086 = vmatprep.mubr.msk.bf16.mxu0 %vm5993_vm0, %v5992_v1 }
  0x7a   : > { %5087 = vmatmul.mubr.msk.bf16.gmra.mrb[48].mxu0 %vm334_vm2, %v292_v43 }
  0x7b   : > { %5090 = vmatprep.mubr.msk.bf16.mxu0 %vm5993_vm0, %v5992_v1 }
  0x82   : > { %5091 = vmatmul.mubr.msk.bf16.gmra.mrb[52].mxu0 %vm334_vm2, %v293_v46 }
  0x83   : > { %5094 = vmatprep.mubr.msk.bf16.mxu0 %vm5993_vm0, %v5992_v1 }
  0x8a   : > { %5095 = vmatmul.mubr.msk.bf16.gmra.mrb[56].mxu0 %vm334_vm2, %v294_v49 }
  0x8b   : > { %5098 = vmatprep.mubr.msk.bf16.mxu0 %vm5993_vm0, %v5992_v1 }
  0x92   : > { %5099 = vmatmul.mubr.msk.bf16.gmra.mrb[60].mxu0 %vm334_vm2, %v295_v52 }
  0x93   : > { %5102 = vmatprep.mubr.msk.bf16.mxu0 %vm5993_vm0, %v5992_v1 }
  0x9a   : > { %5103 = vmatmul.mubr.msk.bf16.gmra.mrb[64].mxu0 %vm334_vm2, %v296_v55 }
  0x9b   : > { %5106 = vmatprep.mubr.msk.bf16.mxu0 %vm5993_vm0, %v5992_v1 }
  0xa2   : > { %5107 = vmatmul.mubr.msk.bf16.gmra.mrb[68].mxu0 %vm334_vm2, %v297_v58 }
  0xa3   : > { %5110 = vmatprep.mubr.msk.bf16.mxu0 %vm5993_vm0, %v5992_v1 }
  0xaa   : > { %5111 = vmatmul.mubr.msk.bf16.gmra.mrb[72].mxu0 %vm334_vm2, %v298_v61 }
  0xab   : > { %5114 = vmatprep.mubr.msk.bf16.mxu0 %vm5993_vm0, %v5992_v1 }
  0xb2   : > { %5115 = vmatmul.mubr.msk.bf16.gmra.mrb[76].mxu0 %vm334_vm2, %v299_v0 }
  0xb3   : > { %5118 = vmatprep.mubr.msk.bf16.mxu0 %vm5993_vm0, %v5992_v1 }
  0xba   : > { %5119 = vmatmul.mubr.msk.bf16.gmra.mrb[80].mxu0 %vm334_vm2, %v300_v4 }
  0xbb   : > { %5122 = vmatprep.mubr.msk.bf16.mxu0 %vm5993_vm0, %v5992_v1 }
  0xc2   : > { %5123 = vmatmul.mubr.msk.bf16.gmra.mrb[84].mxu0 %vm334_vm2, %v301_v7 }
  0xc3   : > { %5126 = vmatprep.mubr.msk.bf16.mxu0 %vm5993_vm0, %v5992_v1 }
  0xca   : > { %5127 = vmatmul.mubr.msk.bf16.gmra.mrb[88].mxu0 %vm334_vm2, %v302_v10 }
  0xcb   : > { %5130 = vmatprep.mubr.msk.bf16.mxu0 %vm5993_vm0, %v5992_v1 }
  0xd2   : > { %5131 = vmatmul.mubr.msk.bf16.gmra.mrb[92].mxu0 %vm334_vm2, %v303_v13 }
  0xd3   : > { %5134 = vmatprep.mubr.msk.bf16.mxu0 %vm5993_vm0, %v5992_v1 }
  0xda   : > { %5135 = vmatmul.mubr.msk.bf16.gmra.mrb[96].mxu0 %vm334_vm2, %v304_v16 }
  0xdb   : > { %5138 = vmatprep.mubr.msk.bf16.mxu0 %vm5993_vm0, %v5992_v1 }
  0xe2   : > { %5139 = vmatmul.mubr.msk.bf16.gmra.mrb[100].mxu0 %vm334_vm2, %v305_v20 }
  0xe3   : > { %5142 = vmatprep.mubr.msk.bf16.mxu0 %vm5993_vm0, %v5992_v1  ;;  %vm2341_vm0 = vcmask 261120  }
  0xea   : > { %5143 = vmatmul.mubr.msk.bf16.gmra.mrb[104].mxu0 %vm334_vm2, %v306_v24 }
  0xed   : > { %v454_v26 = vpop.f32.mrb[0].mxu0 }
  0xee   : > { %v6200_v27 = vadd.f32 %v6197_v25, %v454_v26  ;;  %v5040_v1 = vpop.f32.mrb[1].mxu0 }
  0xef   : > { %v457_v28 = vpop.f32.mrb[2].mxu0 }
  0xf0   : > { %v6203_v29 = vmul.f32 0.70710677, %v6200_v27  ;;  %v6206_v30 = vadd.f32 %v6197_v25, %v457_v28  ;;  %v5041_v31 = vpop.f32.mrb[3].mxu0 }
  0xf2   : > { %v885_v32 = vand.u32 2147483647, %v6203_v29  ;;  %v6210_v33 = vmul.f32 0.70710677, %v6206_v30  ;;  %vm777_vm3 = vcmp.ge.f32.partialorder %v6203_v29, 0.0 }
  0xf4   : > { %v939_v34 = vmul.f32 0.3275911, %v885_v32  ;;  %v886_v35 = vand.u32 2147483647, %v6210_v33  ;;  %v1641_v12 = vmul.f32 %v885_v32, %v885_v32  ;;  %vm778_vm4 = vcmp.ge.f32.partialorder %v6210_v33, 0.0 }
  0xf5   : > { %v462_v36 = vpop.f32.mrb[4].mxu0 }
  0xf6   : > { %v993_v37 = vadd.f32 1.0, %v939_v34  ;;  %v940_v38 = vmul.f32 0.3275911, %v886_v35  ;;  %v5044_v39 = vpop.f32.mrb[5].mxu0  ;;  %v6214_v40 = vadd.f32 %v6197_v25, %v462_v36  ;;  %v1695_v20 = vsub.f32 0.0, %v1641_v12 }
  0xf7   : > { %v465_v41 = vpop.f32.mrb[6].mxu0  ;;  %v1642_v26 = vmul.f32 %v886_v35, %v886_v35  ;;  %v6279_v36 = vmul.f32 0.5, %v6200_v27  ;;  %v8733_v35 = vmov -1.0  }
  0xf8   : > { %5763 = vrcp.f32 %v993_v37  ;;  %v994_v42 = vadd.f32 1.0, %v940_v38  ;;  %v5045_v43 = vpop.f32.mrb[7].mxu0  ;;  %v6217_v44 = vmul.f32 0.70710677, %v6214_v40  ;;  %v6220_v45 = vadd.f32 %v6197_v25, %v465_v41 }
  0xf9   : > { %v6288_v41 = vsel %vm777_vm3, 1.0, %v8733_v35  ;;  %v1749_v33 = vmul.f32 1.442695, %v1695_v20 }
  0xfa   : > { %5765 = vrcp.f32 %v994_v42  ;;  %v6223_v46 = vand.u32 2147483647, %v6217_v44  ;;  %v6226_v47 = vmul.f32 0.70710677, %v6220_v45  ;;  %v6291_v42 = vmul.f32 0.5, %v6206_v30 }
  0xfb   : > { %v6304_v30 = vmul.f32 0.5, %v6214_v40  ;;  %vm779_vm5 = vcmp.ge.f32.partialorder %v6217_v44, 0.0 }
  0xfc   : > { %v941_v48 = vmul.f32 0.3275911, %v6223_v46  ;;  %v6230_v50 = vand.u32 2147483647, %v6226_v47  ;;  %vm780_vm6 = vcmp.ge.f32.partialorder %v6226_v47, 0.0 }
  0xfd   : > { %v470_v49 = vpop.f32.mrb[8].mxu0 }
  0xfe   : > { %v6233_v51 = vadd.f32 %v6197_v25, %v470_v49  ;;  %v5048_v52 = vpop.f32.mrb[9].mxu0  ;;  %v995_v53 = vadd.f32 1.0, %v941_v48  ;;  %v942_v55 = vmul.f32 0.3275911, %v6230_v50  ;;  %v6300_v49 = vsel %vm778_vm4, 1.0, %v8733_v35 }
  0xff   : > { %v473_v54 = vpop.f32.mrb[10].mxu0  ;;  %v1696_v52 = vsub.f32 0.0, %v1642_v26  ;;  %v1644_v40 = vmul.f32 %v6230_v50, %v6230_v50 }
 0x100   : > { %v6237_v56 = vmul.f32 0.70710677, %v6233_v51  ;;  %v5049_v57 = vpop.f32.mrb[11].mxu0  ;;  %5767 = vrcp.f32 %v995_v53  ;;  %v6240_v58 = vadd.f32 %v6197_v25, %v473_v54  ;;  %v996_v60 = vadd.f32 1.0, %v942_v55 }
 0x102   : > { %v6242_v59 = vpop.eup %5763  ;;  %v6245_v61 = vand.u32 2147483647, %v6237_v56  ;;  %5769 = vrcp.f32 %v996_v60  ;;  %v6252_v2 = vmul.f32 0.70710677, %v6240_v58  ;;  %vm781_vm7 = vcmp.ge.f32.partialorder %v6237_v56, 0.0 }
 0x103   : > { %v1155_v62 = vmul.f32 1.0614054, %v6242_v59 }
 0x104   : > { %v943_v63 = vmul.f32 0.3275911, %v6245_v61  ;;  %v6249_v0 = vpop.eup %5765  ;;  %v890_v8 = vand.u32 2147483647, %v6252_v2  ;;  %vm782_vm8 = vcmp.ge.f32.partialorder %v6252_v2, 0.0 }
 0x105   : > { %v478_v3 = vpop.f32.mrb[12].mxu0  ;;  %v1209_v4 = vadd.f32 -1.4531521, %v1155_v62  ;;  %v1156_v7 = vmul.f32 1.0614054, %v6249_v0  ;;  %v1643_v62 = vmul.f32 %v6223_v46, %v6223_v46 }
 0x106   : > { %v997_v5 = vadd.f32 1.0, %v943_v63  ;;  %v5052_v6 = vpop.f32.mrb[13].mxu0  ;;  %v6257_v9 = vadd.f32 %v6197_v25, %v478_v3  ;;  %v944_v13 = vmul.f32 0.3275911, %v890_v8  ;;  %v1646_v44 = vmul.f32 %v890_v8, %v890_v8 }
 0x107   : > { %v481_v10 = vpop.f32.mrb[14].mxu0  ;;  %v1263_v14 = vmul.f32 %v6242_v59, %v1209_v4  ;;  %v1210_v17 = vadd.f32 -1.4531521, %v1156_v7  ;;  %v6311_v6 = vmul.f32 0.5, %v6220_v45 }
 0x108   : > { %5771 = vrcp.f32 %v997_v5  ;;  %v5053_v11 = vpop.f32.mrb[15].mxu0  ;;  %v6261_v15 = vmul.f32 0.70710677, %v6257_v9  ;;  %v998_v18 = vadd.f32 1.0, %v944_v13  ;;  %v6268_v21 = vadd.f32 %v6197_v25, %v481_v10 }
 0x109   : > { %v1317_v24 = vadd.f32 1.4214138, %v1263_v14  ;;  %v1264_v31 = vmul.f32 %v6249_v0, %v1210_v17  ;;  %v1751_v5 = vmul.f32 1.442695, %v1696_v52  ;;  %v6322_v14 = vsel %vm779_vm5, 1.0, %v8733_v35 }
 0x10a   : > { %v6263_v16 = vpop.eup %5767  ;;  %5773 = vrcp.f32 %v998_v18  ;;  %v6273_v28 = vand.u32 2147483647, %v6261_v15  ;;  %v6294_v43 = vmul.f32 0.70710677, %v6268_v21  ;;  %v1697_v17 = vsub.f32 0.0, %v1643_v62 }
 0x10b   : > { %v1157_v19 = vmul.f32 1.0614054, %v6263_v16  ;;  %v1371_v48 = vmul.f32 %v6242_v59, %v1317_v24  ;;  %v1318_v29 = vadd.f32 1.4214138, %v1264_v31  ;;  %v1645_v31 = vmul.f32 %v6245_v61, %v6245_v61 }
 0x10c   : > { %v6270_v23 = vpop.eup %5769  ;;  %v945_v38 = vmul.f32 0.3275911, %v6273_v28  ;;  %v892_v3 = vand.u32 2147483647, %v6294_v43  ;;  %vm783_vm9 = vcmp.ge.f32.partialorder %v6261_v15, 0.0  ;;  %vm784_vm10 = vcmp.ge.f32.partialorder %v6294_v43, 0.0 }
 0x10d   : > { %v486_v22 = vpop.f32.mrb[16].mxu0  ;;  %v1211_v1 = vadd.f32 -1.4531521, %v1157_v19  ;;  %v1158_v32 = vmul.f32 1.0614054, %v6270_v23  ;;  %v1372_v46 = vmul.f32 %v6249_v0, %v1318_v29 }
 0x10e   : > { %v5056_v34 = vpop.f32.mrb[17].mxu0  ;;  %v999_v53 = vadd.f32 1.0, %v945_v38  ;;  %v1425_v4 = vadd.f32 -0.28449672, %v1371_v48  ;;  %v946_v12 = vmul.f32 0.3275911, %v892_v3  ;;  %v6331_v24 = vadd.f32 %v6197_v25, %v486_v22 }
 0x10f   : > { %v1265_v37 = vmul.f32 %v6263_v16, %v1211_v1  ;;  %v6283_v39 = vpop.f32.mrb[18].mxu0  ;;  %v1212_v55 = vadd.f32 -1.4531521, %v1158_v32  ;;  %v1698_v1 = vsub.f32 0.0, %v1644_v40  ;;  %v1426_v34 = vadd.f32 -0.28449672, %v1372_v46 }
 0x110   : > { %v5057_v54 = vpop.f32.mrb[19].mxu0  ;;  %5775 = vrcp.f32 %v999_v53  ;;  %v1000_v20 = vadd.f32 1.0, %v946_v12  ;;  %v1479_v26 = vmul.f32 %v6242_v59, %v1425_v4  ;;  %v1700_v38 = vsub.f32 0.0, %v1646_v44 }
 0x111   : > { %v1319_v60 = vadd.f32 1.4214138, %v1265_v37  ;;  %5777 = vpow2.f32 %v1749_v33  ;;  %v1266_v11 = vmul.f32 %v6270_v23, %v1212_v55  ;;  %v1753_v48 = vmul.f32 1.442695, %v1697_v17 }
 0x112   : > { %v6296_v27 = vpop.eup %5771  ;;  %5779 = vrcp.f32 %v1000_v20  ;;  %v1647_v22 = vmul.f32 %v6273_v28, %v6273_v28  ;;  %v6342_v53 = vsel %vm780_vm6, 1.0, %v8733_v35  ;;  %v6345_v61 = vmul.f32 0.70710677, %v6331_v24 }
 0x113   : > { %v1159_v57 = vmul.f32 1.0614054, %v6296_v27  ;;  %v1373_v45 = vmul.f32 %v6263_v16, %v1319_v60  ;;  %v1320_v37 = vadd.f32 1.4214138, %v1266_v11  ;;  %5781 = vpow2.f32 %v1751_v5 }
 0x114   : > { %v6317_v10 = vpop.eup %5773  ;;  %v1699_v60 = vsub.f32 0.0, %v1645_v31  ;;  %v1480_v28 = vmul.f32 %v6249_v0, %v1426_v34  ;;  %v1755_v40 = vmul.f32 1.442695, %v1698_v1  ;;  %v1759_v46 = vmul.f32 1.442695, %v1700_v38 }
 0x115   : > { %v1213_v63 = vadd.f32 -1.4531521, %v1159_v57  ;;  %v6315_v7 = vpop.f32.mrb[20].mxu0  ;;  %v1160_v18 = vmul.f32 1.0614054, %v6317_v10  ;;  %v1374_v47 = vmul.f32 %v6270_v23, %v1320_v37  ;;  %5783 = vpow2.f32 %v1753_v48 }
 0x116   : > { %v5060_v13 = vpop.f32.mrb[21].mxu0  ;;  %v1427_v33 = vadd.f32 -0.28449672, %v1373_v45  ;;  %v1533_v57 = vadd.f32 0.2548296, %v1479_v26  ;;  %v1701_v45 = vsub.f32 0.0, %v1647_v22  ;;  %5785 = vpow2.f32 %v1755_v40 }
 0x117   : > { %v6326_v50 = vpop.f32.mrb[22].mxu0  ;;  %v1267_v19 = vmul.f32 %v6296_v27, %v1213_v63  ;;  %v1214_v32 = vadd.f32 -1.4531521, %v1160_v18  ;;  %v1648_v18 = vmul.f32 %v892_v3, %v892_v3  ;;  %v1757_v26 = vmul.f32 1.442695, %v1699_v60 }
 0x118   : > { %v5061_v8 = vpop.f32.mrb[23].mxu0  ;;  %v1481_v44 = vmul.f32 %v6263_v16, %v1427_v33  ;;  %v1587_v20 = vmul.f32 %v6242_v59, %v1533_v57  ;;  %v1428_v31 = vadd.f32 -0.28449672, %v1374_v47  ;;  %v1534_v37 = vadd.f32 0.2548296, %v1480_v28 }
 0x119   : > { %v1268_v52 = vmul.f32 %v6317_v10, %v1214_v32  ;;  %v1321_v54 = vadd.f32 1.4214138, %v1267_v19  ;;  %v6360_v19 = vand.u32 2147483647, %v6345_v61  ;;  %v6364_v8 = vmul.f32 0.5, %v6233_v51 }
 0x11a   : > { %v6349_v55 = vpop.eup %5775  ;;  %v1535_v38 = vadd.f32 0.2548296, %v1481_v44  ;;  %5787 = vpow2.f32 %v1759_v46  ;;  %v1761_v33 = vmul.f32 1.442695, %v1701_v45  ;;  %v1702_v59 = vsub.f32 0.0, %v1648_v18 }
 0x11b   : > { %v1322_v62 = vadd.f32 1.4214138, %v1268_v52  ;;  %v5778_v4 = vpop.eup %5777  ;;  %v1161_v13 = vmul.f32 1.0614054, %v6349_v55  ;;  %v1375_v17 = vmul.f32 %v6296_v27, %v1321_v54  ;;  %v947_v34 = vmul.f32 0.3275911, %v6360_v19 }
 0x11c   : > { %v6367_v3 = vpop.eup %5779  ;;  %v1857_v54 = vmul.f32 %v5778_v4, %v1587_v20  ;;  %v1482_v28 = vmul.f32 %v6270_v23, %v1428_v31  ;;  %v1588_v4 = vmul.f32 %v6249_v0, %v1534_v37  ;;  %v1589_v44 = vmul.f32 %v6263_v16, %v1535_v38 }
 0x11d   : > { %v6347_v29 = vpop.f32.mrb[24].mxu0  ;;  %v1376_v12 = vmul.f32 %v6317_v10, %v1322_v62  ;;  %v1215_v32 = vadd.f32 -1.4531521, %v1161_v13  ;;  %v1429_v48 = vadd.f32 -0.28449672, %v1375_v17  ;;  %v1001_v22 = vadd.f32 1.0, %v947_v34  ;;  %v5782_v46 = vpop.eup %5781 }
 0x11e   : > { %v5064_v63 = vpop.f32.mrb[25].mxu0  ;;  %v1162_v60 = vmul.f32 1.0614054, %v6367_v3  ;;  %v6376_v62 = vadd.f32 %v6197_v25, %v6283_v39  ;;  %v1911_v17 = vsub.f32 1.0, %v1857_v54  ;;  %v1536_v0 = vadd.f32 0.2548296, %v1482_v28 }
 0x11f   : > { %v6353_v11 = vpop.f32.mrb[26].mxu0  ;;  %v1430_v1 = vadd.f32 -0.28449672, %v1376_v12  ;;  %v1269_v52 = vmul.f32 %v6349_v55, %v1215_v32  ;;  %5789 = vrcp.f32 %v1001_v22  ;;  %v1483_v39 = vmul.f32 %v6296_v27, %v1429_v48  ;;  %v5784_v31 = vpop.eup %5783 }
 0x120   : > { %v5065_v5 = vpop.f32.mrb[27].mxu0  ;;  %5791 = vpow2.f32 %v1761_v33  ;;  %v1216_v12 = vadd.f32 -1.4531521, %v1162_v60  ;;  %v6393_v16 = vsel %vm781_vm7, 1.0, %v8733_v35  ;;  %v1858_v32 = vmul.f32 %v5782_v46, %v1588_v4  ;;  %v5786_v33 = vpop.eup %5785 }
 0x121   : > { %v1484_v57 = vmul.f32 %v6317_v10, %v1430_v1  ;;  %v1323_v47 = vadd.f32 1.4214138, %v1269_v52  ;;  %5793 = vpow2.f32 %v1757_v26  ;;  %v1763_v5 = vmul.f32 1.442695, %v1702_v59 }
 0x122   : > { %v1270_v20 = vmul.f32 %v6367_v3, %v1216_v12  ;;  %v6388_v1 = vmul.f32 0.70710677, %v6376_v62  ;;  %v1859_v34 = vmul.f32 %v5784_v31, %v1589_v44  ;;  %v6397_v37 = vmul.f32 0.5, %v6240_v58 }
 0x123   : > { %v1377_v45 = vmul.f32 %v6349_v55, %v1323_v47  ;;  %v1538_v18 = vadd.f32 0.2548296, %v1484_v57  ;;  %v1537_v48 = vadd.f32 0.2548296, %v1483_v39  ;;  %5795 = vpow2.f32 %v1763_v5 }
 0x124   : > { %v1324_v38 = vadd.f32 1.4214138, %v1270_v20  ;;  %v6401_v59 = vand.u32 2147483647, %v6388_v1  ;;  %v5788_v22 = vpop.eup %5787  ;;  %v1965_v2 = vmul.f32 %v1911_v17, %v6288_v41  ;;  %v836_v54 = vsel %vm782_vm8, 1.0, %v8733_v35 }
 0x125   : > { %v6370_v51 = vpop.f32.mrb[28].mxu0  ;;  %v1431_v26 = vadd.f32 -0.28449672, %v1377_v45  ;;  %v1592_v57 = vmul.f32 %v6317_v10, %v1538_v18  ;;  %v6413_v46 = vadd.f32 %v6197_v25, %v6315_v7  ;;  %v1912_v4 = vsub.f32 1.0, %v1858_v32 }
 0x126   : > { %v5068_v63 = vpop.f32.mrb[29].mxu0  ;;  %v1378_v58 = vmul.f32 %v6367_v3, %v1324_v38  ;;  %v948_v47 = vmul.f32 0.3275911, %v6401_v59  ;;  %v1913_v44 = vsub.f32 1.0, %v1859_v34  ;;  %v2019_v7 = vadd.f32 1.0, %v1965_v2 }
 0x127   : > { %v6380_v40 = vpop.f32.mrb[30].mxu0  ;;  %v1485_v52 = vmul.f32 %v6349_v55, %v1431_v26  ;;  %v1590_v63 = vmul.f32 %v6270_v23, %v1536_v0  ;;  %v1862_v17 = vmul.f32 %v5788_v22, %v1592_v57  ;;  %v6426_v32 = vmul.f32 0.70710677, %v6413_v46 }
 0x128   : > { %v5069_v13 = vpop.f32.mrb[31].mxu0  ;;  %v1432_v41 = vadd.f32 -0.28449672, %v1378_v58  ;;  %v1002_v39 = vadd.f32 1.0, %v948_v47  ;;  %v6435_v2 = vadd.f32 %v6197_v25, %v6326_v50  ;;  %v675_v57 = vmul.f32 0.5, %v6257_v9 }
 0x129   : > { %v1539_v28 = vadd.f32 0.2548296, %v1485_v52  ;;  %v6418_v10 = vpop.eup %5789  ;;  %v1591_v13 = vmul.f32 %v6296_v27, %v1537_v48  ;;  %v1860_v0 = vmul.f32 %v5786_v33, %v1590_v63  ;;  %v1966_v27 = vmul.f32 %v1912_v4, %v6300_v49 }
 0x12a   : > { %v5792_v5 = vpop.eup %5791  ;;  %v1486_v18 = vmul.f32 %v6367_v3, %v1432_v41  ;;  %v1163_v20 = vmul.f32 1.0614054, %v6418_v10  ;;  %5797 = vrcp.f32 %v1002_v39  ;;  %v6431_v22 = vand.u32 2147483647, %v6426_v32 }
 0x12b   : > { %v1593_v23 = vmul.f32 %v6349_v55, %v1539_v28  ;;  %v5794_v31 = vpop.eup %5793  ;;  %v1967_v55 = vmul.f32 %v1913_v44, %v6322_v14  ;;  %v1916_v33 = vsub.f32 1.0, %v1862_v17  ;;  %v676_v58 = vmul.f32 0.5, %v6268_v21 }
 0x12c   : > { %v1540_v34 = vadd.f32 0.2548296, %v1486_v18  ;;  %v1217_v38 = vadd.f32 -1.4531521, %v1163_v20  ;;  %v1861_v48 = vmul.f32 %v5794_v31, %v1591_v13  ;;  %v1914_v63 = vsub.f32 1.0, %v1860_v0 }
 0x12d   : > { %v6403_v56 = vpop.f32.mrb[32].mxu0  ;;  %v1863_v26 = vmul.f32 %v5792_v5, %v1593_v23  ;;  %v5796_v14 = vpop.eup %5795  ;;  %v837_v28 = vsel %vm783_vm9, 1.0, %v8733_v35  ;;  %v838_v50 = vsel %vm784_vm10, 1.0, %v8733_v35  ;;  %v6450_v9 = vmul.f32 %v2019_v7, %v6279_v36 }
 0x12e   : > { %v5072_v60 = vpop.f32.mrb[33].mxu0  ;;  %v1594_v49 = vmul.f32 %v6367_v3, %v1540_v34  ;;  %v1271_v47 = vmul.f32 %v6418_v10, %v1217_v38  ;;  %v949_v44 = vmul.f32 0.3275911, %v6431_v22  ;;  %v2020_v13 = vadd.f32 1.0, %v1966_v27 }
 0x12f   : > { %v6416_v12 = vpop.f32.mrb[34].mxu0  ;;  %v1917_v52 = vsub.f32 1.0, %v1863_v26  ;;  %8797 = vst [vmem:[#allocation2_spill] sm:$0xff] %v6450_v9  ;;  %v2021_v23 = vadd.f32 1.0, %v1967_v55  ;;  %v1915_v15 = vsub.f32 1.0, %v1861_v48  ;;  %v1649_v17 = vmul.f32 %v6360_v19, %v6360_v19 }
 0x130   : > { %v5073_v45 = vpop.f32.mrb[35].mxu0  ;;  %v1864_v3 = vmul.f32 %v5796_v14, %v1594_v49  ;;  %v6456_v39 = vmul.f32 0.70710677, %v6435_v2  ;;  %v1003_v36 = vadd.f32 1.0, %v949_v44  ;;  %v1968_v7 = vmul.f32 %v1914_v63, %v6342_v53 }
 0x131   : > { %v1971_v21 = vmul.f32 %v1917_v52, %v837_v28  ;;  %v1970_v45 = vmul.f32 %v1916_v33, %v836_v54  ;;  %v1325_v18 = vadd.f32 1.4214138, %v1271_v47  ;;  %v6466_v31 = vadd.f32 %v6197_v25, %v6347_v29 }
 0x132   : > { %v1918_v5 = vsub.f32 1.0, %v1864_v3  ;;  %v6462_v20 = vand.u32 2147483647, %v6456_v39  ;;  %vm785_vm11 = vcmp.ge.f32.partialorder %v6345_v61, 0.0  ;;  %5799 = vrcp.f32 %v1003_v36 }
 0x133   : > { %v2025_v0 = vadd.f32 1.0, %v1971_v21  ;;  %v6472_v19 = vmul.f32 %v2020_v13, %v6291_v42  ;;  %v6475_v53 = vmul.f32 %v2021_v23, %v6304_v30  ;;  %v1969_v27 = vmul.f32 %v1915_v15, %v6393_v16 }
 0x134   : > { %v1972_v26 = vmul.f32 %v1918_v5, %v838_v50  ;;  %v6469_v54 = vpop.eup %5797  ;;  %v950_v55 = vmul.f32 0.3275911, %v6462_v20  ;;  %v2024_v34 = vadd.f32 1.0, %v1970_v45  ;;  %v1703_v38 = vsub.f32 0.0, %v1649_v17 }
 0x135   : > { %v6440_v60 = vpop.f32.mrb[36].mxu0  ;;  %8798 = vst [vmem:[#allocation3_spill] sm:$0xff] %v6472_v19  ;;  %8799 = vst [vmem:[#allocation4_spill] sm:$0xff] %v6475_v53  ;;  %v1164_v48 = vmul.f32 1.0614054, %v6469_v54  ;;  %v2022_v33 = vadd.f32 1.0, %v1968_v7  ;;  %v1379_v49 = vmul.f32 %v6418_v10, %v1325_v18  ;;  %v6486_v63 = vmul.f32 %v2025_v0, %v675_v57 }
 0x136   : > { %v5076_v4 = vpop.f32.mrb[37].mxu0  ;;  %v2026_v29 = vadd.f32 1.0, %v1972_v26  ;;  %v1004_v14 = vadd.f32 1.0, %v950_v55  ;;  %v6484_v42 = vmul.f32 0.70710677, %v6466_v31  ;;  %v6492_v50 = vadd.f32 %v6197_v25, %v6353_v11 }
 0x137   : > { %v6453_v41 = vpop.f32.mrb[38].mxu0  ;;  %8800 = vst [vmem:[#allocation5_spill] sm:$0xff] %v6486_v63  ;;  %v1218_v28 = vadd.f32 -1.4531521, %v1164_v48  ;;  %v2023_v4 = vadd.f32 1.0, %v1969_v27  ;;  %v1650_v21 = vmul.f32 %v6401_v59, %v6401_v59  ;;  %v6510_v13 = vmul.f32 0.5, %v6331_v24 }
 0x138   : > { %v5077_v43 = vpop.f32.mrb[39].mxu0  ;;  %v6488_v16 = vmul.f32 %v2026_v29, %v676_v58  ;;  %5801 = vrcp.f32 %v1004_v14  ;;  %v6499_v3 = vand.u32 2147483647, %v6484_v42  ;;  %v6503_v58 = vmul.f32 %v2024_v34, %v6397_v37 }
 0x139   : > { %v6515_v59 = vsel %vm785_vm11, 1.0, %v8733_v35  ;;  %v1433_v23 = vadd.f32 -0.28449672, %v1379_v49  ;;  %v1272_v15 = vmul.f32 %v6469_v54, %v1218_v28  ;;  %v1765_v5 = vmul.f32 1.442695, %v1703_v38 }
 0x13a   : > { %8801 = vst [vmem:[#allocation6_spill] sm:$0xff] %v6488_v16  ;;  %8802 = vst [vmem:[#allocation7_spill] sm:$0xff] %v6503_v58  ;;  %v6507_v11 = vpack.c.bf16 %v6488_v16, %v6486_v63  ;;  %v951_v43 = vmul.f32 0.3275911, %v6499_v3  ;;  %v6522_v17 = vmul.f32 0.70710677, %v6492_v50  ;;  %v6525_v24 = vmul.f32 %v2022_v33, %v6311_v6 }
 0x13b   : > { %v6528_v61 = vmul.f32 %v2023_v4, %v6364_v8  ;;  %v1704_v36 = vsub.f32 0.0, %v1650_v21  ;;  %v2204_v26 = vrot.slane %v6503_v58, 1  ;;  %v1326_v27 = vadd.f32 1.4214138, %v1272_v15 }
 0x13c   : > { %8803 = vst [vmem:[#allocation8_spill] sm:$0xff] %v6507_v11  ;;  %8804 = vst [vmem:[#allocation9_spill] sm:$0xff] %v6525_v24  ;;  %v1005_v7 = vadd.f32 1.0, %v951_v43  ;;  %v6532_v0 = vpop.eup %5799  ;;  %v6536_v55 = vand.u32 2147483647, %v6522_v17  ;;  %v1487_v29 = vmul.f32 %v6418_v10, %v1433_v23  ;;  %v6542_v8 = vadd.f32 %v6197_v25, %v6370_v51 }
 0x13d   : > { %v6480_v52 = vpop.f32.mrb[40].mxu0  ;;  %8805 = vst [vmem:[#allocation10_spill] sm:$0xff] %v6528_v61  ;;  %v1165_v6 = vmul.f32 1.0614054, %v6532_v0  ;;  %v1651_v48 = vmul.f32 %v6431_v22, %v6431_v22  ;;  %v6551_v49 = vadd.f32 %v6197_v25, %v6380_v40  ;;  %v2202_v28 = vrot.slane %v6528_v61, 1 }
 0x13e   : > { %v5080_v30 = vpop.f32.mrb[41].mxu0  ;;  %5803 = vrcp.f32 %v1005_v7  ;;  %v952_v33 = vmul.f32 0.3275911, %v6536_v55  ;;  %v6556_v51 = vmul.f32 0.5, %v6376_v62  ;;  %vm786_vm13 = vcmp.ge.f32.partialorder %v6388_v1, 0.0 }
 0x13f   : > { %v6494_v47 = vpop.f32.mrb[42].mxu0  ;;  %5805 = vpow2.f32 %v1765_v5  ;;  %v2201_v30 = vrot.slane %v6525_v24, 1  ;;  %v1219_v4 = vadd.f32 -1.4531521, %v1165_v6  ;;  %v1380_v21 = vmul.f32 %v6469_v54, %v1326_v27 }
 0x140   : > { %v5081_v44 = vpop.f32.mrb[43].mxu0  ;;  %v1767_v22 = vmul.f32 1.442695, %v1704_v36  ;;  %v2205_v40 = vsel %vm2195_vm12, %v2202_v28, %v2204_v26  ;;  %v1541_v15 = vadd.f32 0.2548296, %v1487_v29  ;;  %v1705_v7 = vsub.f32 0.0, %v1651_v48 }
 0x141   : > { %v1006_v44 = vadd.f32 1.0, %v952_v33  ;;  %v1273_v43 = vmul.f32 %v6532_v0, %v1219_v4  ;;  %v6565_v5 = vmul.f32 0.70710677, %v6542_v8  ;;  %v6569_v1 = vmul.f32 0.70710677, %v6551_v49 }
 0x142   : > { %v6560_v23 = vpop.eup %5801  ;;  %v6572_v36 = vsel %vm786_vm13, 1.0, %v8733_v35  ;;  %v6575_v27 = vmul.f32 0.5, %v6413_v46  ;;  %vm787_vm14 = vcmp.ge.f32.partialorder %v6426_v32, 0.0  ;;  %v6579_v26 = vmul.f32 0.5, %v6435_v2 }
 0x143   : > { %v1166_v62 = vmul.f32 1.0614054, %v6560_v23  ;;  %5807 = vrcp.f32 %v1006_v44  ;;  %v1434_v29 = vadd.f32 -0.28449672, %v1380_v21  ;;  %vm788_vm15 = vcmp.ge.f32.partialorder %v6456_v39, 0.0 }
 0x144   : > { %v1327_v4 = vadd.f32 1.4214138, %v1273_v43  ;;  %v6589_v46 = vand.u32 2147483647, %v6565_v5  ;;  %5809 = vpow2.f32 %v1767_v22  ;;  %v1769_v2 = vmul.f32 1.442695, %v1705_v7 }
 0x145   : > { %v6530_v18 = vpop.f32.mrb[44].mxu0  ;;  %v1220_v6 = vadd.f32 -1.4531521, %v1166_v62  ;;  %v6607_v22 = vsel %vm788_vm15, 1.0, %v8733_v35  ;;  %v1488_v62 = vmul.f32 %v6469_v54, %v1434_v29  ;;  %v6619_v11 = vmul.f32 0.5, %v6466_v31 }
 0x146   : > { %v5084_v34 = vpop.f32.mrb[45].mxu0  ;;  %v1381_v39 = vmul.f32 %v6532_v0, %v1327_v4  ;;  %5811 = vpow2.f32 %v1769_v2  ;;  %vm789_vm1 = vcmp.ge.f32.partialorder %v6484_v42, 0.0  ;;  %v1653_v2 = vmul.f32 %v6499_v3, %v6499_v3 }
 0x147   : > { %v6544_v38 = vpop.f32.mrb[46].mxu0  ;;  %v2203_v34 = vsel %vm2195_vm12, %v2201_v30, %v2202_v28  ;;  %v1274_v45 = vmul.f32 %v6560_v23, %v1220_v6  ;;  %v6593_v30 = vand.u32 2147483647, %v6569_v1  ;;  %v8810_v3 = vrot.slane %v6475_v53, 1 }
 0x148   : > { %v5085_v14 = vpop.f32.mrb[47].mxu0  ;;  %v6585_v33 = vpack.c.bf16 %v2205_v40, %v2203_v34  ;;  %v6597_v21 = vpop.eup %5803  ;;  %v1652_v40 = vmul.f32 %v6462_v20, %v6462_v20  ;;  %vm790_vm2 = vcmp.ge.f32.partialorder %v6522_v17, 0.0  ;;  %vm791_vm3 = vcmp.ge.f32.partialorder %v6565_v5, 0.0 }
 0x149   : > { %v1595_v14 = vmul.f32 %v6418_v10, %v1541_v15  ;;  %v6602_v10 = vsel %vm787_vm14, 1.0, %v8733_v35  ;;  %v953_v15 = vmul.f32 0.3275911, %v6589_v46  ;;  %v5806_v7 = vpop.eup %5805  ;;  %v1328_v34 = vadd.f32 1.4214138, %v1274_v45 }
 0x14a   : > { %8806 = vst [vmem:[#allocation11_spill] sm:$0xff] %v6585_v33  ;;  %v1167_v6 = vmul.f32 1.0614054, %v6597_v21  ;;  %v954_v32 = vmul.f32 0.3275911, %v6593_v30  ;;  %vm792_vm4 = vcmp.ge.f32.partialorder %v6569_v1, 0.0 }
 0x14b   : > { %v1865_v57 = vmul.f32 %v5806_v7, %v1595_v14  ;;  %v1007_v35 = vadd.f32 1.0, %v953_v15  ;;  %v1382_v20 = vmul.f32 %v6560_v23, %v1328_v34  ;;  %v1542_v14 = vadd.f32 0.2548296, %v1488_v62 }
 0x14c   : > { %v1221_v37 = vadd.f32 -1.4531521, %v1167_v6  ;;  %v1008_v58 = vadd.f32 1.0, %v954_v32  ;;  %v1654_v34 = vmul.f32 %v6536_v55, %v6536_v55  ;;  %v8808_v62 = vrot.slane %v6472_v19, 1 }
 0x14d   : > { %v6583_v48 = vpop.f32.mrb[48].mxu0  ;;  %5813 = vrcp.f32 %v1007_v35  ;;  %v6624_v29 = vpop.eup %5807  ;;  %v1919_v7 = vsub.f32 1.0, %v1865_v57  ;;  %v1436_v6 = vadd.f32 -0.28449672, %v1382_v20  ;;  %v6645_v55 = vmul.f32 0.5, %v6492_v50 }
 0x14e   : > { %v5088_v44 = vpop.f32.mrb[49].mxu0  ;;  %v1275_v4 = vmul.f32 %v6597_v21, %v1221_v37  ;;  %5815 = vrcp.f32 %v1008_v58  ;;  %v1168_v31 = vmul.f32 1.0614054, %v6624_v29  ;;  %v8809_v37 = vrot.slane %v6450_v9, 1 }
 0x14f   : > { %v6595_v28 = vpop.f32.mrb[50].mxu0  ;;  %v8811_v57 = vmov %v8808_v62  ;;  %v1596_v24 = vmul.f32 %v6469_v54, %v1542_v14  ;;  %v1708_v50 = vsub.f32 0.0, %v1654_v34  ;;  %v1973_v54 = vmul.f32 %v1919_v7, %v6515_v59 }
 0x150   : > { %v5089_v43 = vpop.f32.mrb[51].mxu0  ;;  %v1329_v32 = vadd.f32 1.4214138, %v1275_v4  ;;  %v2198_v44 = vsel %vm2195_vm12, %v8809_v37, %v8808_v62  ;;  %v2200_v58 = vsel %vm2195_vm12, %v8811_v57, %v8810_v3  ;;  %v1222_v61 = vadd.f32 -1.4531521, %v1168_v31  ;;  %v5810_v4 = vpop.eup %5809 }
 0x151   : > { %v1706_v43 = vsub.f32 0.0, %v1652_v40  ;;  %v1435_v40 = vadd.f32 -0.28449672, %v1381_v39  ;;  %v2308_v20 = vpack.c.bf16 %v2200_v58, %v2198_v44  ;;  %v6651_v62 = vadd.f32 %v6197_v25, %v6403_v56 }
 0x152   : > { %v1383_v9 = vmul.f32 %v6597_v21, %v1329_v32  ;;  %v1490_v14 = vmul.f32 %v6560_v23, %v1436_v6  ;;  %v8812_v56 = vmov -1.0   ;;  %v5812_v32 = vpop.eup %5811  ;;  %v1866_v59 = vmul.f32 %v5810_v4, %v1596_v24 }
 0x153   : > { %v1489_v37 = vmul.f32 %v6532_v0, %v1435_v40  ;;  %5150 = vmatprep.mubr.msk.bf16.mxu0 %vm2341_vm0, %v2308_v20  ;;  %v6675_v6 = vsel %vm790_vm2, 1.0, %v8812_v56  ;;  %v2027_v17 = vadd.f32 1.0, %v1973_v54 }
 0x154   : > { %5151 = vmatmul.mubr.msk.bf16.vlgmr.msra.gmra.mrb[108].mxu0 %vm2341_vm0, %v6585_v33  ;;  %v1437_v40 = vadd.f32 -0.28449672, %v1383_v9  ;;  %v1544_v20 = vadd.f32 0.2548296, %v1490_v14  ;;  %v1655_v33 = vmul.f32 %v6589_v46, %v6589_v46  ;;  %v1656_v14 = vmul.f32 %v6593_v30, %v6593_v30 }
 0x155   : > { %v6622_v45 = vpop.f32.mrb[52].mxu0  ;;  %v1543_v42 = vadd.f32 0.2548296, %v1489_v37  ;;  %v6707_v46 = vmul.f32 0.5, %v6542_v8  ;;  %v6719_v8 = vmul.f32 %v2027_v17, %v6510_v13  ;;  %v6731_v13 = vadd.f32 %v6197_v25, %v6440_v60 }
 0x156   : > { %v5092_v15 = vpop.f32.mrb[53].mxu0  ;;  %v1709_v19 = vsub.f32 0.0, %v1655_v33 }
 0x157   : > { %v6632_v35 = vpop.f32.mrb[54].mxu0  ;;  %v1771_v15 = vmul.f32 1.442695, %v1706_v43  ;;  %v1276_v43 = vmul.f32 %v6624_v29, %v1222_v61  ;;  %v6668_v61 = vsel %vm789_vm1, 1.0, %v8812_v56  ;;  %v6680_v58 = vpop.eup %5813  ;;  %v1597_v53 = vmul.f32 %v6532_v0, %v1543_v42  ;;  %8814 = vst [vmem:[#allocation14_spill] sm:$0xff] %v6719_v8 }
 0x158   : > { %8807 = vst [vmem:[#allocation12_spill] sm:$0xff] %v6632_v35  ;;  %v5093_v39 = vpop.f32.mrb[55].mxu0  ;;  %v1707_v35 = vsub.f32 0.0, %v1653_v2  ;;  %v6661_v2 = vmul.f32 0.70710677, %v6651_v62 }
 0x159   : > { %5817 = vpow2.f32 %v1771_v15  ;;  %v1330_v31 = vadd.f32 1.4214138, %v1276_v43  ;;  %v1775_v39 = vmul.f32 1.442695, %v1708_v50  ;;  %v6685_v15 = vadd.f32 %v6197_v25, %v6416_v12  ;;  %v6743_v25 = vld [vmem:[%s8729_s2] ss:$0 sm:$0xff] }
 0x15a   : > { %v1773_v7 = vmul.f32 1.442695, %v1707_v35  ;;  %v6678_v3 = vand.u32 2147483647, %v6661_v2  ;;  %v6689_v35 = vpop.eup %5815  ;;  %v1169_v4 = vmul.f32 1.0614054, %v6680_v58  ;;  %v6747_v60 = vadd.f32 %v6743_v25, %v6453_v41 }
 0x15b   : > { %v1384_v9 = vmul.f32 %v6624_v29, %v1330_v31  ;;  %v1170_v37 = vmul.f32 1.0614054, %v6689_v35  ;;  %v1920_v31 = vsub.f32 1.0, %v1866_v59  ;;  %v6764_v41 = vsel %vm792_vm4, 1.0, %v8812_v56 }
 0x15c   : > { %v955_v50 = vmul.f32 0.3275911, %v6678_v3  ;;  %5819 = vpow2.f32 %v1773_v7  ;;  %v1223_v12 = vadd.f32 -1.4531521, %v1169_v4  ;;  %vm793_vm5 = vcmp.ge.f32.partialorder %v6661_v2, 0.0 }
 0x15d   : > { %v6670_v34 = vpop.f32.mrb[56].mxu0  ;;  %v1438_v44 = vadd.f32 -0.28449672, %v1384_v9  ;;  %v1224_v54 = vadd.f32 -1.4531521, %v1170_v37  ;;  %5821 = vpow2.f32 %v1775_v39  ;;  %v1974_v30 = vmul.f32 %v1920_v31, %v6572_v36 }
 0x15e   : > { %v5096_v57 = vpop.f32.mrb[57].mxu0  ;;  %v1277_v59 = vmul.f32 %v6680_v58, %v1223_v12  ;;  %v1009_v7 = vadd.f32 1.0, %v955_v50  ;;  %v1710_v12 = vsub.f32 0.0, %v1656_v14  ;;  %v6722_v36 = vmul.f32 0.5, %v6551_v49 }
 0x15f   : > { %v6687_v24 = vpop.f32.mrb[58].mxu0  ;;  %v1491_v57 = vmul.f32 %v6597_v21, %v1437_v40  ;;  %v1598_v40 = vmul.f32 %v6560_v23, %v1544_v20  ;;  %v1492_v9 = vmul.f32 %v6624_v29, %v1438_v44  ;;  %v1278_v0 = vmul.f32 %v6689_v35, %v1224_v54 }
 0x160   : > { %8813 = vst [vmem:[#allocation13_spill] sm:$0xff] %v6687_v24  ;;  %v5097_v43 = vpop.f32.mrb[59].mxu0  ;;  %v1331_v37 = vadd.f32 1.4214138, %v1277_v59  ;;  %5823 = vrcp.f32 %v1009_v7  ;;  %v1867_v44 = vmul.f32 %v5812_v32, %v1597_v53  ;;  %v2028_v14 = vadd.f32 1.0, %v1974_v30 }
 0x161   : > { %v6701_v43 = vmul.f32 0.70710677, %v6685_v15  ;;  %v1545_v4 = vadd.f32 0.2548296, %v1491_v57  ;;  %v1332_v24 = vadd.f32 1.4214138, %v1278_v0  ;;  %v1657_v0 = vmul.f32 %v6678_v3, %v6678_v3 }
 0x162   : > { %v1546_v54 = vadd.f32 0.2548296, %v1492_v9  ;;  %v1385_v53 = vmul.f32 %v6680_v58, %v1331_v37  ;;  %v1777_v59 = vmul.f32 1.442695, %v1709_v19  ;;  %v1921_v17 = vsub.f32 1.0, %v1867_v44 }
 0x163   : > { %v5818_v20 = vpop.eup %5817  ;;  %v6714_v57 = vand.u32 2147483647, %v6701_v43  ;;  %v1599_v31 = vmul.f32 %v6597_v21, %v1545_v4  ;;  %v1386_v7 = vmul.f32 %v6689_v35, %v1332_v24  ;;  %v1779_v49 = vmul.f32 1.442695, %v1710_v12 }
 0x164   : > { %v1868_v50 = vmul.f32 %v5818_v20, %v1598_v40  ;;  %v1600_v4 = vmul.f32 %v6624_v29, %v1546_v54  ;;  %v6738_v19 = vmul.f32 0.70710677, %v6731_v13  ;;  %v1439_v30 = vadd.f32 -0.28449672, %v1385_v53 }
 0x165   : > { %v6710_v42 = vpop.f32.mrb[60].mxu0  ;;  %v956_v32 = vmul.f32 0.3275911, %v6714_v57  ;;  %v6753_v3 = vmul.f32 %v2028_v14, %v6556_v51  ;;  %v1975_v12 = vmul.f32 %v1921_v17, %v6602_v10  ;;  %v1711_v53 = vsub.f32 0.0, %v1657_v0 }
 0x166   : > { %v5100_v23 = vpop.f32.mrb[61].mxu0  ;;  %v5820_v21 = vpop.eup %5819  ;;  %v1922_v9 = vsub.f32 1.0, %v1868_v50  ;;  %v6759_v50 = vsel %vm791_vm3, 1.0, %v8812_v56  ;;  %v6772_v10 = vand.u32 2147483647, %v6738_v19  ;;  %v1493_v14 = vmul.f32 %v6680_v58, %v1439_v30 }
 0x167   : > { %v6716_v39 = vpop.f32.mrb[62].mxu0  ;;  %v1010_v40 = vadd.f32 1.0, %v956_v32  ;;  %v1869_v24 = vmul.f32 %v5820_v21, %v1599_v31  ;;  %v1440_v23 = vadd.f32 -0.28449672, %v1386_v7  ;;  %v5822_v44 = vpop.eup %5821  ;;  %v6787_v21 = vmul.f32 0.5, %v6651_v62 }
 0x168   : > { %v5101_v33 = vpop.f32.mrb[63].mxu0  ;;  %v1870_v31 = vmul.f32 %v5822_v44, %v1600_v4  ;;  %v6798_v62 = vmul.f32 0.5, %v6685_v15  ;;  %vm794_vm6 = vcmp.ge.f32.partialorder %v6701_v43, 0.0  ;;  %vm795_vm7 = vcmp.ge.f32.partialorder %v6738_v19, 0.0 }
 0x169   : > { %5825 = vrcp.f32 %v1010_v40  ;;  %v1976_v33 = vmul.f32 %v1922_v9, %v6607_v22  ;;  %v1923_v32 = vsub.f32 1.0, %v1869_v24  ;;  %v1494_v17 = vmul.f32 %v6689_v35, %v1440_v23 }
 0x16a   : > { %5827 = vpow2.f32 %v1777_v59  ;;  %v6768_v51 = vpop.eup %5823  ;;  %v6777_v59 = vmul.f32 0.70710677, %v6747_v60  ;;  %v957_v22 = vmul.f32 0.3275911, %v6772_v10  ;;  %v2029_v40 = vadd.f32 1.0, %v1975_v12 }
 0x16b   : > { %5829 = vpow2.f32 %v1779_v49  ;;  %v1171_v1 = vmul.f32 1.0614054, %v6768_v51  ;;  %v6784_v49 = vadd.f32 %v6743_v25, %v6480_v52  ;;  %v2030_v4 = vadd.f32 1.0, %v1976_v33 }
 0x16c   : > { %v1924_v0 = vsub.f32 1.0, %v1870_v31  ;;  %v1781_v24 = vmul.f32 1.442695, %v1711_v53  ;;  %v1011_v30 = vadd.f32 1.0, %v957_v22  ;;  %v1547_v23 = vadd.f32 0.2548296, %v1493_v14 }
 0x16d   : > { %v6749_v37 = vpop.f32.mrb[64].mxu0  ;;  %v1225_v9 = vadd.f32 -1.4531521, %v1171_v1  ;;  %v1548_v12 = vadd.f32 0.2548296, %v1494_v17  ;;  %v6817_v22 = vmul.f32 %v2030_v4, %v6579_v26  ;;  %vm796_vm8 = vcmp.ge.f32.partialorder %v6777_v59, 0.0 }
 0x16e   : > { %v5104_v20 = vpop.f32.mrb[65].mxu0  ;;  %5831 = vrcp.f32 %v1011_v30  ;;  %v6801_v33 = vmul.f32 0.70710677, %v6784_v49 }
 0x16f   : > { %v6766_v54 = vpop.f32.mrb[66].mxu0  ;;  %v1977_v20 = vmul.f32 %v1923_v32, %v6668_v61  ;;  %v1279_v44 = vmul.f32 %v6768_v51, %v1225_v9  ;;  %v6806_v61 = vmul.f32 %v2029_v40, %v6575_v27  ;;  %v6811_v32 = vsel %vm793_vm5, 1.0, %v8812_v56  ;;  %8817 = vst [vmem:[#allocation17_spill] sm:$0xff] %v6817_v22 }
 0x170   : > { %v5105_v5 = vpop.f32.mrb[67].mxu0  ;;  %v1978_v9 = vmul.f32 %v1924_v0, %v6675_v6  ;;  %5833 = vpow2.f32 %v1781_v24  ;;  %v6827_v4 = vand.u32 2147483647, %v6801_v33  ;;  %v1602_v43 = vmul.f32 %v6689_v35, %v1548_v12 }
 0x171   : > { %v6793_v5 = vand.u32 2147483647, %v6777_v59  ;;  %8815 = vst [vmem:[#allocation15_spill] sm:$0xff] %v6806_v61  ;;  %v1333_v14 = vadd.f32 1.4214138, %v1279_v44  ;;  %v2031_v2 = vadd.f32 1.0, %v1977_v20  ;;  %v1658_v44 = vmul.f32 %v6714_v57, %v6714_v57 }
 0x172   : > { %v6832_v0 = vsel %vm794_vm6, 1.0, %v8812_v56  ;;  %v2032_v20 = vadd.f32 1.0, %v1978_v9  ;;  %v6847_v9 = vadd.f32 %v6743_v25, %v6494_v47  ;;  %vm797_vm9 = vcmp.ge.f32.partialorder %v6801_v33, 0.0 }
 0x173   : > { %v6803_v53 = vpop.eup %5825  ;;  %v958_v1 = vmul.f32 0.3275911, %v6793_v5  ;;  %v1387_v29 = vmul.f32 %v6768_v51, %v1333_v14  ;;  %v6838_v24 = vmul.f32 %v2031_v2, %v6619_v11  ;;  %v8819_v11 = vrot.slane %v6488_v16, 1 }
 0x174   : > { %v5828_v17 = vpop.eup %5827  ;;  %v1172_v27 = vmul.f32 1.0614054, %v6803_v53  ;;  %v8821_v2 = vrot.slane %v6719_v8, 1  ;;  %v6910_v8 = vsel %vm796_vm8, 1.0, %v8812_v56 }
 0x175   : > { %v6795_v52 = vpop.f32.mrb[68].mxu0  ;;  %v5830_v30 = vpop.eup %5829  ;;  %v1012_v7 = vadd.f32 1.0, %v958_v1  ;;  %v1712_v1 = vsub.f32 0.0, %v1658_v44  ;;  %v1441_v12 = vadd.f32 -0.28449672, %v1387_v29  ;;  %v8822_v29 = vmov %v8819_v11 }
 0x176   : > { %v5108_v31 = vpop.f32.mrb[69].mxu0  ;;  %v1226_v26 = vadd.f32 -1.4531521, %v1172_v27  ;;  %v6841_v27 = vmul.f32 0.5, %v6731_v13  ;;  %v1872_v6 = vmul.f32 %v5830_v30, %v1602_v43  ;;  %v6865_v30 = vmul.f32 %v2032_v20, %v6645_v55 }
 0x177   : > { %v6814_v15 = vpop.f32.mrb[70].mxu0  ;;  %v1601_v31 = vmul.f32 %v6680_v58, %v1547_v23  ;;  %5835 = vrcp.f32 %v1012_v7  ;;  %v959_v23 = vmul.f32 0.3275911, %v6827_v4  ;;  %v1659_v43 = vmul.f32 %v6772_v10, %v6772_v10 }
 0x178   : > { %8816 = vst [vmem:[#allocation16_spill] sm:$0xff] %v6814_v15  ;;  %v5109_v40 = vpop.f32.mrb[71].mxu0  ;;  %v1280_v57 = vmul.f32 %v6803_v53, %v1226_v26  ;;  %v6862_v47 = vpop.eup %5831  ;;  %8824 = vst [vmem:[#allocation20_spill] sm:$0xff] %v6865_v30  ;;  %v1495_v20 = vmul.f32 %v6768_v51, %v1441_v12  ;;  %v6894_v12 = vmul.f32 0.5, %v6747_v60 }
 0x179   : > { %v1871_v14 = vmul.f32 %v5828_v17, %v1601_v31  ;;  %v1013_v7 = vadd.f32 1.0, %v959_v23  ;;  %v8820_v17 = vrot.slane %v6486_v63, 1  ;;  %v2210_v31 = vsel %vm2195_vm12, %v8822_v29, %v8821_v2 }
 0x17a   : > { %v1334_v40 = vadd.f32 1.4214138, %v1280_v57  ;;  %v6871_v57 = vadd.f32 %v6743_v25, %v6530_v18  ;;  %v1926_v29 = vsub.f32 1.0, %v1872_v6  ;;  %v6885_v18 = vsel %vm795_vm7, 1.0, %v8812_v56 }
 0x17b   : > { %v2208_v13 = vsel %vm2195_vm12, %v8820_v17, %v8819_v11  ;;  %5837 = vrcp.f32 %v1013_v7  ;;  %v1173_v11 = vmul.f32 1.0614054, %v6862_v47  ;;  %v6875_v17 = vmul.f32 0.70710677, %v6847_v9 }
 0x17c   : > { %v6877_v2 = vpack.c.bf16 %v2210_v31, %v2208_v13  ;;  %v1388_v10 = vmul.f32 %v6803_v53, %v1334_v40  ;;  %v1783_v7 = vmul.f32 1.442695, %v1712_v1  ;;  %v5834_v13 = vpop.eup %5833  ;;  %v6898_v6 = vmul.f32 0.70710677, %v6871_v57 }
 0x17d   : > { %v6843_v35 = vpop.f32.mrb[72].mxu0  ;;  %v1549_v31 = vadd.f32 0.2548296, %v1495_v20  ;;  %v1980_v59 = vmul.f32 %v1926_v29, %v6764_v41  ;;  %v1661_v29 = vmul.f32 %v6827_v4, %v6827_v4  ;;  %vm798_vm10 = vcmp.ge.f32.partialorder %v6875_v17, 0.0 }
 0x17e   : > { %8818 = vst [vmem:[#allocation18_spill] sm:$0xff] %v6843_v35  ;;  %v5112_v26 = vpop.f32.mrb[73].mxu0  ;;  %8825 = vst [vmem:[#allocation21_spill] sm:$0xff] %v6877_v2  ;;  %5154 = vmatprep.mubr.msk.bf16.mxu0 %vm2341_vm0, %v6877_v2  ;;  %v1442_v2 = vadd.f32 -0.28449672, %v1388_v10  ;;  %5839 = vpow2.f32 %v1783_v7  ;;  %vm799_vm11 = vcmp.ge.f32.partialorder %v6898_v6, 0.0 }
 0x17f   : > { %v6860_v44 = vpop.f32.mrb[74].mxu0  ;;  %v1925_v26 = vsub.f32 1.0, %v1871_v14  ;;  %v1227_v14 = vadd.f32 -1.4531521, %v1173_v11  ;;  %v1713_v11 = vsub.f32 0.0, %v1659_v43  ;;  %v1660_v43 = vmul.f32 %v6793_v5, %v6793_v5 }
 0x180   : > { %8823 = vst [vmem:[#allocation19_spill] sm:$0xff] %v6860_v44  ;;  %v5113_v23 = vpop.f32.mrb[75].mxu0  ;;  %v6918_v20 = vand.u32 2147483647, %v6898_v6  ;;  %v1603_v5 = vmul.f32 %v6768_v51, %v1549_v31  ;;  %v1715_v31 = vsub.f32 0.0, %v1661_v29 }
 0x181   : > { %v6888_v23 = vand.u32 2147483647, %v6875_v17  ;;  %v6900_v19 = vpop.eup %5835  ;;  %v1979_v1 = vmul.f32 %v1925_v26, %v6759_v50  ;;  %v1281_v40 = vmul.f32 %v6862_v47, %v1227_v14  ;;  %v6915_v14 = vmul.f32 0.5, %v6784_v49 }
 0x182   : > { %v1174_v60 = vmul.f32 1.0614054, %v6900_v19  ;;  %v1496_v49 = vmul.f32 %v6803_v53, %v1442_v2 }
 0x183   : > { %v960_v55 = vmul.f32 0.3275911, %v6888_v23  ;;  %v1335_v63 = vadd.f32 1.4214138, %v1281_v40  ;;  %v2033_v7 = vadd.f32 1.0, %v1979_v1 }
 0x184   : > { %v1228_v26 = vadd.f32 -1.4531521, %v1174_v60 }
 0x185   : > { %v6905_v58 = vpop.f32.mrb[76].mxu0  ;;  %v1014_v16 = vadd.f32 1.0, %v960_v55  ;;  %v1389_v41 = vmul.f32 %v6862_v47, %v1335_v63  ;;  %v6925_v40 = vpop.eup %5837  ;;  %v6934_v63 = vadd.f32 %v6743_v25, %v6544_v38  ;;  %v6937_v51 = vmul.f32 %v2033_v7, %v6707_v46 }
 0x186   : > { %8826 = vst [vmem:[#allocation22_spill] sm:$0xff] %v6905_v58  ;;  %v5116_v50 = vpop.f32.mrb[77].mxu0  ;;  %v1282_v60 = vmul.f32 %v6900_v19, %v1228_v26  ;;  %v2034_v58 = vadd.f32 1.0, %v1980_v59  ;;  %v1175_v1 = vmul.f32 1.0614054, %v6925_v40  ;;  %v1873_v59 = vmul.f32 %v5834_v13, %v1603_v5 }
 0x187   : > { %v6920_v10 = vpop.f32.mrb[78].mxu0  ;;  %5841 = vrcp.f32 %v1014_v16  ;;  %v961_v50 = vmul.f32 0.3275911, %v6918_v20  ;;  %v1785_v16 = vmul.f32 1.442695, %v1713_v11  ;;  %8828 = vst [vmem:[#allocation24_spill] sm:$0xff] %v6937_v51 }
 0x188   : > { %8827 = vst [vmem:[#allocation23_spill] sm:$0xff] %v6920_v10  ;;  %v5117_v55 = vpop.f32.mrb[79].mxu0  ;;  %v1443_v10 = vadd.f32 -0.28449672, %v1389_v41  ;;  %v1336_v4 = vadd.f32 1.4214138, %v1282_v60  ;;  %v6944_v11 = vmul.f32 %v2034_v58, %v6722_v36  ;;  %v5840_v29 = vpop.eup %5839 }
 0x189   : > { %v1714_v55 = vsub.f32 0.0, %v1660_v43  ;;  %v1015_v44 = vadd.f32 1.0, %v961_v50  ;;  %v1229_v2 = vadd.f32 -1.4531521, %v1175_v1  ;;  %v1550_v41 = vadd.f32 0.2548296, %v1496_v49 }
 0x18a   : > { %v1390_v35 = vmul.f32 %v6900_v19, %v1336_v4  ;;  %8830 = vst [vmem:[#allocation26_spill] sm:$0xff] %v6944_v11  ;;  %v1497_v43 = vmul.f32 %v6862_v47, %v1443_v10  ;;  %v6949_v7 = vmul.f32 0.70710677, %v6934_v63  ;;  %v1789_v49 = vmul.f32 1.442695, %v1715_v31 }
 0x18b   : > { %5843 = vrcp.f32 %v1015_v44  ;;  %v1283_v46 = vmul.f32 %v6925_v40, %v1229_v2  ;;  %v1787_v5 = vmul.f32 1.442695, %v1714_v55  ;;  %v6956_v44 = vsel %vm797_vm9, 1.0, %v8812_v56 }
 0x18c   : > { %5845 = vpow2.f32 %v1785_v16  ;;  %v1444_v13 = vadd.f32 -0.28449672, %v1390_v35  ;;  %v908_v10 = vand.u32 2147483647, %v6949_v7  ;;  %v1927_v1 = vsub.f32 1.0, %v1873_v59 }
 0x18d   : > { %v6940_v26 = vpop.f32.mrb[80].mxu0  ;;  %v1337_v58 = vadd.f32 1.4214138, %v1283_v46  ;;  %v1604_v4 = vmul.f32 %v6803_v53, %v1550_v41  ;;  %v6963_v16 = vadd.f32 %v6743_v25, %v6583_v48  ;;  %v1551_v55 = vadd.f32 0.2548296, %v1497_v43 }
 0x18e   : > { %8829 = vst [vmem:[#allocation25_spill] sm:$0xff] %v6940_v26  ;;  %v5120_v38 = vpop.f32.mrb[81].mxu0  ;;  %v1498_v2 = vmul.f32 %v6900_v19, %v1444_v13  ;;  %5847 = vpow2.f32 %v1787_v5  ;;  %v6971_v46 = vmul.f32 0.5, %v6847_v9  ;;  %v1662_v48 = vmul.f32 %v6888_v23, %v6888_v23 }
 0x18f   : > { %v6951_v60 = vpop.f32.mrb[82].mxu0  ;;  %v962_v38 = vmul.f32 0.3275911, %v908_v10  ;;  %v1391_v31 = vmul.f32 %v6925_v40, %v1337_v58  ;;  %5849 = vpow2.f32 %v1789_v49  ;;  %v1981_v41 = vmul.f32 %v1927_v1, %v6811_v32 }
 0x190   : > { %8831 = vst [vmem:[#allocation27_spill] sm:$0xff] %v6951_v60  ;;  %v5121_v36 = vpop.f32.mrb[83].mxu0  ;;  %v1874_v43 = vmul.f32 %v5840_v29, %v1604_v4  ;;  %v6979_v5 = vmul.f32 0.70710677, %v6963_v16  ;;  %v1552_v9 = vadd.f32 0.2548296, %v1498_v2 }
 0x191   : > { %v6965_v35 = vpop.eup %5841  ;;  %v1016_v59 = vadd.f32 1.0, %v962_v38  ;;  %v1605_v36 = vmul.f32 %v6862_v47, %v1551_v55  ;;  %v6983_v58 = vmul.f32 0.5, %v6871_v57  ;;  %v1445_v17 = vadd.f32 -0.28449672, %v1391_v31 }
 0x192   : > { %v1176_v53 = vmul.f32 1.0614054, %v6965_v35  ;;  %v6988_v23 = vsel %vm798_vm10, 1.0, %v8812_v56  ;;  %v6992_v29 = vand.u32 2147483647, %v6979_v5  ;;  %v1716_v1 = vsub.f32 0.0, %v1662_v48 }
 0x193   : > { %5851 = vrcp.f32 %v1016_v59  ;;  %v1663_v47 = vmul.f32 %v6918_v20, %v6918_v20  ;;  %v8832_v57 = vrot.slane %v6817_v22, 1  ;;  %v8833_v55 = vrot.slane %v6806_v61, 1 }
 0x194   : > { %v1230_v13 = vadd.f32 -1.4531521, %v1176_v53  ;;  %v2035_v53 = vadd.f32 1.0, %v1981_v41  ;;  %v1928_v59 = vsub.f32 1.0, %v1874_v43  ;;  %v963_v33 = vmul.f32 0.3275911, %v6992_v29 }
 0x195   : > { %v6985_v49 = vpop.eup %5843  ;;  %v2215_v2 = vsel %vm2195_vm12, %v8833_v55, %v8832_v57  ;;  %v7002_v38 = vpop.f32.mrb[84].mxu0  ;;  %v1606_v50 = vmul.f32 %v6900_v19, %v1552_v9  ;;  %v8834_v20 = vmov %v8833_v55  ;;  %v8835_v22 = vrot.slane %v6753_v3, 1 }
 0x196   : > { %v1284_v32 = vmul.f32 %v6965_v35, %v1230_v13  ;;  %v1177_v4 = vmul.f32 1.0614054, %v6985_v49  ;;  %v5846_v31 = vpop.eup %5845  ;;  %v5124_v15 = vpop.f32.mrb[85].mxu0  ;;  %v1499_v57 = vmul.f32 %v6925_v40, %v1445_v17  ;;  %v1017_v41 = vadd.f32 1.0, %v963_v33 }
 0x197   : > { %v1875_v48 = vmul.f32 %v5846_v31, %v1605_v36  ;;  %v2213_v26 = vsel %vm2195_vm12, %v8835_v22, %v8834_v20  ;;  %v1717_v36 = vsub.f32 0.0, %v1663_v47  ;;  %v1664_v61 = vmul.f32 %v908_v10, %v908_v10 }
 0x198   : > { %v1338_v13 = vadd.f32 1.4214138, %v1284_v32  ;;  %v1231_v60 = vadd.f32 -1.4531521, %v1177_v4  ;;  %v7013_v43 = vpack.c.bf16 %v2215_v2, %v2213_v26  ;;  %v1791_v32 = vmul.f32 1.442695, %v1716_v1  ;;  %v5848_v9 = vpop.eup %5847 }
 0x199   : > { %v1982_v4 = vmul.f32 %v1928_v59, %v6832_v0  ;;  %5853 = vrcp.f32 %v1017_v41  ;;  %v5850_v15 = vpop.eup %5849  ;;  %v1929_v22 = vsub.f32 1.0, %v1875_v48  ;;  %v1876_v33 = vmul.f32 %v5848_v9, %v1606_v50  ;;  %v7056_v9 = vpop.f32.mrb[86].mxu0 }
 0x19a   : > { %v1392_v55 = vmul.f32 %v6965_v35, %v1338_v13  ;;  %8836 = vst [vmem:[#allocation28_spill] sm:$0xff] %v7013_v43  ;;  %v1285_v19 = vmul.f32 %v6985_v49, %v1231_v60  ;;  %5155 = vmatmul.mubr.msk.bf16.gmra.mrb[112].mxu0 %vm2341_vm0, %v7013_v43  ;;  %v7022_v17 = vadd.f32 %v6743_v25, %v6595_v28  ;;  %v1553_v1 = vadd.f32 0.2548296, %v1499_v57 }
 0x19b   : > { %v7025_v60 = vmul.f32 %v2035_v53, %v6787_v21  ;;  %v7030_v0 = vsel %vm799_vm11, 1.0, %v8812_v56  ;;  %v7033_v10 = vmul.f32 0.5, %v6934_v63  ;;  %v7044_v21 = vadd.f32 %v6743_v25, %v6622_v45 }
 0x19c   : > { %v1446_v31 = vadd.f32 -0.28449672, %v1392_v55  ;;  %v1339_v26 = vadd.f32 1.4214138, %v1285_v19  ;;  %v7040_v28 = vmul.f32 0.70710677, %v7022_v17  ;;  %5855 = vpow2.f32 %v1791_v32 }
 0x19d   : > { %8837 = vst [vmem:[#allocation29_spill] sm:$0xff] %v7025_v60  ;;  %v7035_v47 = vpop.eup %5851  ;;  %v2036_v53 = vadd.f32 1.0, %v1982_v4  ;;  %v1793_v6 = vmul.f32 1.442695, %v1717_v36  ;;  %v1983_v63 = vmul.f32 %v1929_v22, %v6885_v18  ;;  %v1930_v13 = vsub.f32 1.0, %v1876_v33 }
 0x19e   : > { %v1500_v50 = vmul.f32 %v6965_v35, %v1446_v31  ;;  %v1393_v2 = vmul.f32 %v6985_v49, %v1339_v26  ;;  %v1178_v59 = vmul.f32 1.0614054, %v7035_v47  ;;  %v1718_v20 = vsub.f32 0.0, %v1664_v61 }
 0x19f   : > { %v1607_v57 = vmul.f32 %v6925_v40, %v1553_v1  ;;  %vm800_vm13 = vcmp.ge.f32.partialorder %v6949_v7, 0.0  ;;  %v910_v41 = vand.u32 2147483647, %v7040_v28  ;;  %v7054_v36 = vmul.f32 0.70710677, %v7044_v21  ;;  %v5125_v7 = vpop.f32.mrb[87].mxu0 }
 0x1a0   : > { %v1447_v48 = vadd.f32 -0.28449672, %v1393_v2  ;;  %v1232_v55 = vadd.f32 -1.4531521, %v1178_v59  ;;  %v1554_v19 = vadd.f32 0.2548296, %v1500_v50  ;;  %v7059_v18 = vmul.f32 %v2036_v53, %v6798_v62 }
 0x1a1   : > { %5857 = vpow2.f32 %v1793_v6  ;;  %v964_v40 = vmul.f32 0.3275911, %v910_v41  ;;  %v2037_v4 = vadd.f32 1.0, %v1983_v63  ;;  %v1984_v31 = vmul.f32 %v1930_v13, %v6910_v8  ;;  %v8839_v13 = vld [vmem:[#allocation12_spill] sm:$0xff] }
 0x1a2   : > { %v1501_v32 = vmul.f32 %v6985_v49, %v1447_v48  ;;  %8838 = vst [vmem:[#allocation30_spill] sm:$0xff] %v7059_v18  ;;  %v1286_v61 = vmul.f32 %v7035_v47, %v1232_v55  ;;  %v7064_v22 = vsel %vm800_vm13, 1.0, %v8812_v56  ;;  %v1795_v33 = vmul.f32 1.442695, %v1718_v20 }
 0x1a3   : > { %v7066_v26 = vpop.eup %5853  ;;  %v1877_v1 = vmul.f32 %v5850_v15, %v1607_v57  ;;  %v1665_v62 = vmul.f32 %v6992_v29, %v6992_v29  ;;  %v1018_v2 = vadd.f32 1.0, %v964_v40  ;;  %v1608_v53 = vmul.f32 %v6965_v35, %v1554_v19  ;;  %v7079_v57 = vpop.f32.mrb[88].mxu0 }
 0x1a4   : > { %v1340_v50 = vadd.f32 1.4214138, %v1286_v61  ;;  %v1555_v6 = vadd.f32 0.2548296, %v1501_v32  ;;  %v1179_v59 = vmul.f32 1.0614054, %v7066_v26  ;;  %v7077_v15 = vadd.f32 %v6743_v25, %v8839_v13 }
 0x1a5   : > { %v911_v63 = vand.u32 2147483647, %v7054_v36  ;;  %vm801_vm14 = vcmp.ge.f32.partialorder %v6979_v5, 0.0  ;;  %5859 = vrcp.f32 %v1018_v2  ;;  %v2038_v48 = vadd.f32 1.0, %v1984_v31  ;;  %v5128_v40 = vpop.f32.mrb[89].mxu0 }
 0x1a6   : > { %v1394_v8 = vmul.f32 %v7035_v47, %v1340_v50  ;;  %v1233_v20 = vadd.f32 -1.4531521, %v1179_v59  ;;  %v5856_v35 = vpop.eup %5855  ;;  %v7082_v55 = vmul.f32 %v2037_v4, %v6841_v27  ;;  %v1931_v19 = vsub.f32 1.0, %v1877_v1  ;;  %v7086_v45 = vpop.f32.mrb[90].mxu0 }
 0x1a7   : > { %v965_v29 = vmul.f32 0.3275911, %v911_v63  ;;  %v1719_v61 = vsub.f32 0.0, %v1665_v62  ;;  %v1878_v7 = vmul.f32 %v5856_v35, %v1608_v53  ;;  %v1609_v50 = vmul.f32 %v6985_v49, %v1555_v6  ;;  %v5129_v4 = vpop.f32.mrb[91].mxu0 }
 0x1a8   : > { %8840 = vst [vmem:[#allocation12_spill] sm:$0xff] %v7082_v55  ;;  %v1448_v32 = vadd.f32 -0.28449672, %v1394_v8  ;;  %v1287_v2 = vmul.f32 %v7066_v26, %v1233_v20  ;;  %5861 = vpow2.f32 %v1795_v33  ;;  %v7090_v59 = vmul.f32 0.5, %v6963_v16 }
 0x1a9   : > { %v1019_v13 = vadd.f32 1.0, %v965_v29  ;;  %v7093_v27 = vmul.f32 0.70710677, %v7077_v15  ;;  %v7096_v1 = vmul.f32 %v2038_v48, %v6894_v12  ;;  %v1985_v8 = vmul.f32 %v1931_v19, %v6956_v44 }
 0x1aa   : > { %v1502_v49 = vmul.f32 %v7035_v47, %v1448_v32  ;;  %v1341_v62 = vadd.f32 1.4214138, %v1287_v2  ;;  %v7104_v16 = vsel %vm801_vm14, 1.0, %v8812_v56  ;;  %v1666_v33 = vmul.f32 %v910_v41, %v910_v41 }
 0x1ab   : > { %8841 = vst [vmem:[#allocation31_spill] sm:$0xff] %v7096_v1  ;;  %5863 = vrcp.f32 %v1019_v13  ;;  %v5858_v53 = vpop.eup %5857  ;;  %v1932_v20 = vsub.f32 1.0, %v1878_v7  ;;  %v1797_v48 = vmul.f32 1.442695, %v1719_v61  ;;  %v7108_v35 = vand.u32 2147483647, %v7093_v27 }
 0x1ac   : > { %v1879_v29 = vmul.f32 %v5858_v53, %v1609_v50  ;;  %v1395_v12 = vmul.f32 %v7066_v26, %v1341_v62  ;;  %v8842_v32 = vrot.slane %v6865_v30, 1  ;;  %v8843_v40 = vrot.slane %v6838_v24, 1 }
 0x1ad   : > { %v8844_v19 = vrot.slane %v6937_v51, 1  ;;  %v7122_v7 = vadd.f32 %v6743_v25, %v6670_v34  ;;  %v1556_v50 = vadd.f32 0.2548296, %v1502_v49  ;;  %v7126_v2 = vmul.f32 0.5, %v7022_v17 }
 0x1ae   : > { %v2218_v44 = vsel %vm2195_vm12, %v8843_v40, %v8842_v32  ;;  %v8845_v5 = vmov %v8842_v32  ;;  %v2039_v62 = vadd.f32 1.0, %v1985_v8  ;;  %vm802_vm15 = vcmp.ge.f32.partialorder %v7040_v28, 0.0  ;;  %v8847_v8 = vld [vmem:[#allocation13_spill] sm:$0xff] }
 0x1af   : > { %v2220_v41 = vsel %vm2195_vm12, %v8845_v5, %v8844_v19  ;;  %v7130_v4 = vpop.eup %5859  ;;  %v1720_v53 = vsub.f32 0.0, %v1666_v33  ;;  %v966_v32 = vmul.f32 0.3275911, %v7108_v35  ;;  %v1933_v40 = vsub.f32 1.0, %v1879_v29 }
 0x1b0   : > { %v7128_v13 = vpack.c.bf16 %v2220_v41, %v2218_v44  ;;  %v1449_v19 = vadd.f32 -0.28449672, %v1395_v12  ;;  %5865 = vpow2.f32 %v1797_v48  ;;  %v1180_v34 = vmul.f32 1.0614054, %v7130_v4 }
 0x1b1   : > { %v1986_v17 = vmul.f32 %v1932_v20, %v6988_v23  ;;  %v1020_v49 = vadd.f32 1.0, %v966_v32  ;;  %v7139_v44 = vmul.f32 0.70710677, %v7122_v7  ;;  %v7143_v28 = vadd.f32 %v6743_v25, %v8847_v8 }
 0x1b2   : > { %8846 = vst [vmem:[#allocation32_spill] sm:$0xff] %v7128_v13  ;;  %5158 = vmatprep.mubr.msk.bf16.mxu0 %vm2341_vm0, %v7128_v13  ;;  %v1610_v33 = vmul.f32 %v7035_v47, %v1556_v50  ;;  %v7147_v29 = vsel %vm802_vm15, 1.0, %v8812_v56  ;;  %v1234_v12 = vadd.f32 -1.4531521, %v1180_v34  ;;  %v1667_v48 = vmul.f32 %v911_v63, %v911_v63  ;;  %v5862_v5 = vpop.eup %5861 }
 0x1b3   : > { %v7150_v41 = vmul.f32 %v2039_v62, %v6915_v14  ;;  %v1799_v23 = vmul.f32 1.442695, %v1720_v53  ;;  %vm803_vm1 = vcmp.ge.f32.partialorder %v7054_v36, 0.0  ;;  %5867 = vrcp.f32 %v1020_v49 }
 0x1b4   : > { %v1987_v32 = vmul.f32 %v1933_v40, %v7030_v0  ;;  %v1503_v8 = vmul.f32 %v7066_v26, %v1449_v19  ;;  %v1288_v47 = vmul.f32 %v7130_v4, %v1234_v12  ;;  %v7159_v50 = vand.u32 2147483647, %v7139_v44 }
 0x1b5   : > { %8848 = vst [vmem:[#allocation13_spill] sm:$0xff] %v7150_v41  ;;  %v7153_v20 = vpop.eup %5863  ;;  %v2040_v63 = vadd.f32 1.0, %v1986_v17  ;;  %v7162_v34 = vmul.f32 0.5, %v7044_v21  ;;  %v7166_v62 = vmul.f32 0.70710677, %v7143_v28  ;;  %v1880_v53 = vmul.f32 %v5862_v5, %v1610_v33 }
 0x1b6   : > { %v1181_v14 = vmul.f32 1.0614054, %v7153_v20  ;;  %v1342_v49 = vadd.f32 1.4214138, %v1288_v47  ;;  %v1721_v6 = vsub.f32 0.0, %v1667_v48  ;;  %v7173_v19 = vsel %vm803_vm1, 1.0, %v8812_v56 }
 0x1b7   : > { %v967_v0 = vmul.f32 0.3275911, %v7159_v50  ;;  %v7176_v21 = vand.u32 2147483647, %v7166_v62  ;;  %v2041_v12 = vadd.f32 1.0, %v1987_v32  ;;  %v7180_v48 = vmul.f32 %v2040_v63, %v6971_v46  ;;  %v7187_v32 = vpop.f32.mrb[92].mxu0 }
 0x1b8   : > { %v1235_v17 = vadd.f32 -1.4531521, %v1181_v14  ;;  %v1557_v61 = vadd.f32 0.2548296, %v1503_v8  ;;  %v1396_v31 = vmul.f32 %v7130_v4, %v1342_v49  ;;  %5869 = vpow2.f32 %v1799_v23  ;;  %v5132_v63 = vpop.f32.mrb[93].mxu0 }
 0x1b9   : > { %v1021_v33 = vadd.f32 1.0, %v967_v0  ;;  %v7185_v36 = vadd.f32 %v6743_v25, %v6710_v42  ;;  %v1934_v14 = vsub.f32 1.0, %v1880_v53  ;;  %v1801_v13 = vmul.f32 1.442695, %v1721_v6  ;;  %v7201_v53 = vpop.f32.mrb[94].mxu0 }
 0x1ba   : > { %v1289_v5 = vmul.f32 %v7153_v20, %v1235_v17  ;;  %v5866_v47 = vpop.eup %5865  ;;  %v1450_v40 = vadd.f32 -0.28449672, %v1396_v31  ;;  %vm804_vm2 = vcmp.ge.f32.partialorder %v7093_v27, 0.0  ;;  %v1668_v46 = vmul.f32 %v7108_v35, %v7108_v35 }
 0x1bb   : > { %5871 = vrcp.f32 %v1021_v33  ;;  %v968_v23 = vmul.f32 0.3275911, %v7176_v21  ;;  %v7194_v49 = vmul.f32 %v2041_v12, %v6983_v58  ;;  %v1611_v42 = vmul.f32 %v7066_v26, %v1557_v61  ;;  %v5133_v58 = vpop.f32.mrb[95].mxu0 }
 0x1bc   : > { %v1343_v8 = vadd.f32 1.4214138, %v1289_v5  ;;  %v1504_v31 = vmul.f32 %v7130_v4, %v1450_v40  ;;  %v7199_v6 = vmul.f32 0.5, %v7077_v15  ;;  %v7208_v5 = vmul.f32 0.70710677, %v7185_v36 }
 0x1bd   : > { %v7203_v0 = vpop.eup %5867  ;;  %v1022_v33 = vadd.f32 1.0, %v968_v23  ;;  %v1988_v26 = vmul.f32 %v1934_v14, %v7064_v22  ;;  %5873 = vpow2.f32 %v1801_v13  ;;  %v7214_v15 = vsel %vm804_vm2, 1.0, %v8812_v56 }
 0x1be   : > { %v1397_v35 = vmul.f32 %v7153_v20, %v1343_v8  ;;  %v1182_v61 = vmul.f32 1.0614054, %v7203_v0  ;;  %v1722_v12 = vsub.f32 0.0, %v1668_v46  ;;  %v7218_v63 = vmul.f32 0.5, %v7122_v7 }
 0x1bf   : > { %5875 = vrcp.f32 %v1022_v33  ;;  %v1881_v23 = vmul.f32 %v5866_v47, %v1611_v42  ;;  %v1558_v58 = vadd.f32 0.2548296, %v1504_v31  ;;  %v915_v13 = vand.u32 2147483647, %v7208_v5 }
 0x1c0   : > { %v1451_v40 = vadd.f32 -0.28449672, %v1397_v35  ;;  %v1236_v17 = vadd.f32 -1.4531521, %v1182_v61  ;;  %v8849_v27 = vrot.slane %v7025_v60, 1  ;;  %v8850_v14 = vrot.slane %v6944_v11, 1 }
 0x1c1   : > { %v8851_v46 = vrot.slane %v7059_v18, 1  ;;  %v2042_v8 = vadd.f32 1.0, %v1988_v26  ;;  %v7238_v31 = vadd.f32 %v6743_v25, %v6716_v39  ;;  %vm805_vm3 = vcmp.ge.f32.partialorder %v7139_v44, 0.0 }
 0x1c2   : > { %v1505_v22 = vmul.f32 %v7153_v20, %v1451_v40  ;;  %v2223_v35 = vsel %vm2195_vm12, %v8850_v14, %v8849_v27  ;;  %v8852_v7 = vmov %v8849_v27  ;;  %v1290_v47 = vmul.f32 %v7203_v0, %v1236_v17  ;;  %v5870_v61 = vpop.eup %5869 }
 0x1c3   : > { %v2225_v33 = vsel %vm2195_vm12, %v8852_v7, %v8851_v46  ;;  %v1803_v40 = vmul.f32 1.442695, %v1722_v12  ;;  %v1669_v27 = vmul.f32 %v7159_v50, %v7159_v50  ;;  %v969_v14 = vmul.f32 0.3275911, %v915_v13 }
 0x1c4   : > { %v7234_v42 = vpack.c.bf16 %v2225_v33, %v2223_v35  ;;  %v1935_v46 = vsub.f32 1.0, %v1881_v23  ;;  %v1612_v26 = vmul.f32 %v7130_v4, %v1558_v58  ;;  %v1344_v17 = vadd.f32 1.4214138, %v1290_v47 }
 0x1c5   : > { %v7243_v18 = vpop.eup %5871  ;;  %v7249_v39 = vmul.f32 0.70710677, %v7238_v31  ;;  %v1559_v35 = vadd.f32 0.2548296, %v1505_v22  ;;  %v7253_v44 = vmul.f32 0.5, %v7143_v28  ;;  %v1023_v50 = vadd.f32 1.0, %v969_v14 }
 0x1c6   : > { %8853 = vst [vmem:[#allocation33_spill] sm:$0xff] %v7234_v42  ;;  %5159 = vmatmul.mubr.msk.bf16.gmra.mrb[116].mxu0 %vm2341_vm0, %v7234_v42  ;;  %v1183_v12 = vmul.f32 1.0614054, %v7243_v18  ;;  %v7256_v7 = vmul.f32 %v2042_v8, %v7033_v10  ;;  %v1398_v23 = vmul.f32 %v7203_v0, %v1344_v17  ;;  %v7260_v4 = vsel %vm805_vm3, 1.0, %v8812_v56 }
 0x1c7   : > { %v916_v58 = vand.u32 2147483647, %v7249_v39  ;;  %vm806_vm4 = vcmp.ge.f32.partialorder %v7166_v62, 0.0  ;;  %v1670_v22 = vmul.f32 %v7176_v21, %v7176_v21  ;;  %5877 = vrcp.f32 %v1023_v50  ;;  %v5874_v28 = vpop.eup %5873 }
 0x1c8   : > { %8854 = vst [vmem:[#allocation34_spill] sm:$0xff] %v7256_v7  ;;  %v1237_v33 = vadd.f32 -1.4531521, %v1183_v12  ;;  %v1989_v47 = vmul.f32 %v1935_v46, %v7104_v16  ;;  %v1882_v14 = vmul.f32 %v5870_v61, %v1612_v26  ;;  %v1723_v10 = vsub.f32 0.0, %v1669_v27 }
 0x1c9   : > { %v970_v8 = vmul.f32 0.3275911, %v916_v58  ;;  %v7267_v42 = vpop.eup %5875  ;;  %v1613_v17 = vmul.f32 %v7153_v20, %v1559_v35  ;;  %v1452_v43 = vadd.f32 -0.28449672, %v1398_v23  ;;  %5879 = vpow2.f32 %v1803_v40 }
 0x1ca   : > { %v1291_v12 = vmul.f32 %v7243_v18, %v1237_v33  ;;  %v1184_v60 = vmul.f32 1.0614054, %v7267_v42  ;;  %v7275_v50 = vadd.f32 %v6743_v25, %v6749_v37  ;;  %v7280_v61 = vsel %vm806_vm4, 1.0, %v8812_v56 }
 0x1cb   : > { %v1024_v21 = vadd.f32 1.0, %v970_v8  ;;  %v1724_v20 = vsub.f32 0.0, %v1670_v22  ;;  %v1671_v27 = vmul.f32 %v915_v13, %v915_v13  ;;  %v2043_v40 = vadd.f32 1.0, %v1989_v47 }
 0x1cc   : > { %v1345_v16 = vadd.f32 1.4214138, %v1291_v12  ;;  %v1936_v46 = vsub.f32 1.0, %v1882_v14  ;;  %v1805_v26 = vmul.f32 1.442695, %v1723_v10  ;;  %v1883_v23 = vmul.f32 %v5874_v28, %v1613_v17  ;;  %v7302_v14 = vpop.f32.mrb[96].mxu0 }
 0x1cd   : > { %v1238_v35 = vadd.f32 -1.4531521, %v1184_v60  ;;  %v1506_v33 = vmul.f32 %v7203_v0, %v1452_v43  ;;  %5881 = vrcp.f32 %v1024_v21  ;;  %v7286_v12 = vmul.f32 0.5, %v7185_v36 }
 0x1ce   : > { %v1399_v8 = vmul.f32 %v7243_v18, %v1345_v16  ;;  %vm807_vm5 = vcmp.ge.f32.partialorder %v7208_v5, 0.0  ;;  %v7290_v62 = vmul.f32 0.70710677, %v7275_v50  ;;  %v1807_v22 = vmul.f32 1.442695, %v1724_v20 }
 0x1cf   : > { %v1292_v37 = vmul.f32 %v7267_v42, %v1238_v35  ;;  %v1725_v47 = vsub.f32 0.0, %v1671_v27  ;;  %v7294_v60 = vadd.f32 %v6743_v25, %v6766_v54  ;;  %v7297_v43 = vmul.f32 %v2043_v40, %v7090_v59  ;;  %v5136_v25 = vpop.f32.mrb[97].mxu0 }
 0x1d0   : > { %v1453_v13 = vadd.f32 -0.28449672, %v1399_v8  ;;  %5883 = vpow2.f32 %v1805_v26  ;;  %v7300_v36 = vand.u32 2147483647, %v7290_v62  ;;  %v1990_v10 = vmul.f32 %v1936_v46, %v7147_v29  ;;  %v7314_v40 = vpop.f32.mrb[98].mxu0 }
 0x1d1   : > { %8855 = vst [vmem:[#allocation35_spill] sm:$0xff] %v7297_v43  ;;  %v1346_v28 = vadd.f32 1.4214138, %v1292_v37  ;;  %v7304_v5 = vpop.eup %5877  ;;  %v1937_v17 = vsub.f32 1.0, %v1883_v23  ;;  %v1560_v21 = vadd.f32 0.2548296, %v1506_v33  ;;  %5885 = vpow2.f32 %v1807_v22 }
 0x1d2   : > { %v7308_v16 = vsel %vm807_vm5, 1.0, %v8812_v56  ;;  %v1507_v54 = vmul.f32 %v7243_v18, %v1453_v13  ;;  %v1185_v20 = vmul.f32 1.0614054, %v7304_v5  ;;  %v971_v27 = vmul.f32 0.3275911, %v7300_v36  ;;  %v5137_v23 = vpop.f32.mrb[99].mxu0 }
 0x1d3   : > { %v1400_v59 = vmul.f32 %v7267_v42, %v1346_v28  ;;  %v5880_v26 = vpop.eup %5879  ;;  %v1809_v35 = vmul.f32 1.442695, %v1725_v47  ;;  %v1672_v29 = vmul.f32 %v916_v58, %v916_v58  ;;  %v7317_v46 = vmul.f32 0.70710677, %v7294_v60 }
 0x1d4   : > { %v1239_v8 = vadd.f32 -1.4531521, %v1185_v20  ;;  %vm808_vm6 = vcmp.ge.f32.partialorder %v7249_v39, 0.0  ;;  %v1025_v37 = vadd.f32 1.0, %v971_v27  ;;  %v2044_v13 = vadd.f32 1.0, %v1990_v10 }
 0x1d5   : > { %v1454_v33 = vadd.f32 -0.28449672, %v1400_v59  ;;  %v1991_v28 = vmul.f32 %v1937_v17, %v7173_v19  ;;  %v1614_v25 = vmul.f32 %v7203_v0, %v1560_v21  ;;  %v918_v51 = vand.u32 2147483647, %v7317_v46 }
 0x1d6   : > { %v1561_v11 = vadd.f32 0.2548296, %v1507_v54  ;;  %v1293_v58 = vmul.f32 %v7304_v5, %v1239_v8  ;;  %5887 = vrcp.f32 %v1025_v37  ;;  %v7329_v20 = vmul.f32 0.5, %v7238_v31 }
 0x1d7   : > { %v1508_v22 = vmul.f32 %v7267_v42, %v1454_v33  ;;  %v7325_v47 = vpop.eup %5881  ;;  %v1726_v10 = vsub.f32 0.0, %v1672_v29  ;;  %v972_v27 = vmul.f32 0.3275911, %v918_v51  ;;  %v1884_v21 = vmul.f32 %v5880_v26, %v1614_v25 }
 0x1d8   : > { %v1347_v17 = vadd.f32 1.4214138, %v1293_v58  ;;  %v1186_v0 = vmul.f32 1.0614054, %v7325_v47  ;;  %5889 = vpow2.f32 %v1809_v35  ;;  %v7335_v54 = vsel %vm808_vm6, 1.0, %v8812_v56 }
 0x1d9   : > { %v1562_v19 = vadd.f32 0.2548296, %v1508_v22  ;;  %v1026_v23 = vadd.f32 1.0, %v972_v27  ;;  %v7338_v8 = vmul.f32 %v2044_v13, %v7126_v2  ;;  %v2045_v31 = vadd.f32 1.0, %v1991_v28 }
 0x1da   : > { %v5884_v33 = vpop.eup %5883  ;;  %v1615_v29 = vmul.f32 %v7243_v18, %v1561_v11  ;;  %v1401_v37 = vmul.f32 %v7304_v5, %v1347_v17  ;;  %v1240_v22 = vadd.f32 -1.4531521, %v1186_v0  ;;  %v1811_v58 = vmul.f32 1.442695, %v1726_v10  ;;  %v7356_v18 = vld [vmem:[%s8729_s2] ss:$0 sm:$0xff] }
 0x1db   : > { %8856 = vst [vmem:[#allocation36_spill] sm:$0xff] %v7338_v8  ;;  %5891 = vrcp.f32 %v1026_v23  ;;  %v8857_v26 = vrot.slane %v7096_v1, 1  ;;  %v8858_v35 = vrot.slane %v7082_v55, 1  ;;  %v1616_v25 = vmul.f32 %v7267_v42, %v1562_v19  ;;  %v5886_v10 = vpop.eup %5885  ;;  %v7371_v23 = vld [vmem:[%s8730_s3 + $0x20] sm:$0xff]  }
 0x1dc   : > { %v1455_v27 = vadd.f32 -0.28449672, %v1401_v37  ;;  %v8859_v2 = vrot.slane %v7150_v41, 1  ;;  %v7360_v28 = vadd.f32 %v7356_v18, %v6795_v52  ;;  %v1938_v17 = vsub.f32 1.0, %v1884_v21  ;;  %v7378_v21 = vpop.f32.mrb[100].mxu0  ;;  %5470 = vmatprep.subr.bf16.mxu1 %v7371_v23  ;;  %v8864_v55 = vld [vmem:[#allocation18_spill] sm:$0xff] }
 0x1dd   : > { %v2228_v39 = vsel %vm2195_vm12, %v8858_v35, %v8857_v26  ;;  %v8860_v13 = vmov %v8857_v26  ;;  %v1294_v42 = vmul.f32 %v7325_v47, %v1240_v22  ;;  %v7364_v19 = vmul.f32 0.5, %v7275_v50  ;;  %5472 = vmatpush3.bf16.msra.mxu1 %v7371_v23 }
 0x1de   : > { %v2230_v11 = vsel %vm2195_vm12, %v8860_v13, %v8859_v2  ;;  %v1885_v26 = vmul.f32 %v5884_v33, %v1615_v29  ;;  %v1509_v52 = vmul.f32 %v7304_v5, %v1455_v27  ;;  %v7376_v35 = vmul.f32 0.70710677, %v7360_v28  ;;  %v5140_v33 = vpop.f32.mrb[101].mxu0  ;;  %v8863_v13 = vld [vmem:[#allocation16_spill] sm:$0xff] }
 0x1df   : > { %v7366_v0 = vpack.c.bf16 %v2230_v11, %v2228_v39  ;;  %v7381_v50 = vmul.f32 %v2045_v31, %v7162_v34  ;;  %v1348_v22 = vadd.f32 1.4214138, %v1294_v42  ;;  %5893 = vpow2.f32 %v1811_v58 }
 0x1e0   : > { %vm809_vm7 = vcmp.ge.f32.partialorder %v7290_v62, 0.0  ;;  %v7387_v29 = vpop.eup %5887  ;;  %v1886_v39 = vmul.f32 %v5886_v10, %v1616_v25  ;;  %v1563_v27 = vadd.f32 0.2548296, %v1509_v52  ;;  %v919_v2 = vand.u32 2147483647, %v7376_v35  ;;  %v5748_v25 = vld [vmem:[%s8730_s3 + $0x28] sm:$0xff]  }
 0x1e1   : > { %8861 = vst [vmem:[#allocation37_spill] sm:$0xff] %v7366_v0  ;;  %8862 = vst [vmem:[#allocation38_spill] sm:$0xff] %v7381_v50  ;;  %5162 = vmatprep.mubr.msk.bf16.mxu0 %vm2341_vm0, %v7366_v0  ;;  %v7392_v34 = vadd.f32 %v7356_v18, %v8863_v13  ;;  %v1992_v31 = vmul.f32 %v1938_v17, %v7214_v15  ;;  %v1402_v58 = vmul.f32 %v7325_v47, %v1348_v22 }
 0x1e2   : > { %v1187_v11 = vmul.f32 1.0614054, %v7387_v29  ;;  %v1673_v42 = vmul.f32 %v7300_v36, %v7300_v36  ;;  %v1939_v10 = vsub.f32 1.0, %v1885_v26  ;;  %v1617_v52 = vmul.f32 %v7304_v5, %v1563_v27  ;;  %v5890_v59 = vpop.eup %5889  ;;  %5471 = vmatprep.subr.bf16.mxu1 %v5748_v25 }
 0x1e3   : > { %v1674_v33 = vmul.f32 %v918_v51, %v918_v51  ;;  %v973_v13 = vmul.f32 0.3275911, %v919_v2  ;;  %v1456_v15 = vadd.f32 -0.28449672, %v1402_v58  ;;  %v7408_v17 = vsel %vm809_vm7, 1.0, %v8812_v56  ;;  %5473 = vmatpush3.bf16.msra.mxu1 %v5748_v25 }
 0x1e4   : > { %v1241_v22 = vadd.f32 -1.4531521, %v1187_v11  ;;  %v1940_v36 = vsub.f32 1.0, %v1886_v39  ;;  %v7411_v0 = vmul.f32 0.5, %v7294_v60  ;;  %v7414_v5 = vmul.f32 0.70710677, %v7392_v34 }
 0x1e5   : > { %v1027_v26 = vadd.f32 1.0, %v973_v13  ;;  %v7416_v51 = vpop.eup %5891  ;;  %v2046_v27 = vadd.f32 1.0, %v1992_v31  ;;  %v1510_v58 = vmul.f32 %v7325_v47, %v1456_v15  ;;  %v1727_v37 = vsub.f32 0.0, %v1673_v42 }
 0x1e6   : > { %v1295_v62 = vmul.f32 %v7387_v29, %v1241_v22  ;;  %v1993_v11 = vmul.f32 %v1939_v10, %v7260_v4  ;;  %v1887_v41 = vmul.f32 %v5890_v59, %v1617_v52  ;;  %v1188_v39 = vmul.f32 1.0614054, %v7416_v51 }
 0x1e7   : > { %v1728_v60 = vsub.f32 0.0, %v1674_v33  ;;  %v1564_v1 = vadd.f32 0.2548296, %v1510_v58  ;;  %5895 = vrcp.f32 %v1027_v26  ;;  %v7424_v25 = vadd.f32 %v7356_v18, %v8864_v55 }
 0x1e8   : > { %v1349_v13 = vadd.f32 1.4214138, %v1295_v62  ;;  %v1994_v31 = vmul.f32 %v1940_v36, %v7280_v61  ;;  %vm810_vm8 = vcmp.ge.f32.partialorder %v7317_v46, 0.0  ;;  %v1242_v15 = vadd.f32 -1.4531521, %v1188_v39 }
 0x1e9   : > { %v920_v42 = vand.u32 2147483647, %v7414_v5  ;;  %v5894_v22 = vpop.eup %5893  ;;  %v7430_v4 = vmul.f32 %v2046_v27, %v7199_v6  ;;  %v1618_v59 = vmul.f32 %v7325_v47, %v1564_v1  ;;  %v1813_v52 = vmul.f32 1.442695, %v1727_v37 }
 0x1ea   : > { %v1403_v10 = vmul.f32 %v7387_v29, %v1349_v13  ;;  %v2047_v33 = vadd.f32 1.0, %v1993_v11  ;;  %v1296_v55 = vmul.f32 %v7416_v51, %v1242_v15  ;;  %v1815_v26 = vmul.f32 1.442695, %v1728_v60 }
 0x1eb   : > { %8865 = vst [vmem:[#allocation16_spill] sm:$0xff] %v7430_v4  ;;  %v974_v58 = vmul.f32 0.3275911, %v920_v42  ;;  %v1941_v61 = vsub.f32 1.0, %v1887_v41  ;;  %v1675_v62 = vmul.f32 %v919_v2, %v919_v2  ;;  %v7436_v39 = vmul.f32 0.70710677, %v7424_v25 }
 0x1ec   : > { %v1457_v36 = vadd.f32 -0.28449672, %v1403_v10  ;;  %v2048_v30 = vadd.f32 1.0, %v1994_v31  ;;  %v7441_v6 = vsel %vm810_vm8, 1.0, %v8812_v56  ;;  %v1350_v1 = vadd.f32 1.4214138, %v1296_v55 }
 0x1ed   : > { %v1028_v47 = vadd.f32 1.0, %v974_v58  ;;  %v1888_v37 = vmul.f32 %v5894_v22, %v1618_v59  ;;  %5897 = vpow2.f32 %v1813_v52  ;;  %v921_v11 = vand.u32 2147483647, %v7436_v39 }
 0x1ee   : > { %v1511_v27 = vmul.f32 %v7387_v29, %v1457_v36  ;;  %v1404_v2 = vmul.f32 %v7416_v51, %v1350_v1  ;;  %v7448_v60 = vmul.f32 0.5, %v7360_v28  ;;  %v7451_v46 = vmul.f32 %v2047_v33, %v7218_v63 }
 0x1ef   : > { %5899 = vrcp.f32 %v1028_v47  ;;  %v1995_v13 = vmul.f32 %v1941_v61, %v7308_v16  ;;  %v1729_v31 = vsub.f32 0.0, %v1675_v62  ;;  %v7455_v15 = vmul.f32 %v2048_v30, %v7253_v44  ;;  %v8871_v47 = vld [vmem:[#allocation19_spill] sm:$0xff] }
 0x1f0   : > { %5901 = vpow2.f32 %v1815_v26  ;;  %v1458_v22 = vadd.f32 -0.28449672, %v1404_v2  ;;  %vm811_vm9 = vcmp.ge.f32.partialorder %v7376_v35, 0.0  ;;  %v975_v59 = vmul.f32 0.3275911, %v921_v11 }
 0x1f1   : > { %v7458_v10 = vpop.eup %5895  ;;  %v1942_v52 = vsub.f32 1.0, %v1888_v37  ;;  %v1565_v28 = vadd.f32 0.2548296, %v1511_v27  ;;  %v1676_v55 = vmul.f32 %v920_v42, %v920_v42  ;;  %v8866_v58 = vrot.slane %v7256_v7, 1 }
 0x1f2   : > { %v8867_v63 = vrot.slane %v7194_v49, 1  ;;  %v1512_v33 = vmul.f32 %v7416_v51, %v1458_v22  ;;  %v1189_v30 = vmul.f32 1.0614054, %v7458_v10  ;;  %v1029_v44 = vadd.f32 1.0, %v975_v59 }
 0x1f3   : > { %v8869_v61 = vrot.slane %v7180_v48, 1  ;;  %v2049_v62 = vadd.f32 1.0, %v1995_v13  ;;  %v1817_v1 = vmul.f32 1.442695, %v1729_v31  ;;  %v7476_v37 = vadd.f32 %v7356_v18, %v8871_v47 }
 0x1f4   : > { %v2235_v16 = vsel %vm2195_vm12, %v8867_v63, %v8866_v58  ;;  %v8868_v26 = vmov %v8867_v63  ;;  %v1566_v2 = vadd.f32 0.2548296, %v1512_v33  ;;  %v1243_v22 = vadd.f32 -1.4531521, %v1189_v30 }
 0x1f5   : > { %v2233_v36 = vsel %vm2195_vm12, %v8869_v61, %v8868_v26  ;;  %5903 = vrcp.f32 %v1029_v44  ;;  %v7482_v59 = vsel %vm811_vm9, 1.0, %v8812_v56  ;;  %v7485_v58 = vmul.f32 0.5, %v7392_v34 }
 0x1f6   : > { %v7472_v42 = vpack.c.bf16 %v2235_v16, %v2233_v36  ;;  %vm812_vm10 = vcmp.ge.f32.partialorder %v7414_v5, 0.0  ;;  %v1730_v13 = vsub.f32 0.0, %v1676_v55  ;;  %v1996_v31 = vmul.f32 %v1942_v52, %v7335_v54  ;;  %v8872_v52 = vld [vmem:[#allocation22_spill] sm:$0xff] }
 0x1f7   : > { %v1619_v63 = vmul.f32 %v7387_v29, %v1565_v28  ;;  %v1297_v16 = vmul.f32 %v7458_v10, %v1243_v22  ;;  %v7494_v33 = vmul.f32 0.70710677, %v7476_v37  ;;  %v5898_v35 = vpop.eup %5897  ;;  %v7498_v34 = vmul.f32 %v2049_v62, %v7286_v12 }
 0x1f8   : > { %8870 = vst [vmem:[#allocation18_spill] sm:$0xff] %v7472_v42  ;;  %5163 = vmatmul.mubr.msk.bf16.gmra.mrb[120].mxu0 %vm2341_vm0, %v7472_v42  ;;  %v1620_v55 = vmul.f32 %v7416_v51, %v1566_v2  ;;  %5905 = vpow2.f32 %v1817_v1  ;;  %v1677_v54 = vmul.f32 %v921_v11, %v921_v11  ;;  %v7506_v28 = vadd.f32 %v7356_v18, %v8872_v52 }
 0x1f9   : > { %v7501_v44 = vpop.eup %5899  ;;  %v1351_v26 = vadd.f32 1.4214138, %v1297_v16  ;;  %v922_v29 = vand.u32 2147483647, %v7494_v33  ;;  %v7511_v36 = vsel %vm812_vm10, 1.0, %v8812_v56  ;;  %vm813_vm11 = vcmp.ge.f32.partialorder %v7436_v39, 0.0 }
 0x1fa   : > { %v5902_v61 = vpop.eup %5901  ;;  %v1190_v12 = vmul.f32 1.0614054, %v7501_v44  ;;  %v1819_v51 = vmul.f32 1.442695, %v1730_v13  ;;  %v2050_v62 = vadd.f32 1.0, %v1996_v31  ;;  %v1889_v1 = vmul.f32 %v5898_v35, %v1619_v63  ;;  %v8873_v31 = vld [vmem:[#allocation23_spill] sm:$0xff] }
 0x1fb   : > { %v1405_v11 = vmul.f32 %v7458_v10, %v1351_v26  ;;  %v976_v47 = vmul.f32 0.3275911, %v922_v29  ;;  %v1890_v22 = vmul.f32 %v5902_v61, %v1620_v55  ;;  %v7518_v52 = vmul.f32 0.5, %v7424_v25  ;;  %v7534_v25 = vld [vmem:[%s8730_s3 + $0x30] sm:$0xff]   ;;  %v5751_v35 = vld [vmem:[%s8730_s3] sm:$0xff]  }
 0x1fc   : > { %v1244_v16 = vadd.f32 -1.4531521, %v1190_v12  ;;  %v1731_v30 = vsub.f32 0.0, %v1677_v54  ;;  %v7521_v27 = vmul.f32 0.70710677, %v7506_v28  ;;  %5907 = vpow2.f32 %v1819_v51  ;;  %5254 = vmatprep.subr.bf16.mxu1 %v7534_v25  ;;  %5182 = vmatprep.subr.bf16.mxu0 %v5751_v35 }
 0x1fd   : > { %v1459_v5 = vadd.f32 -0.28449672, %v1405_v11  ;;  %v1030_v41 = vadd.f32 1.0, %v976_v47  ;;  %v7525_v13 = vsel %vm813_vm11, 1.0, %v8812_v56  ;;  %v7529_v63 = vadd.f32 %v7356_v18, %v8873_v31  ;;  %5183 = vmatpush3.bf16.msra.mxu0 %v5751_v35 }
 0x1fe   : > { %v1298_v39 = vmul.f32 %v7501_v44, %v1244_v16  ;;  %v7542_v26 = vmul.f32 %v2050_v62, %v7329_v20  ;;  %v1943_v54 = vsub.f32 1.0, %v1889_v1  ;;  %v1944_v12 = vsub.f32 1.0, %v1890_v22 }
 0x1ff   : > { %v7539_v55 = vpop.eup %5903  ;;  %v1513_v61 = vmul.f32 %v7458_v10, %v1459_v5  ;;  %5909 = vrcp.f32 %v1030_v41  ;;  %v8874_v47 = vrot.slane %v7381_v50, 1  ;;  %v8875_v16 = vrot.slane %v7338_v8, 1 }
 0x200   : > { %v1352_v51 = vadd.f32 1.4214138, %v1298_v39  ;;  %v1191_v11 = vmul.f32 1.0614054, %v7539_v55  ;;  %v1821_v20 = vmul.f32 1.442695, %v1731_v30  ;;  %v1998_v8 = vmul.f32 %v1944_v12, %v7441_v6 }
 0x201   : > { %v2240_v31 = vsel %vm2195_vm12, %v8875_v16, %v8874_v47  ;;  %v1567_v2 = vadd.f32 0.2548296, %v1513_v61  ;;  %v923_v62 = vand.u32 2147483647, %v7521_v27  ;;  %v8876_v1 = vmov %v8875_v16 }
 0x202   : > { %v8877_v41 = vrot.slane %v7297_v43, 1  ;;  %v5906_v5 = vpop.eup %5905  ;;  %v1406_v39 = vmul.f32 %v7501_v44, %v1352_v51  ;;  %v1245_v42 = vadd.f32 -1.4531521, %v1191_v11  ;;  %v7560_v47 = vmul.f32 0.70710677, %v7529_v63 }
 0x203   : > { %v1997_v61 = vmul.f32 %v1943_v54, %v7408_v17  ;;  %v1621_v50 = vmul.f32 %v7458_v10, %v1567_v2  ;;  %v977_v7 = vmul.f32 0.3275911, %v923_v62  ;;  %5911 = vpow2.f32 %v1821_v20  ;;  %v8879_v2 = vld [vmem:[#allocation25_spill] sm:$0xff] }
 0x204   : > { %v2238_v22 = vsel %vm2195_vm12, %v8877_v41, %v8876_v1  ;;  %v1460_v1 = vadd.f32 -0.28449672, %v1406_v39  ;;  %v1299_v35 = vmul.f32 %v7539_v55, %v1245_v42  ;;  %v1678_v41 = vmul.f32 %v922_v29, %v922_v29 }
 0x205   : > { %v7562_v16 = vpack.c.bf16 %v2240_v31, %v2238_v22  ;;  %vm814_vm13 = vcmp.ge.f32.partialorder %v7494_v33, 0.0  ;;  %v1031_v51 = vadd.f32 1.0, %v977_v7  ;;  %v924_v11 = vand.u32 2147483647, %v7560_v47  ;;  %v5752_v7 = vld [vmem:[%s8730_s3 + $0x8] sm:$0xff]  }
 0x206   : > { %v1891_v31 = vmul.f32 %v5906_v5, %v1621_v50  ;;  %v1514_v17 = vmul.f32 %v7501_v44, %v1460_v1  ;;  %v1353_v10 = vadd.f32 1.4214138, %v1299_v35  ;;  %v7576_v6 = vadd.f32 %v7356_v18, %v8879_v2  ;;  %v5908_v12 = vpop.eup %5907  ;;  %5184 = vmatprep.subr.bf16.mxu0 %v5752_v7 }
 0x207   : > { %8878 = vst [vmem:[#allocation19_spill] sm:$0xff] %v7562_v16  ;;  %5166 = vmatprep.mubr.msk.bf16.mxu0 %vm2341_vm0, %v7562_v16  ;;  %v2051_v54 = vadd.f32 1.0, %v1997_v61  ;;  %v7579_v42 = vmul.f32 0.5, %v7476_v37  ;;  %5913 = vrcp.f32 %v1031_v51  ;;  %v978_v29 = vmul.f32 0.3275911, %v924_v11  ;;  %5185 = vmatpush3.bf16.msra.mxu0 %v5752_v7 }
 0x208   : > { %v2052_v20 = vadd.f32 1.0, %v1998_v8  ;;  %v1568_v50 = vadd.f32 0.2548296, %v1514_v17  ;;  %v1407_v22 = vmul.f32 %v7539_v55, %v1353_v10  ;;  %v1732_v5 = vsub.f32 0.0, %v1678_v41  ;;  %5218 = vmatprep.subr.bf16.mxu0 %v7371_v23 }
 0x209   : > { %v7585_v39 = vpop.eup %5909  ;;  %v7590_v61 = vsel %vm814_vm13, 1.0, %v8812_v56  ;;  %v1679_v37 = vmul.f32 %v923_v62, %v923_v62  ;;  %v1032_v1 = vadd.f32 1.0, %v978_v29  ;;  %v7593_v35 = vmul.f32 0.70710677, %v7576_v6 }
 0x20a   : > { %v1945_v51 = vsub.f32 1.0, %v1891_v31  ;;  %v1461_v2 = vadd.f32 -0.28449672, %v1407_v22  ;;  %v1192_v8 = vmul.f32 1.0614054, %v7585_v39  ;;  %v7597_v17 = vmul.f32 0.5, %v7506_v28 }
 0x20b   : > { %v7600_v41 = vmul.f32 %v2051_v54, %v7364_v19  ;;  %v1622_v33 = vmul.f32 %v7501_v44, %v1568_v50  ;;  %5915 = vrcp.f32 %v1032_v1  ;;  %v1680_v62 = vmul.f32 %v924_v11, %v924_v11  ;;  %v8880_v19 = vld [vmem:[#allocation27_spill] sm:$0xff]  ;;  %v7612_v44 = vpop.f32.mrb[102].mxu0 }
 0x20c   : > { %v7605_v10 = vmul.f32 %v2052_v20, %v7411_v0  ;;  %v1515_v31 = vmul.f32 %v7539_v55, %v1461_v2  ;;  %v1246_v29 = vadd.f32 -1.4531521, %v1192_v8  ;;  %v1823_v22 = vmul.f32 1.442695, %v1732_v5  ;;  %8881 = vst [vmem:[#allocation22_spill] sm:$0xff] %v7612_v44  ;;  %v5141_v50 = vpop.f32.mrb[103].mxu0 }
 0x20d   : > { %vm815_vm14 = vcmp.ge.f32.partialorder %v7521_v27, 0.0  ;;  %v1733_v28 = vsub.f32 0.0, %v1679_v37  ;;  %v925_v7 = vand.u32 2147483647, %v7593_v35  ;;  %v618_v54 = vadd.f32 %v7356_v18, %v8880_v19  ;;  %v5912_v5 = vpop.eup %5911 }
 0x20e   : > { %v1999_v11 = vmul.f32 %v1945_v51, %v7482_v59  ;;  %v1569_v23 = vadd.f32 0.2548296, %v1515_v31  ;;  %v1300_v0 = vmul.f32 %v7585_v39, %v1246_v29  ;;  %v7617_v20 = vmul.f32 0.5, %v7529_v63 }
 0x20f   : > { %v1892_v37 = vmul.f32 %v5908_v12, %v1622_v33  ;;  %v1734_v2 = vsub.f32 0.0, %v1680_v62  ;;  %v979_v8 = vmul.f32 0.3275911, %v925_v7  ;;  %5917 = vpow2.f32 %v1823_v22 }
 0x210   : > { %v1354_v19 = vadd.f32 1.4214138, %v1300_v0  ;;  %v7624_v59 = vsel %vm815_vm14, 1.0, %v8812_v56  ;;  %v1825_v63 = vmul.f32 1.442695, %v1733_v28  ;;  %vm816_vm15 = vcmp.ge.f32.partialorder %v7560_v47, 0.0 }
 0x211   : > { %v7626_v51 = vpop.eup %5913  ;;  %v1033_v31 = vadd.f32 1.0, %v979_v8  ;;  %v7629_v29 = vmul.f32 0.70710677, %v618_v54  ;;  %v2053_v12 = vadd.f32 1.0, %v1999_v11  ;;  %v1623_v33 = vmul.f32 %v7539_v55, %v1569_v23 }
 0x212   : > { %v1408_v62 = vmul.f32 %v7585_v39, %v1354_v19  ;;  %v1193_v22 = vmul.f32 1.0614054, %v7626_v51  ;;  %v1946_v0 = vsub.f32 1.0, %v1892_v37  ;;  %v1827_v50 = vmul.f32 1.442695, %v1734_v2 }
 0x213   : > { %5919 = vrcp.f32 %v1033_v31  ;;  %v926_v27 = vand.u32 2147483647, %v7629_v29  ;;  %v1681_v28 = vmul.f32 %v925_v7, %v925_v7  ;;  %v623_v8 = vadd.f32 %v7356_v18, %v7002_v38 }
 0x214   : > { %v1462_v30 = vadd.f32 -0.28449672, %v1408_v62  ;;  %v1247_v1 = vadd.f32 -1.4531521, %v1193_v22  ;;  %5921 = vpow2.f32 %v1825_v63  ;;  %v7642_v55 = vsel %vm816_vm15, 1.0, %v8812_v56 }
 0x215   : > { %v7637_v44 = vpop.eup %5915  ;;  %v7645_v11 = vmul.f32 0.5, %v7576_v6  ;;  %v980_v23 = vmul.f32 0.3275911, %v926_v27  ;;  %v7648_v37 = vmul.f32 %v2053_v12, %v7448_v60  ;;  %v1893_v2 = vmul.f32 %v5912_v5, %v1623_v33 }
 0x216   : > { %v1516_v7 = vmul.f32 %v7585_v39, %v1462_v30  ;;  %vm817_vm1 = vcmp.ge.f32.partialorder %v7593_v35, 0.0  ;;  %v1301_v38 = vmul.f32 %v7626_v51, %v1247_v1  ;;  %v1194_v19 = vmul.f32 1.0614054, %v7637_v44 }
 0x217   : > { %5923 = vpow2.f32 %v1827_v50  ;;  %v1034_v47 = vadd.f32 1.0, %v980_v23  ;;  %v2000_v63 = vmul.f32 %v1946_v0, %v7511_v36  ;;  %v1735_v6 = vsub.f32 0.0, %v1681_v28  ;;  %v7667_v23 = vpop.f32.mrb[104].mxu0 }
 0x218   : > { %v1570_v31 = vadd.f32 0.2548296, %v1516_v7  ;;  %v7655_v62 = vmul.f32 0.70710677, %v623_v8  ;;  %v1355_v22 = vadd.f32 1.4214138, %v1301_v38  ;;  %v1682_v28 = vmul.f32 %v926_v27, %v926_v27 }
 0x219   : > { %v1248_v60 = vadd.f32 -1.4531521, %v1194_v19  ;;  %v7658_v5 = vsel %vm817_vm1, 1.0, %v8812_v56  ;;  %5925 = vrcp.f32 %v1034_v47  ;;  %v5918_v30 = vpop.eup %5917  ;;  %v1947_v1 = vsub.f32 1.0, %v1893_v2  ;;  %8882 = vst [vmem:[#allocation23_spill] sm:$0xff] %v7667_v23 }
 0x21a   : > { %v1624_v12 = vmul.f32 %v7585_v39, %v1570_v31  ;;  %v927_v33 = vand.u32 2147483647, %v7655_v62  ;;  %v1409_v36 = vmul.f32 %v7626_v51, %v1355_v22  ;;  %v7665_v50 = vmul.f32 0.5, %v618_v54  ;;  %v5144_v31 = vpop.f32.mrb[105].mxu0 }
 0x21b   : > { %v1302_v0 = vmul.f32 %v7637_v44, %v1248_v60  ;;  %v2054_v7 = vadd.f32 1.0, %v2000_v63  ;;  %v1829_v38 = vmul.f32 1.442695, %v1735_v6  ;;  %v8883_v47 = vrot.slane %v7451_v46, 1 }
 0x21c   : > { %v981_v19 = vmul.f32 0.3275911, %v927_v33  ;;  %v8884_v2 = vrot.slane %v7430_v4, 1  ;;  %v1894_v22 = vmul.f32 %v5918_v30, %v1624_v12  ;;  %v1463_v16 = vadd.f32 -0.28449672, %v1409_v36 }
 0x21d   : > { %v7674_v35 = vpop.eup %5919  ;;  %v1356_v60 = vadd.f32 1.4214138, %v1302_v0  ;;  %v8885_v54 = vrot.slane %v7455_v15, 1  ;;  %v8886_v27 = vmov %v8883_v47  ;;  %v2001_v6 = vmul.f32 %v1947_v1, %v7525_v13 }
 0x21e   : > { %v2243_v39 = vsel %vm2195_vm12, %v8884_v2, %v8883_v47  ;;  %v1195_v23 = vmul.f32 1.0614054, %v7674_v35  ;;  %v1035_v43 = vadd.f32 1.0, %v981_v19  ;;  %v5922_v47 = vpop.eup %5921  ;;  %v1517_v2 = vmul.f32 %v7626_v51, %v1463_v16 }
 0x21f   : > { %v2245_v63 = vsel %vm2195_vm12, %v8886_v27, %v8885_v54  ;;  %v1410_v30 = vmul.f32 %v7637_v44, %v1356_v60  ;;  %v1736_v12 = vsub.f32 0.0, %v1682_v28  ;;  %v7689_v36 = vadd.f32 %v7356_v18, %v7056_v9 }
 0x220   : > { %v7683_v4 = vpack.c.bf16 %v2245_v63, %v2243_v39  ;;  %v1249_v0 = vadd.f32 -1.4531521, %v1195_v23  ;;  %vm818_vm2 = vcmp.ge.f32.partialorder %v7629_v29, 0.0  ;;  %v7692_v31 = vmul.f32 0.5, %v623_v8 }
 0x221   : > { %5927 = vrcp.f32 %v1035_v43  ;;  %v5924_v13 = vpop.eup %5923  ;;  %v7697_v1 = vmul.f32 %v2054_v7, %v7485_v58  ;;  %v1948_v16 = vsub.f32 1.0, %v1894_v22  ;;  %v1571_v19 = vadd.f32 0.2548296, %v1517_v2  ;;  %v7707_v58 = vpop.f32.mrb[106].mxu0 }
 0x222   : > { %5167 = vmatmul.mubr.msk.bf16.gmra.mrb[124].mxu0 %vm2341_vm0, %v7683_v4  ;;  %v1464_v28 = vadd.f32 -0.28449672, %v1410_v30  ;;  %v2055_v39 = vadd.f32 1.0, %v2001_v6  ;;  %v1303_v9 = vmul.f32 %v7674_v35, %v1249_v0  ;;  %5929 = vpow2.f32 %v1829_v38  ;;  %8887 = vst [vmem:[#allocation25_spill] sm:$0xff] %v7707_v58  ;;  %v5145_v6 = vpop.f32.mrb[107].mxu0 }
 0x223   : > { %v7701_v23 = vmul.f32 0.70710677, %v7689_v36  ;;  %v7703_v8 = vpop.eup %5925  ;;  %v1625_v43 = vmul.f32 %v7626_v51, %v1571_v19  ;;  %v1831_v54 = vmul.f32 1.442695, %v1736_v12  ;;  %v1683_v27 = vmul.f32 %v927_v33, %v927_v33 }
 0x224   : > { %v1518_v60 = vmul.f32 %v7637_v44, %v1464_v28  ;;  %v1357_v7 = vadd.f32 1.4214138, %v1303_v9  ;;  %v7712_v22 = vsel %vm818_vm2, 1.0, %v8812_v56  ;;  %v1196_v38 = vmul.f32 1.0614054, %v7703_v8 }
 0x225   : > { %v631_v63 = vadd.f32 %v7356_v18, %v7079_v57  ;;  %v2002_v51 = vmul.f32 %v1948_v16, %v7590_v61  ;;  %v1895_v2 = vmul.f32 %v5922_v47, %v1625_v43  ;;  %v928_v33 = vand.u32 2147483647, %v7701_v23 }
 0x226   : > { %v1572_v30 = vadd.f32 0.2548296, %v1518_v60  ;;  %v1411_v0 = vmul.f32 %v7674_v35, %v1357_v7  ;;  %v1250_v19 = vadd.f32 -1.4531521, %v1196_v38  ;;  %vm819_vm3 = vcmp.ge.f32.partialorder %v7655_v62, 0.0 }
 0x227   : > { %v7723_v29 = vmul.f32 %v2055_v39, %v7518_v52  ;;  %v1737_v57 = vsub.f32 0.0, %v1683_v27  ;;  %v982_v9 = vmul.f32 0.3275911, %v928_v33  ;;  %5931 = vpow2.f32 %v1831_v54 }
 0x228   : > { %v1626_v28 = vmul.f32 %v7637_v44, %v1572_v30  ;;  %v1465_v6 = vadd.f32 -0.28449672, %v1411_v0  ;;  %v1304_v61 = vmul.f32 %v7703_v8, %v1250_v19  ;;  %v7727_v47 = vmul.f32 0.70710677, %v631_v63 }
 0x229   : > { %v2056_v16 = vadd.f32 1.0, %v2002_v51  ;;  %v1949_v43 = vsub.f32 1.0, %v1895_v2  ;;  %v7730_v60 = vsel %vm819_vm3, 1.0, %v8812_v56  ;;  %v1036_v7 = vadd.f32 1.0, %v982_v9 }
 0x22a   : > { %v1896_v52 = vmul.f32 %v5924_v13, %v1626_v28  ;;  %v1519_v39 = vmul.f32 %v7674_v35, %v1465_v6  ;;  %v1358_v44 = vadd.f32 1.4214138, %v1304_v61  ;;  %v929_v27 = vand.u32 2147483647, %v7727_v47 }
 0x22b   : > { %v7732_v62 = vpop.eup %5927  ;;  %v1833_v30 = vmul.f32 1.442695, %v1737_v57  ;;  %5933 = vrcp.f32 %v1036_v7  ;;  %v634_v13 = vadd.f32 %v7356_v18, %v7086_v45  ;;  %v7743_v28 = vmul.f32 %v2056_v16, %v7579_v42 }
 0x22c   : > { %v1197_v54 = vmul.f32 1.0614054, %v7732_v62  ;;  %v5930_v51 = vpop.eup %5929  ;;  %v1573_v0 = vadd.f32 0.2548296, %v1519_v39  ;;  %v1412_v19 = vmul.f32 %v7703_v8, %v1358_v44  ;;  %vm820_vm4 = vcmp.ge.f32.partialorder %v7701_v23, 0.0 }
 0x22d   : > { %v983_v6 = vmul.f32 0.3275911, %v929_v27  ;;  %v2003_v61 = vmul.f32 %v1949_v43, %v7624_v59  ;;  %v1950_v57 = vsub.f32 1.0, %v1896_v52  ;;  %5935 = vpow2.f32 %v1833_v30 }
 0x22e   : > { %v1251_v9 = vadd.f32 -1.4531521, %v1197_v54  ;;  %v1627_v7 = vmul.f32 %v7674_v35, %v1573_v0  ;;  %v1466_v38 = vadd.f32 -0.28449672, %v1412_v19  ;;  %v7750_v44 = vmul.f32 0.5, %v7689_v36 }
 0x22f   : > { %v1684_v45 = vmul.f32 %v928_v33, %v928_v33  ;;  %v7753_v16 = vmul.f32 0.5, %v631_v63  ;;  %v1037_v54 = vadd.f32 1.0, %v983_v6  ;;  %v7759_v35 = vsel %vm820_vm4, 1.0, %v8812_v56 }
 0x230   : > { %v1305_v39 = vmul.f32 %v7732_v62, %v1251_v9  ;;  %v1897_v2 = vmul.f32 %v5930_v51, %v1627_v7  ;;  %v1520_v42 = vmul.f32 %v7703_v8, %v1466_v38  ;;  %v7761_v43 = vmul.f32 0.70710677, %v634_v13 }
 0x231   : > { %v5932_v52 = vpop.eup %5931  ;;  %v2057_v36 = vadd.f32 1.0, %v2003_v61  ;;  %v2004_v33 = vmul.f32 %v1950_v57, %v7642_v55  ;;  %5937 = vrcp.f32 %v1037_v54  ;;  %v1738_v51 = vsub.f32 0.0, %v1684_v45 }
 0x232   : > { %v1359_v59 = vadd.f32 1.4214138, %v1305_v39  ;;  %v1574_v30 = vadd.f32 0.2548296, %v1520_v42  ;;  %vm821_vm5 = vcmp.ge.f32.partialorder %v7727_v47, 0.0  ;;  %v1951_v0 = vsub.f32 1.0, %v1897_v2 }
 0x233   : > { %v1685_v19 = vmul.f32 %v929_v27, %v929_v27  ;;  %v8888_v9 = vrot.slane %v7542_v26, 1  ;;  %v8889_v6 = vrot.slane %v7498_v34, 1  ;;  %v930_v7 = vand.u32 2147483647, %v7761_v43 }
 0x234   : > { %v1413_v38 = vmul.f32 %v7732_v62, %v1359_v59  ;;  %v1628_v23 = vmul.f32 %v7703_v8, %v1574_v30  ;;  %v8890_v39 = vrot.slane %v7600_v41, 1  ;;  %v639_v8 = vadd.f32 %v7356_v18, %v7187_v32 }
 0x235   : > { %v2248_v61 = vsel %vm2195_vm12, %v8889_v6, %v8888_v9  ;;  %v7773_v55 = vpop.eup %5933  ;;  %v8891_v45 = vmov %v8888_v9  ;;  %v7784_v27 = vmul.f32 %v2057_v36, %v7597_v17  ;;  %v2058_v42 = vadd.f32 1.0, %v2004_v33 }
 0x236   : > { %v1467_v57 = vadd.f32 -0.28449672, %v1413_v38  ;;  %v2250_v2 = vsel %vm2195_vm12, %v8891_v45, %v8890_v39  ;;  %v1198_v54 = vmul.f32 1.0614054, %v7773_v55  ;;  %v1898_v30 = vmul.f32 %v5932_v52, %v1628_v23 }
 0x237   : > { %v7787_v59 = vpack.c.bf16 %v2250_v2, %v2248_v61  ;;  %v1835_v9 = vmul.f32 1.442695, %v1738_v51  ;;  %v984_v6 = vmul.f32 0.3275911, %v930_v7  ;;  %v1739_v12 = vsub.f32 0.0, %v1685_v19  ;;  %v5936_v17 = vpop.eup %5935 }
 0x238   : > { %v1521_v38 = vmul.f32 %v7732_v62, %v1467_v57  ;;  %v1252_v63 = vadd.f32 -1.4531521, %v1198_v54  ;;  %v7790_v58 = vmul.f32 0.5, %v634_v13  ;;  %v7794_v32 = vmul.f32 0.70710677, %v639_v8 }
 0x239   : > { %5170 = vmatprep.mubr.msk.bf16.mxu0 %vm2341_vm0, %v7787_v59  ;;  %v2005_v36 = vmul.f32 %v1951_v0, %v7658_v5  ;;  %v7800_v52 = vsel %vm821_vm5, 1.0, %v8812_v56  ;;  %v1038_v51 = vadd.f32 1.0, %v984_v6  ;;  %v2259_v23 = vrot.slane %v7784_v27, 1 }
 0x23a   : > { %v1575_v33 = vadd.f32 0.2548296, %v1521_v38  ;;  %v7805_v19 = vmul.f32 %v2058_v42, %v7617_v20  ;;  %v1306_v61 = vmul.f32 %v7773_v55, %v1252_v63  ;;  %v1952_v57 = vsub.f32 1.0, %v1898_v30 }
 0x23b   : > { %5939 = vrcp.f32 %v1038_v51  ;;  %v7811_v5 = vadd.f32 %v7356_v18, %v7201_v53  ;;  %v7813_v47 = vpop.eup %5937  ;;  %v1837_v45 = vmul.f32 1.442695, %v1739_v12  ;;  %v931_v2 = vand.u32 2147483647, %v7794_v32 }
 0x23c   : > { %v1629_v39 = vmul.f32 %v7732_v62, %v1575_v33  ;;  %v1360_v0 = vadd.f32 1.4214138, %v1306_v61  ;;  %5941 = vpow2.f32 %v1835_v9  ;;  %v2059_v54 = vadd.f32 1.0, %v2005_v36 }
 0x23d   : > { %v1199_v20 = vmul.f32 1.0614054, %v7813_v47  ;;  %vm822_vm6 = vcmp.ge.f32.partialorder %v7761_v43, 0.0  ;;  %v1686_v63 = vmul.f32 %v930_v7, %v930_v7  ;;  %v985_v53 = vmul.f32 0.3275911, %v931_v2 }
 0x23e   : > { %v1899_v42 = vmul.f32 %v5936_v17, %v1629_v39  ;;  %v1414_v30 = vmul.f32 %v7773_v55, %v1360_v0  ;;  %v2006_v6 = vmul.f32 %v1952_v57, %v7712_v22  ;;  %v7823_v12 = vmul.f32 0.70710677, %v7811_v5 }
 0x23f   : > { %v1253_v9 = vadd.f32 -1.4531521, %v1199_v20  ;;  %5943 = vpow2.f32 %v1837_v45  ;;  %v7826_v33 = vsel %vm822_vm6, 1.0, %v8812_v56  ;;  %v1039_v43 = vadd.f32 1.0, %v985_v53 }
 0x240   : > { %v1468_v36 = vadd.f32 -0.28449672, %v1414_v30  ;;  %v7829_v7 = vmul.f32 %v2059_v54, %v7645_v11  ;;  %v1740_v51 = vsub.f32 0.0, %v1686_v63  ;;  %v7832_v61 = vmul.f32 0.5, %v639_v8 }
 0x241   : > { %v1307_v17 = vmul.f32 %v7813_v47, %v1253_v9  ;;  %v1953_v39 = vsub.f32 1.0, %v1899_v42  ;;  %5945 = vrcp.f32 %v1039_v43  ;;  %v932_v57 = vand.u32 2147483647, %v7823_v12 }
 0x242   : > { %v1522_v22 = vmul.f32 %v7773_v55, %v1468_v36  ;;  %v2060_v0 = vadd.f32 1.0, %v2006_v6  ;;  %v8892_v20 = vrot.slane %v7648_v37, 1  ;;  %v8893_v30 = vrot.slane %v7605_v10, 1 }
 0x243   : > { %v1361_v45 = vadd.f32 1.4214138, %v1307_v17  ;;  %v8894_v54 = vrot.slane %v7697_v1, 1  ;;  %v1687_v53 = vmul.f32 %v931_v2, %v931_v2  ;;  %v986_v9 = vmul.f32 0.3275911, %v932_v57 }
 0x244   : > { %v2253_v11 = vsel %vm2195_vm12, %v8893_v30, %v8892_v20  ;;  %v8895_v63 = vmov %v8892_v20  ;;  %v1576_v42 = vadd.f32 0.2548296, %v1522_v22  ;;  %vm823_vm7 = vcmp.ge.f32.partialorder %v7794_v32, 0.0 }
 0x245   : > { %v2255_v8 = vsel %vm2195_vm12, %v8895_v63, %v8894_v54  ;;  %v7848_v43 = vpop.eup %5939  ;;  %v1415_v17 = vmul.f32 %v7813_v47, %v1361_v45  ;;  %v7855_v20 = vadd.f32 %v7356_v18, %v7302_v14  ;;  %v2007_v54 = vmul.f32 %v1953_v39, %v7730_v60 }
 0x246   : > { %v7846_v36 = vpack.c.bf16 %v2255_v8, %v2253_v11  ;;  %v5942_v30 = vpop.eup %5941  ;;  %v1630_v2 = vmul.f32 %v7773_v55, %v1576_v42  ;;  %v1200_v22 = vmul.f32 1.0614054, %v7848_v43  ;;  %v1040_v11 = vadd.f32 1.0, %v986_v9 }
 0x247   : > { %v7864_v45 = vmul.f32 %v2060_v0, %v7665_v50  ;;  %v1469_v8 = vadd.f32 -0.28449672, %v1415_v17  ;;  %v1839_v38 = vmul.f32 1.442695, %v1740_v51  ;;  %v1741_v6 = vsub.f32 0.0, %v1687_v53 }
 0x248   : > { %5171 = vmatmul.mubr.msk.bf16.gmra.mrb[128].mxu0 %vm2341_vm0, %v7846_v36  ;;  %v1900_v14 = vmul.f32 %v5942_v30, %v1630_v2  ;;  %v1254_v62 = vadd.f32 -1.4531521, %v1200_v22  ;;  %5947 = vrcp.f32 %v1040_v11  ;;  %v7870_v55 = vsel %vm823_vm7, 1.0, %v8812_v56 }
 0x249   : > { %v1523_v60 = vmul.f32 %v7813_v47, %v1469_v8  ;;  %v7873_v39 = vmul.f32 0.70710677, %v7855_v20  ;;  %v7877_v50 = vadd.f32 %v7356_v18, %v7314_v40  ;;  %v5944_v0 = vpop.eup %5943  ;;  %v2061_v51 = vadd.f32 1.0, %v2007_v54 }
 0x24a   : > { %v1954_v42 = vsub.f32 1.0, %v1900_v14  ;;  %v1308_v53 = vmul.f32 %v7848_v43, %v1254_v62  ;;  %v1688_v9 = vmul.f32 %v932_v57, %v932_v57  ;;  %vm2772_vm8 = vcmask 1045504  }
 0x24b   : > { %v1577_v32 = vadd.f32 0.2548296, %v1523_v60  ;;  %v933_v2 = vand.u32 2147483647, %v7873_v39  ;;  %v7883_v22 = vpop.eup %5945  ;;  %5949 = vpow2.f32 %v1839_v38  ;;  %v1841_v40 = vmul.f32 1.442695, %v1741_v6 }
 0x24c   : > { %v1362_v11 = vadd.f32 1.4214138, %v1308_v53  ;;  %v7886_v18 = vmul.f32 0.70710677, %v7877_v50  ;;  %v2008_v54 = vmul.f32 %v1954_v42, %v7759_v35  ;;  %v1201_v57 = vmul.f32 1.0614054, %v7883_v22 }
 0x24d   : > { %v1631_v62 = vmul.f32 %v7813_v47, %v1577_v32  ;;  %v987_v8 = vmul.f32 0.3275911, %v933_v2  ;;  %v7892_v14 = vmul.f32 %v2061_v51, %v7692_v31  ;;  %v1742_v63 = vsub.f32 0.0, %v1688_v9 }
 0x24e   : > { %v1416_v60 = vmul.f32 %v7848_v43, %v1362_v11  ;;  %v934_v53 = vand.u32 2147483647, %v7886_v18  ;;  %v1255_v6 = vadd.f32 -1.4531521, %v1201_v57  ;;  %v1689_v17 = vmul.f32 %v933_v2, %v933_v2 }
 0x24f   : > { %v1901_v38 = vmul.f32 %v5944_v0, %v1631_v62  ;;  %v1041_v30 = vadd.f32 1.0, %v987_v8  ;;  %5951 = vpow2.f32 %v1841_v40  ;;  %v8896_v47 = vrot.slane %v7743_v28, 1 }
 0x250   : > { %v1470_v13 = vadd.f32 -0.28449672, %v1416_v60  ;;  %v988_v35 = vmul.f32 0.3275911, %v934_v53  ;;  %v2062_v31 = vadd.f32 1.0, %v2008_v54  ;;  %v1309_v32 = vmul.f32 %v7883_v22, %v1255_v6 }
 0x251   : > { %v2260_v42 = vsel %vm2195_vm12, %v8896_v47, %v2259_v23  ;;  %v1955_v51 = vsub.f32 1.0, %v1901_v38  ;;  %5953 = vrcp.f32 %v1041_v30  ;;  %v1843_v11 = vmul.f32 1.442695, %v1742_v63 }
 0x252   : > { %v7902_v9 = vpop.eup %5947  ;;  %v1524_v0 = vmul.f32 %v7848_v43, %v1470_v13  ;;  %v1042_v2 = vadd.f32 1.0, %v988_v35  ;;  %v8897_v40 = vmov %v8896_v47  ;;  %v8898_v62 = vrot.slane %v7723_v29, 1 }
 0x253   : > { %v2009_v8 = vmul.f32 %v1955_v51, %v7800_v52  ;;  %v1363_v23 = vadd.f32 1.4214138, %v1309_v32  ;;  %v1202_v54 = vmul.f32 1.0614054, %v7902_v9  ;;  %v1743_v60 = vsub.f32 0.0, %v1689_v17 }
 0x254   : > { %v2258_v57 = vsel %vm2195_vm12, %v8898_v62, %v8897_v40  ;;  %v1578_v38 = vadd.f32 0.2548296, %v1524_v0  ;;  %5955 = vrcp.f32 %v1042_v2  ;;  %v1690_v30 = vmul.f32 %v934_v53, %v934_v53 }
 0x255   : > { %v7912_v6 = vpack.c.bf16 %v2260_v42, %v2258_v57  ;;  %v7915_v13 = vmul.f32 %v2062_v31, %v7750_v44  ;;  %v1417_v63 = vmul.f32 %v7883_v22, %v1363_v23  ;;  %v1256_v35 = vadd.f32 -1.4531521, %v1202_v54  ;;  %v5950_v51 = vpop.eup %5949  ;;  %v7934_v31 = vld [vmem:[%s8729_s2] ss:$0 sm:$0xff] }
 0x256   : > { %v8900_v47 = vrot.slane %v7743_v28, 2  ;;  %v8901_v40 = vrot.slane %v7723_v29, 2  ;;  %v1632_v17 = vmul.f32 %v7848_v43, %v1578_v38  ;;  %v1744_v32 = vsub.f32 0.0, %v1690_v30  ;;  %8904 = vst [vmem:[#allocation39_spill] sm:$0xff] %v7934_v31 }
 0x257   : > { %8899 = vst [vmem:[#allocation27_spill] sm:$0xff] %v7912_v6  ;;  %5174 = vmatprep.mubr.msk.bf16.mxu0 %vm2341_vm0, %v7912_v6  ;;  %v8902_v53 = vrot.slane %v7784_v27, 2  ;;  %v7938_v0 = vadd.f32 %v7934_v31, %v7378_v21  ;;  %v1471_v43 = vadd.f32 -0.28449672, %v1417_v63  ;;  %v1310_v2 = vmul.f32 %v7902_v9, %v1256_v35 }
 0x258   : > { %v2835_v52 = vsel %vm2772_vm8, %v8901_v40, %v8900_v47  ;;  %v8903_v44 = vmov %v8900_v47  ;;  %v1845_v62 = vmul.f32 1.442695, %v1743_v60  ;;  %v2266_v27 = vrot.slane %v7892_v14, 1 }
 0x259   : > { %v2837_v42 = vsel %vm2772_vm8, %v8903_v44, %v8902_v53  ;;  %v2063_v23 = vadd.f32 1.0, %v2009_v8  ;;  %v1902_v54 = vmul.f32 %v5950_v51, %v1632_v17  ;;  %v7945_v38 = vmul.f32 0.70710677, %v7938_v0  ;;  %v5952_v63 = vpop.eup %5951 }
 0x25a   : > { %v7941_v57 = vpack.c.bf16 %v2837_v42, %v2835_v52  ;;  %v2843_v30 = vrot.slane %v7892_v14, 2  ;;  %v1525_v47 = vmul.f32 %v7883_v22, %v1471_v43  ;;  %v1364_v40 = vadd.f32 1.4214138, %v1310_v2 }
 0x25b   : > { %v1847_v21 = vmul.f32 1.442695, %v1744_v32  ;;  %v2267_v60 = vrot.slane %v7915_v13, 1  ;;  %v1956_v35 = vsub.f32 1.0, %v1902_v54  ;;  %5957 = vpow2.f32 %v1843_v11  ;;  %v7953_v52 = vpop.eup %5953 }
 0x25c   : > { %8905 = vst [vmem:[#allocation40_spill] sm:$0xff] %v7941_v57  ;;  %5246 = vmatprep.mubr.msk.bf16.mxu1 %vm2341_vm0, %v7941_v57  ;;  %v935_v8 = vand.u32 2147483647, %v7945_v38  ;;  %v2844_v51 = vrot.slane %v7915_v13, 2  ;;  %v1579_v17 = vadd.f32 0.2548296, %v1525_v47  ;;  %v1418_v53 = vmul.f32 %v7902_v9, %v1364_v40 }
 0x25d   : > { %5959 = vpow2.f32 %v1845_v62  ;;  %v2117_v32 = vmul.f32 %v2063_v23, %v7753_v16  ;;  %v2010_v44 = vmul.f32 %v1956_v35, %v7826_v33  ;;  %v1203_v42 = vmul.f32 1.0614054, %v7953_v52 }
 0x25e   : > { %v989_v43 = vmul.f32 0.3275911, %v935_v8  ;;  %v1633_v2 = vmul.f32 %v7883_v22, %v1579_v17  ;;  %vm824_vm9 = vcmp.ge.f32.partialorder %v7823_v12, 0.0  ;;  %v1472_v11 = vadd.f32 -0.28449672, %v1418_v53  ;;  %v7967_v62 = vpop.eup %5955 }
 0x25f   : > { %5961 = vpow2.f32 %v1847_v21  ;;  %v8906_v54 = vrot.slane %v7864_v45, 1  ;;  %v8907_v47 = vrot.slane %v7829_v7, 1  ;;  %v2064_v16 = vadd.f32 1.0, %v2010_v44 }
 0x260   : > { %v1257_v23 = vadd.f32 -1.4531521, %v1203_v42  ;;  %v1043_v33 = vadd.f32 1.0, %v989_v43  ;;  %v8909_v57 = vrot.slane %v7805_v19, 1  ;;  %v1903_v17 = vmul.f32 %v5952_v63, %v1633_v2 }
 0x261   : > { %v2265_v40 = vsel %vm2195_vm12, %v8907_v47, %v8906_v54  ;;  %v8908_v35 = vmov %v8907_v47  ;;  %v1526_v21 = vmul.f32 %v7902_v9, %v1472_v11  ;;  %v1204_v53 = vmul.f32 1.0614054, %v7967_v62 }
 0x262   : > { %v2263_v22 = vsel %vm2195_vm12, %v8909_v57, %v8908_v35  ;;  %v2269_v6 = vrot.slane %v2117_v32, 1  ;;  %v2846_v54 = vrot.slane %v2117_v32, 2  ;;  %v1311_v47 = vmul.f32 %v7953_v52, %v1257_v23 }
 0x263   : > { %v7976_v31 = vpack.c.bf16 %v2265_v40, %v2263_v22  ;;  %5963 = vrcp.f32 %v1043_v33  ;;  %v1957_v44 = vsub.f32 1.0, %v1903_v17  ;;  %v1580_v42 = vadd.f32 0.2548296, %v1526_v21 }
 0x264   : > { %v1258_v43 = vadd.f32 -1.4531521, %v1204_v53  ;;  %v8910_v57 = vrot.slane %v7864_v45, 2  ;;  %v8911_v63 = vrot.slane %v7829_v7, 2  ;;  %v7987_v11 = vmul.f32 %v2064_v16, %v7790_v58  ;;  %v5750_v58 = vld [vmem:[%s8730_s3 + $0x38] sm:$0xff]  }
 0x265   : > { %5175 = vmatmul.mubr.msk.bf16.gmra.mrb[132].mxu0 %vm2341_vm0, %v7976_v31  ;;  %v1365_v40 = vadd.f32 1.4214138, %v1311_v47  ;;  %v1691_v32 = vmul.f32 %v935_v8, %v935_v8  ;;  %v8913_v33 = vrot.slane %v7805_v19, 2  ;;  %v2011_v22 = vmul.f32 %v1957_v44, %v7870_v55  ;;  %v5958_v16 = vpop.eup %5957 }
 0x266   : > { %v2842_v2 = vsel %vm2772_vm8, %v8911_v63, %v8910_v57  ;;  %v8912_v23 = vmov %v8911_v63  ;;  %v1634_v17 = vmul.f32 %v7902_v9, %v1580_v42  ;;  %v1312_v45 = vmul.f32 %v7967_v62, %v1258_v43 }
 0x267   : > { %v2840_v35 = vsel %vm2772_vm8, %v8913_v33, %v8912_v23  ;;  %v1419_v8 = vmul.f32 %v7953_v52, %v1365_v40  ;;  %v2268_v53 = vsel %vm2195_vm12, %v2266_v27, %v2267_v60  ;;  %v2270_v47 = vsel %vm2195_vm12, %v2267_v60, %v2269_v6  ;;  %v5960_v55 = vpop.eup %5959  ;;  %v8023_v23 = vld [vmem:[%s8730_s3 + $0x40] sm:$0xff]  }
 0x268   : > { %v7997_v21 = vpack.c.bf16 %v2842_v2, %v2840_v35  ;;  %v2845_v57 = vsel %vm2772_vm8, %v2843_v30, %v2844_v51  ;;  %v2065_v44 = vadd.f32 1.0, %v2011_v22  ;;  %v1904_v9 = vmul.f32 %v5958_v16, %v1634_v17 }
 0x269   : > { %v1366_v42 = vadd.f32 1.4214138, %v1312_v45  ;;  %v8008_v43 = vpack.c.bf16 %v2270_v47, %v2268_v53  ;;  %v1473_v63 = vadd.f32 -0.28449672, %v1419_v8  ;;  %v2847_v2 = vsel %vm2772_vm8, %v2844_v51, %v2846_v54  ;;  %v5962_v40 = vpop.eup %5961 }
 0x26a   : > { %5247 = vmatmul.mubr.msk.bf16.vlgmr.msra.gmra.mrb[0].mxu1 %vm2341_vm0, %v7997_v21  ;;  %v8013_v27 = vmul.f32 %v2065_v44, %v7832_v61  ;;  %v1958_v6 = vsub.f32 1.0, %v1904_v9  ;;  %v8018_v60 = vpack.c.bf16 %v2847_v2, %v2845_v57  ;;  %v878_v61 = vsel %vm824_vm9, 1.0, %v8812_v56 }
 0x26b   : > { %5255 = vmatpush3.bf16.msra.mxu1 %v7534_v25  ;;  %v1420_v30 = vmul.f32 %v7967_v62, %v1366_v42  ;;  %5178 = vmatprep.mubr.msk.bf16.mxu0 %vm2341_vm0, %v8008_v43  ;;  %v2271_v25 = vrot.slane %v7987_v11, 1  ;;  %v1527_v51 = vmul.f32 %v7953_v52, %v1473_v63  ;;  %v1745_v54 = vsub.f32 0.0, %v1691_v32 }
 0x26c   : > { %5256 = vmatprep.subr.bf16.mxu1 %v5750_v58  ;;  %v2272_v33 = vrot.slane %v8013_v27, 1  ;;  %v2849_v35 = vrot.slane %v8013_v27, 2  ;;  %v2012_v22 = vmul.f32 %v1958_v6, %v878_v61  ;;  %5250 = vmatprep.mubr.msk.bf16.mxu1 %vm2341_vm0, %v8018_v60  ;;  %v2848_v16 = vrot.slane %v7987_v11, 2 }
 0x26d   : > { %v1474_v17 = vadd.f32 -0.28449672, %v1420_v30  ;;  %v5964_v45 = vpop.eup %5963  ;;  %v716_v8 = vmul.f32 0.5, %v7811_v5  ;;  %v1581_v53 = vadd.f32 0.2548296, %v1527_v51  ;;  %vm825_vm10 = vcmp.ge.f32.partialorder %v7873_v39, 0.0 }
 0x26e   : > { %v2066_v12 = vadd.f32 1.0, %v2012_v22  ;;  %v1205_v32 = vmul.f32 1.0614054, %v5964_v45  ;;  %v2273_v57 = vsel %vm2195_vm12, %v2271_v25, %v2272_v33  ;;  %v1849_v9 = vmul.f32 1.442695, %v1745_v54 }
 0x26f   : > { %5257 = vmatpush3.bf16.msra.mxu1 %v5750_v58  ;;  %v1528_v47 = vmul.f32 %v7967_v62, %v1474_v17  ;;  %v1635_v44 = vmul.f32 %v7953_v52, %v1581_v53  ;;  %v2850_v42 = vsel %vm2772_vm8, %v2848_v16, %v2849_v35  ;;  %vm826_vm11 = vcmp.ge.f32.partialorder %v7886_v18, 0.0 }
 0x270   : > { %5290 = vmatprep.subr.bf16.mxu1 %v8023_v23  ;;  %v2120_v63 = vmul.f32 %v2066_v12, %v716_v8  ;;  %v1259_v5 = vadd.f32 -1.4531521, %v1205_v32  ;;  %v879_v51 = vsel %vm825_vm10, 1.0, %v8812_v56  ;;  %5965 = vpow2.f32 %v1849_v9  ;;  %v8915_v12 = vld [vmem:[#allocation3_spill] sm:$0xff]  ;;  %v8916_v32 = vld [vmem:[#allocation9_spill] sm:$0xff] }
 0x271   : > { %v1582_v2 = vadd.f32 0.2548296, %v1528_v47  ;;  %v1905_v6 = vmul.f32 %v5960_v55, %v1635_v44  ;;  %v880_v16 = vsel %vm826_vm11, 1.0, %v8812_v56  ;;  %v8917_v44 = vld [vmem:[#allocation10_spill] sm:$0xff]  ;;  %vm827_vm13 = vcmp.ge.f32.partialorder %v7945_v38, 0.0 }
 0x272   : > { %v2274_v58 = vrot.slane %v2120_v63, 1  ;;  %v2851_v30 = vrot.slane %v2120_v63, 2  ;;  %v1313_v25 = vmul.f32 %v5964_v45, %v1259_v5  ;;  %v2128_v9 = vpack.c.bf16 %v8917_v44, %v8916_v32  ;;  %v8921_v38 = vld [vmem:[#allocation14_spill] sm:$0xff] }
 0x273   : > { %v1636_v61 = vmul.f32 %v7967_v62, %v1582_v2  ;;  %v1959_v22 = vsub.f32 1.0, %v1905_v6  ;;  %v8914_v62 = vld [vmem:[#allocation2_spill] sm:$0xff]  ;;  %v718_v2 = vmul.f32 0.5, %v7877_v50  ;;  %v8919_v50 = vld [vmem:[#allocation15_spill] sm:$0xff] }
 0x274   : > { %v1367_v54 = vadd.f32 1.4214138, %v1313_v25  ;;  %v2275_v17 = vsel %vm2195_vm12, %v2272_v33, %v2274_v58  ;;  %v2852_v39 = vsel %vm2772_vm8, %v2849_v35, %v2851_v30  ;;  %v2127_v47 = vpack.c.bf16 %v8915_v12, %v8914_v62  ;;  %v5754_v30 = vld [vmem:[%s8730_s3 + $0x48] sm:$0xff]  }
 0x275   : > { %v1906_v52 = vmul.f32 %v5962_v40, %v1636_v61  ;;  %v8048_v55 = vpack.c.bf16 %v2275_v17, %v2273_v57  ;;  %v8050_v18 = vpack.c.bf16 %v2852_v39, %v2850_v42  ;;  %v2013_v40 = vmul.f32 %v1959_v22, %v879_v51 }
 0x276   : > { %v1421_v53 = vmul.f32 %v5964_v45, %v1367_v54  ;;  %v717_v42 = vmul.f32 0.5, %v7855_v20  ;;  %v8918_v20 = vld [vmem:[#allocation8_spill] sm:$0xff]  ;;  %v8077_v22 = vpack.c.bf16 %v8919_v50, %v6753_v3  ;;  %v881_v39 = vsel %vm827_vm13, 1.0, %v8812_v56 }
 0x277   : > { %v1960_v8 = vsub.f32 1.0, %v1906_v52  ;;  %5179 = vmatmul.mubr.msk.bf16.gmra.mrb[136].mxu0 %vm2341_vm0, %v8048_v55  ;;  %5251 = vmatmul.mubr.msk.bf16.gmra.mrb[4].mxu1 %vm2341_vm0, %v8050_v18  ;;  %v2067_v63 = vadd.f32 1.0, %v2013_v40  ;;  %v8920_v52 = vld [vmem:[#allocation6_spill] sm:$0xff] }
 0x278   : > { %v1475_v35 = vadd.f32 -0.28449672, %v1421_v53  ;;  %5186 = vmatprep.mubr.msk.bf16.mxu0 %vm2341_vm0, %v2127_v47  ;;  %5258 = vmatprep.mubr.msk.bf16.mxu1 %vm2341_vm0, %v2128_v9  ;;  %v2784_v54 = vrot.slane %v8920_v52, 2  ;;  %v5982_v40 = vld [vmem:[%s8730_s3 + $0x20] sm:$0xff]  }
 0x279   : > { %v2014_v33 = vmul.f32 %v1960_v8, %v880_v16  ;;  %v8068_v25 = vmul.f32 %v2067_v63, %v717_v42  ;;  %v8089_v16 = vpack.c.bf16 %v7915_v13, %v7892_v14  ;;  %v8094_v8 = vld [vmem:[%s8730_s3 + $0x50] sm:$0xff]   ;;  %v5983_v13 = vld [vmem:[%s8730_s3 + $0x28] sm:$0xff]  }
 0x27a   : > { %v1529_v57 = vmul.f32 %v5964_v45, %v1475_v35  ;;  %v5966_v58 = vpop.eup %5965 }
 0x27b   : > { %v2068_v5 = vadd.f32 1.0, %v2014_v33  ;;  %8922 = vst [vmem:[#allocation2_spill] sm:$0xff] %v8089_v16 }
 0x27c   : > { %v1583_v6 = vadd.f32 0.2548296, %v1529_v57 }
 0x27d   : > { %v8070_v51 = vmul.f32 %v2068_v5, %v718_v2  ;;  %v8925_v2 = vld [vmem:[#allocation26_spill] sm:$0xff]  ;;  %v8926_v5 = vld [vmem:[#allocation29_spill] sm:$0xff] }
 0x27e   : > { %v1637_v61 = vmul.f32 %v5964_v45, %v1583_v6  ;;  %v2786_v45 = vrot.slane %v8921_v38, 2  ;;  %v8121_v6 = vpack.c.bf16 %v8926_v5, %v8925_v2 }
 0x27f   : > { %5187 = vmatmul.mubr.msk.bf16.vlgmr.msra.gmra.mrb[108].mxu0 %vm2341_vm0, %v2128_v9  ;;  %5259 = vmatmul.mubr.msk.bf16.vlgmr.msra.gmra.mrb[8].mxu1 %vm2341_vm0, %v8918_v20  ;;  %v8099_v9 = vpack.c.bf16 %v8013_v27, %v7987_v11  ;;  %v8106_v14 = vpack.c.bf16 %v8070_v51, %v8068_v25  ;;  %v719_v11 = vmul.f32 0.5, %v7938_v0  ;;  %v8924_v27 = vld [vmem:[#allocation20_spill] sm:$0xff] }
 0x280   : > { %v1907_v17 = vmul.f32 %v5966_v58, %v1637_v61  ;;  %5291 = vmatpush3.bf16.msra.mxu1 %v8023_v23  ;;  %5190 = vmatprep.mubr.msk.bf16.mxu0 %vm2341_vm0, %v8918_v20  ;;  %v8923_v23 = vld [vmem:[#allocation5_spill] sm:$0xff]  ;;  %v8115_v57 = vpack.c.bf16 %v8924_v27, %v6838_v24  ;;  %v2787_v42 = vsel %vm2772_vm8, %v2784_v54, %v2786_v45  ;;  %v3377_v61 = vrot.slane %v8070_v51, 1 }
 0x281   : > { %5262 = vmatprep.mubr.msk.bf16.mxu1 %vm2341_vm0, %v8077_v22  ;;  %5292 = vmatprep.subr.bf16.mxu1 %v5754_v30  ;;  %v2783_v53 = vrot.slane %v8923_v23, 2  ;;  %v8141_v45 = vpack.c.bf16 %v7194_v49, %v7180_v48 }
 0x282   : > { %v1961_v47 = vsub.f32 1.0, %v1907_v17  ;;  %5219 = vmatpush3.bf16.msra.mxu0 %v5982_v40  ;;  %v8928_v17 = vld [vmem:[#allocation31_spill] sm:$0xff]  ;;  %v8930_v40 = vld [vmem:[#allocation36_spill] sm:$0xff] }
 0x283   : > { %5220 = vmatprep.subr.bf16.mxu0 %v5983_v13  ;;  %v2785_v35 = vsel %vm2772_vm8, %v2783_v53, %v2784_v54  ;;  %v8927_v54 = vld [vmem:[#allocation12_spill] sm:$0xff] }
 0x284   : > { %v2015_v33 = vmul.f32 %v1961_v47, %v881_v39  ;;  %5293 = vmatpush3.bf16.msra.mxu1 %v5754_v30  ;;  %v8123_v58 = vpack.c.bf16 %v2787_v42, %v2785_v35  ;;  %v3376_v30 = vrot.slane %v8068_v25, 1  ;;  %v8137_v38 = vpack.c.bf16 %v8928_v17, %v8927_v54  ;;  %v8929_v47 = vld [vmem:[#allocation35_spill] sm:$0xff] }
 0x285   : > { %5326 = vmatprep.subr.bf16.mxu1 %v8094_v8  ;;  %v8177_v42 = vpack.c.bf16 %v7648_v37, %v7605_v10 }
 0x286   : > { %v2069_v63 = vadd.f32 1.0, %v2015_v33  ;;  %5221 = vmatpush3.bf16.msra.mxu0 %v5983_v13  ;;  %v3378_v39 = vsel %vm2195_vm12, %v3376_v30, %v3377_v61  ;;  %v8157_v13 = vpack.c.bf16 %v8930_v40, %v8929_v47  ;;  %v8931_v33 = vld [vmem:[#allocation16_spill] sm:$0xff]  ;;  %v8193_v30 = vpack.c.bf16 %v7829_v7, %v7805_v19 }
 0x287   : > { %5191 = vmatmul.mubr.msk.bf16.gmra.mrb[112].mxu0 %vm2341_vm0, %v8077_v22  ;;  %5263 = vmatmul.mubr.msk.bf16.gmra.mrb[12].mxu1 %vm2341_vm0, %v8115_v57  ;;  %v8161_v35 = vpack.c.bf16 %v7451_v46, %v8931_v33 }
 0x288   : > { %5194 = vmatprep.mubr.msk.bf16.mxu0 %vm2341_vm0, %v8115_v57  ;;  %5266 = vmatprep.mubr.msk.bf16.mxu1 %vm2341_vm0, %v8121_v6  ;;  %v2123_v0 = vmul.f32 %v2069_v63, %v719_v11  ;;  %v8173_v11 = vpack.c.bf16 %v7542_v26, %v7498_v34  ;;  %v8189_v63 = vpack.c.bf16 %v7743_v28, %v7723_v29  ;;  %v3598_v29 = vrot.slane %v8070_v51, 2 }
 0x289   : > { %8932 = vst [vmem:[#allocation3_spill] sm:$0xff] %v8193_v30  ;;  %v2774_v51 = vrot.slane %v8915_v12, 2  ;;  %v8935_v12 = vld [vmem:[#allocation11_spill] sm:$0xff] }
 0x28a   : > { %v3379_v52 = vrot.slane %v2123_v0, 1  ;;  %v3600_v28 = vrot.slane %v2123_v0, 2 }
 0x28c   : > { %v3380_v23 = vsel %vm2195_vm12, %v3377_v61, %v3379_v52  ;;  %v3597_v61 = vrot.slane %v8068_v25, 2  ;;  %v8933_v52 = vld [vmem:[#allocation4_spill] sm:$0xff]  ;;  %v3601_v25 = vsel %vm2772_vm8, %v3598_v29, %v3600_v28 }
 0x28d   : > { %v8153_v53 = vpack.c.bf16 %v3380_v23, %v3378_v39  ;;  %v2776_v19 = vrot.slane %v8933_v52, 2  ;;  %v2773_v39 = vrot.slane %v8914_v62, 2  ;;  %v2778_v62 = vrot.slane %v8916_v32, 2 }
 0x28e   : > { %v3599_v7 = vsel %vm2772_vm8, %v3597_v61, %v3598_v29  ;;  %v2779_v61 = vrot.slane %v8917_v44, 2  ;;  %v8937_v44 = vld [vmem:[#allocation24_spill] sm:$0xff]  ;;  %v2794_v32 = vrot.slane %v8924_v27, 2 }
 0x28f   : > { %5195 = vmatmul.mubr.msk.bf16.gmra.mrb[116].mxu0 %vm2341_vm0, %v8121_v6  ;;  %5267 = vmatmul.mubr.msk.bf16.gmra.mrb[16].mxu1 %vm2341_vm0, %v8137_v38  ;;  %v8217_v0 = vpack.c.bf16 %v3601_v25, %v3599_v7  ;;  %v2777_v23 = vsel %vm2772_vm8, %v2774_v51, %v2776_v19  ;;  %v2775_v52 = vsel %vm2772_vm8, %v2773_v39, %v2774_v51  ;;  %v5756_v19 = vld [vmem:[%s8730_s3 + $0x58] sm:$0xff]   ;;  %v2796_v51 = vrot.slane %v8937_v44, 2  ;;  %v8939_v39 = vld [vmem:[#allocation28_spill] sm:$0xff] }
 0x290   : > { %5198 = vmatprep.mubr.msk.bf16.mxu0 %vm2341_vm0, %v8137_v38  ;;  %5270 = vmatprep.mubr.msk.bf16.mxu1 %vm2341_vm0, %v8141_v45  ;;  %v8936_v7 = vld [vmem:[#allocation17_spill] sm:$0xff] }
 0x291   : > { %v2791_v25 = vrot.slane %v8936_v7, 2 }
 0x297   : > { %5199 = vmatmul.mubr.msk.bf16.gmra.mrb[120].mxu0 %vm2341_vm0, %v8141_v45  ;;  %5271 = vmatmul.mubr.msk.bf16.gmra.mrb[20].mxu1 %vm2341_vm0, %v8157_v13 }
 0x298   : > { %5202 = vmatprep.mubr.msk.bf16.mxu0 %vm2341_vm0, %v8157_v13  ;;  %5274 = vmatprep.mubr.msk.bf16.mxu1 %vm2341_vm0, %v8161_v35 }
 0x29f   : > { %5203 = vmatmul.mubr.msk.bf16.gmra.mrb[124].mxu0 %vm2341_vm0, %v8161_v35  ;;  %5275 = vmatmul.mubr.msk.bf16.gmra.mrb[24].mxu1 %vm2341_vm0, %v8173_v11 }
 0x2a0   : > { %5206 = vmatprep.mubr.msk.bf16.mxu0 %vm2341_vm0, %v8173_v11  ;;  %5278 = vmatprep.mubr.msk.bf16.mxu1 %vm2341_vm0, %v8177_v42 }
 0x2a7   : > { %5207 = vmatmul.mubr.msk.bf16.gmra.mrb[128].mxu0 %vm2341_vm0, %v8177_v42  ;;  %5279 = vmatmul.mubr.msk.bf16.gmra.mrb[28].mxu1 %vm2341_vm0, %v8189_v63 }
 0x2a8   : > { %5210 = vmatprep.mubr.msk.bf16.mxu0 %vm2341_vm0, %v8189_v63  ;;  %5282 = vmatprep.mubr.msk.bf16.mxu1 %vm2341_vm0, %v8193_v30 }
 0x2af   : > { %5211 = vmatmul.mubr.msk.bf16.gmra.mrb[132].mxu0 %vm2341_vm0, %v8193_v30  ;;  %5283 = vmatmul.mubr.msk.bf16.gmra.mrb[0].mxu1 %vm2341_vm0, %v8089_v16  ;;  %v8934_v30 = vld [vmem:[#allocation7_spill] sm:$0xff] }
 0x2b0   : > { %5214 = vmatprep.mubr.msk.bf16.mxu0 %vm2341_vm0, %v8089_v16  ;;  %5286 = vmatprep.mubr.msk.bf16.mxu1 %vm2341_vm0, %v8099_v9  ;;  %v2781_v56 = vrot.slane %v8934_v30, 2  ;;  %v2885_v16 = vpack.c.bf16 %v2777_v23, %v2775_v52  ;;  %v2780_v30 = vsel %vm2772_vm8, %v2778_v62, %v2779_v61  ;;  %v8255_v23 = vld [vmem:[%s8730_s3 + $0x60] sm:$0xff]   ;;  %v2788_v52 = vrot.slane %v6753_v3, 2  ;;  %v8941_v3 = vld [vmem:[#allocation13_spill] sm:$0xff] }
 0x2b1   : > { %v2806_v44 = vrot.slane %v8941_v3, 2  ;;  %v8945_v3 = vld [vmem:[#allocation38_spill] sm:$0xff] }
 0x2b2   : > { %v2782_v29 = vsel %vm2772_vm8, %v2779_v61, %v2781_v56  ;;  %v2789_v56 = vrot.slane %v8919_v50, 2  ;;  %v2797_v61 = vsel %vm2772_vm8, %v2794_v32, %v2796_v51  ;;  %v2804_v51 = vrot.slane %v8928_v17, 2 }
 0x2b3   : > { %v8234_v28 = vpack.c.bf16 %v2782_v29, %v2780_v30  ;;  %v8940_v29 = vld [vmem:[#allocation30_spill] sm:$0xff]  ;;  %v2816_v17 = vrot.slane %v8945_v3, 2 }
 0x2b4   : > { %v2792_v50 = vsel %vm2772_vm8, %v2789_v56, %v2791_v25  ;;  %v2801_v30 = vrot.slane %v8940_v29, 2  ;;  %v8943_v25 = vld [vmem:[#allocation33_spill] sm:$0xff] }
 0x2b7   : > { %5215 = vmatmul.mubr.msk.bf16.gmra.mrb[136].mxu0 %vm2341_vm0, %v8099_v9  ;;  %5287 = vmatmul.mubr.msk.bf16.gmra.mrb[4].mxu1 %vm2341_vm0, %v8106_v14 }
 0x2b8   : > { %5222 = vmatprep.mubr.msk.bf16.mxu0 %vm2341_vm0, %v2885_v16  ;;  %5294 = vmatprep.mubr.msk.bf16.mxu1 %vm2341_vm0, %v8935_v12  ;;  %v8938_v16 = vld [vmem:[#allocation21_spill] sm:$0xff]  ;;  %v2790_v12 = vsel %vm2772_vm8, %v2788_v52, %v2789_v56  ;;  %v2798_v56 = vrot.slane %v8925_v2, 2  ;;  %v2803_v52 = vrot.slane %v8927_v54, 2  ;;  %v2809_v54 = vrot.slane %v7194_v49, 2 }
 0x2b9   : > { %v8262_v27 = vpack.c.bf16 %v2792_v50, %v2790_v12  ;;  %v2807_v50 = vsel %vm2772_vm8, %v2804_v51, %v2806_v44  ;;  %v8944_v12 = vld [vmem:[#allocation34_spill] sm:$0xff]  ;;  %v8946_v2 = vld [vmem:[#allocation37_spill] sm:$0xff]  ;;  %v2814_v44 = vrot.slane %v8930_v40, 2  ;;  %v2826_v40 = vrot.slane %v7600_v41, 2 }
 0x2bf   : > { %5223 = vmatmul.mubr.msk.bf16.vlgmr.msra.gmra.mrb[108].mxu0 %vm2341_vm0, %v8234_v28  ;;  %5295 = vmatmul.mubr.msk.bf16.vlgmr.msra.gmra.mrb[8].mxu1 %vm2341_vm0, %v8938_v16 }
 0x2c0   : > { %5327 = vmatpush3.bf16.msra.mxu1 %v8094_v8  ;;  %5226 = vmatprep.mubr.msk.bf16.mxu0 %vm2341_vm0, %v8123_v58  ;;  %v2793_v8 = vrot.slane %v6838_v24, 2  ;;  %v8942_v24 = vld [vmem:[#allocation32_spill] sm:$0xff] }
 0x2c1   : > { %5298 = vmatprep.mubr.msk.bf16.mxu1 %vm2341_vm0, %v8939_v39  ;;  %5328 = vmatprep.subr.bf16.mxu1 %v5756_v19 }
 0x2c2   : > { %v2795_v62 = vsel %vm2772_vm8, %v2793_v8, %v2794_v32 }
 0x2c3   : > { %v8267_v7 = vpack.c.bf16 %v2797_v61, %v2795_v62  ;;  %v2811_v62 = vrot.slane %v8944_v12, 2  ;;  %v2818_v12 = vrot.slane %v8931_v33, 2 }
 0x2c4   : > { %5329 = vmatpush3.bf16.msra.mxu1 %v5756_v19  ;;  %v2799_v19 = vrot.slane %v8926_v5, 2  ;;  %v2805_v5 = vsel %vm2772_vm8, %v2803_v52, %v2804_v51 }
 0x2c5   : > { %5362 = vmatprep.subr.bf16.mxu1 %v8255_v23  ;;  %v8289_v29 = vpack.c.bf16 %v2807_v50, %v2805_v5  ;;  %v2812_v51 = vsel %vm2772_vm8, %v2809_v54, %v2811_v62  ;;  %v2823_v62 = vrot.slane %v7498_v34, 2  ;;  %v2829_v34 = vrot.slane %v7648_v37, 2  ;;  %v5759_v37 = vld [vmem:[%s8730_s3 + $0x70] sm:$0xff]  }
 0x2c6   : > { %v2802_v32 = vsel %vm2772_vm8, %v2799_v19, %v2801_v30  ;;  %v2800_v8 = vsel %vm2772_vm8, %v2798_v56, %v2799_v19  ;;  %v8947_v30 = vld [vmem:[#allocation18_spill] sm:$0xff]  ;;  %v2808_v19 = vrot.slane %v7180_v48, 2  ;;  %v2813_v56 = vrot.slane %v8929_v47, 2  ;;  %v8948_v48 = vld [vmem:[#allocation19_spill] sm:$0xff] }
 0x2c7   : > { %5227 = vmatmul.mubr.msk.bf16.gmra.mrb[112].mxu0 %vm2341_vm0, %v8262_v27  ;;  %5299 = vmatmul.mubr.msk.bf16.gmra.mrb[12].mxu1 %vm2341_vm0, %v8942_v24  ;;  %v8285_v61 = vpack.c.bf16 %v2802_v32, %v2800_v8  ;;  %v2817_v32 = vsel %vm2772_vm8, %v2814_v44, %v2816_v17  ;;  %v2821_v8 = vrot.slane %v7455_v15, 2  ;;  %v2819_v47 = vrot.slane %v7451_v46, 2 }
 0x2c8   : > { %5230 = vmatprep.mubr.msk.bf16.mxu0 %vm2341_vm0, %v8267_v7  ;;  %5302 = vmatprep.mubr.msk.bf16.mxu1 %vm2341_vm0, %v8943_v25  ;;  %v2810_v52 = vsel %vm2772_vm8, %v2808_v19, %v2809_v54  ;;  %v2815_v49 = vsel %vm2772_vm8, %v2813_v56, %v2814_v44  ;;  %v2824_v15 = vrot.slane %v7542_v26, 2  ;;  %v2831_v44 = vrot.slane %v7697_v1, 2  ;;  %v8949_v56 = vld [vmem:[#allocation27_spill] sm:$0xff] }
 0x2c9   : > { %v8307_v50 = vpack.c.bf16 %v2812_v51, %v2810_v52  ;;  %v8311_v5 = vpack.c.bf16 %v2817_v32, %v2815_v49  ;;  %v2822_v41 = vsel %vm2772_vm8, %v2819_v47, %v2821_v8  ;;  %v2820_v17 = vsel %vm2772_vm8, %v2818_v12, %v2819_v47  ;;  %v8952_v52 = vld [vmem:[#allocation23_spill] sm:$0xff] }
 0x2ca   : > { %v2827_v3 = vsel %vm2772_vm8, %v2824_v15, %v2826_v40  ;;  %v8329_v54 = vpack.c.bf16 %v2822_v41, %v2820_v17  ;;  %v2825_v46 = vsel %vm2772_vm8, %v2823_v62, %v2824_v15  ;;  %v2828_v26 = vrot.slane %v7605_v10, 2  ;;  %v5758_v10 = vld [vmem:[%s8730_s3 + $0x68] sm:$0xff]   ;;  %v8953_v41 = vld [vmem:[#allocation40_spill] sm:$0xff] }
 0x2cb   : > { %v8333_v19 = vpack.c.bf16 %v2827_v3, %v2825_v46  ;;  %v2832_v1 = vsel %vm2772_vm8, %v2829_v34, %v2831_v44 }
 0x2cc   : > { %v2830_v33 = vsel %vm2772_vm8, %v2828_v26, %v2829_v34 }
 0x2cd   : > { %v8347_v51 = vpack.c.bf16 %v2832_v1, %v2830_v33  ;;  %v5760_v1 = vld [vmem:[%s8730_s3 + $0x78] sm:$0xff]  }
 0x2cf   : > { %5231 = vmatmul.mubr.msk.bf16.gmra.mrb[116].mxu0 %vm2341_vm0, %v8285_v61  ;;  %5303 = vmatmul.mubr.msk.bf16.gmra.mrb[16].mxu1 %vm2341_vm0, %v8946_v2 }
 0x2d0   : > { %5234 = vmatprep.mubr.msk.bf16.mxu0 %vm2341_vm0, %v8289_v29  ;;  %5306 = vmatprep.mubr.msk.bf16.mxu1 %vm2341_vm0, %v8947_v30 }
 0x2d7   : > { %5235 = vmatmul.mubr.msk.bf16.gmra.mrb[120].mxu0 %vm2341_vm0, %v8307_v50  ;;  %5307 = vmatmul.mubr.msk.bf16.gmra.mrb[20].mxu1 %vm2341_vm0, %v8948_v48 }
 0x2d8   : > { %5238 = vmatprep.mubr.msk.bf16.mxu0 %vm2341_vm0, %v8311_v5  ;;  %5310 = vmatprep.mubr.msk.bf16.mxu1 %vm2341_vm0, %v7683_v4 }
 0x2df   : > { %5239 = vmatmul.mubr.msk.bf16.gmra.mrb[124].mxu0 %vm2341_vm0, %v8329_v54  ;;  %5311 = vmatmul.mubr.msk.bf16.gmra.mrb[24].mxu1 %vm2341_vm0, %v7787_v59 }
 0x2e0   : > { %5242 = vmatprep.mubr.msk.bf16.mxu0 %vm2341_vm0, %v8333_v19  ;;  %5314 = vmatprep.mubr.msk.bf16.mxu1 %vm2341_vm0, %v7846_v36 }
 0x2e7   : > { %5243 = vmatmul.mubr.msk.bf16.gmra.mrb[128].mxu0 %vm2341_vm0, %v8347_v51  ;;  %5315 = vmatmul.mubr.msk.bf16.gmra.mrb[28].mxu1 %vm2341_vm0, %v8949_v56 }
 0x2e8   : > { %5318 = vmatprep.mubr.msk.bf16.mxu1 %vm2341_vm0, %v7976_v31 }
 0x2ef   : > { %5319 = vmatmul.mubr.msk.bf16.gmra.mrb[0].mxu1 %vm2341_vm0, %v8008_v43 }
 0x2f0   : > { %5322 = vmatprep.mubr.msk.bf16.mxu1 %vm2341_vm0, %v8048_v55 }
 0x2f7   : > { %5323 = vmatmul.mubr.msk.bf16.gmra.mrb[4].mxu1 %vm2341_vm0, %v8153_v53 }
 0x2f8   : > { %5330 = vmatprep.mubr.msk.bf16.mxu1 %vm2341_vm0, %v8234_v28  ;;  %v8950_v28 = vld [vmem:[#allocation22_spill] sm:$0xff] }
 0x2ff   : > { %5331 = vmatmul.mubr.msk.bf16.vlgmr.msra.gmra.mrb[8].mxu1 %vm2341_vm0, %v8123_v58 }
 0x300   : > { %5363 = vmatpush3.bf16.msra.mxu1 %v8255_v23  ;;  %5334 = vmatprep.mubr.msk.bf16.mxu1 %vm2341_vm0, %v8262_v27  ;;  %v8951_v23 = vld [vmem:[#allocation39_spill] sm:$0xff] }
 0x301   : > { %5364 = vmatprep.subr.bf16.mxu1 %v5758_v10  ;;  %v8388_v32 = vadd.f32 %v8951_v23, %v8950_v28  ;;  %v8392_v49 = vadd.f32 %v8951_v23, %v8952_v52 }
 0x303   : > { %v8395_v8 = vmul.f32 0.70710677, %v8388_v32  ;;  %v8400_v40 = vmul.f32 0.70710677, %v8392_v49 }
 0x304   : > { %5365 = vmatpush3.bf16.msra.mxu1 %v5758_v10 }
 0x305   : > { %5398 = vmatprep.subr.bf16.mxu1 %v5759_v37  ;;  %v936_v47 = vand.u32 2147483647, %v8395_v8  ;;  %v937_v15 = vand.u32 2147483647, %v8400_v40  ;;  %vm828_vm14 = vcmp.ge.f32.partialorder %v8395_v8, 0.0  ;;  %vm829_vm15 = vcmp.ge.f32.partialorder %v8400_v40, 0.0 }
 0x306   : > { %v720_v8 = vmul.f32 0.5, %v8388_v32  ;;  %v721_v40 = vmul.f32 0.5, %v8392_v49 }
 0x307   : > { %5335 = vmatmul.mubr.msk.bf16.gmra.mrb[12].mxu1 %vm2341_vm0, %v8267_v7  ;;  %v990_v12 = vmul.f32 0.3275911, %v936_v47  ;;  %v991_v62 = vmul.f32 0.3275911, %v937_v15 }
 0x308   : > { %5338 = vmatprep.mubr.msk.bf16.mxu1 %vm2341_vm0, %v8285_v61 }
 0x309   : > { %v1044_v3 = vadd.f32 1.0, %v990_v12  ;;  %v1045_v17 = vadd.f32 1.0, %v991_v62  ;;  %v1692_v12 = vmul.f32 %v936_v47, %v936_v47 }
 0x30b   : > { %5967 = vrcp.f32 %v1044_v3  ;;  %v1746_v62 = vsub.f32 0.0, %v1692_v12 }
 0x30c   : > { %5969 = vrcp.f32 %v1045_v17 }
 0x30f   : > { %5339 = vmatmul.mubr.msk.bf16.gmra.mrb[16].mxu1 %vm2341_vm0, %v8289_v29 }
 0x310   : > { %5342 = vmatprep.mubr.msk.bf16.mxu1 %vm2341_vm0, %v8307_v50 }
 0x315   : > { %v5968_v46 = vpop.eup %5967 }
 0x316   : > { %v5970_v44 = vpop.eup %5969  ;;  %v1206_v34 = vmul.f32 1.0614054, %v5968_v46 }
 0x317   : > { %5343 = vmatmul.mubr.msk.bf16.gmra.mrb[20].mxu1 %vm2341_vm0, %v8311_v5  ;;  %v1207_v26 = vmul.f32 1.0614054, %v5970_v44 }
 0x318   : > { %5346 = vmatprep.mubr.msk.bf16.mxu1 %vm2341_vm0, %v8329_v54  ;;  %v1260_v33 = vadd.f32 -1.4531521, %v1206_v34 }
 0x319   : > { %v1261_v10 = vadd.f32 -1.4531521, %v1207_v26  ;;  %v1851_v26 = vmul.f32 1.442695, %v1746_v62 }
 0x31a   : > { %v1314_v28 = vmul.f32 %v5968_v46, %v1260_v33  ;;  %v8954_v33 = vld [vmem:[#allocation25_spill] sm:$0xff] }
 0x31b   : > { %v1315_v52 = vmul.f32 %v5970_v44, %v1261_v10  ;;  %5971 = vpow2.f32 %v1851_v26  ;;  %v8441_v10 = vadd.f32 %v8951_v23, %v8954_v33  ;;  %v8956_v26 = vld [vmem:[#allocation3_spill] sm:$0xff] }
 0x31f   : > { %5347 = vmatmul.mubr.msk.bf16.gmra.mrb[24].mxu1 %vm2341_vm0, %v8333_v19 }
 0x320   : > { %5350 = vmatprep.mubr.msk.bf16.mxu1 %vm2341_vm0, %v8347_v51 }
 0x327   : > { %5351 = vmatmul.mubr.msk.bf16.gmra.mrb[28].mxu1 %vm2341_vm0, %v8953_v41 }
 0x328   : > { %5354 = vmatprep.mubr.msk.bf16.mxu1 %vm2341_vm0, %v7997_v21 }
 0x32f   : > { %5355 = vmatmul.mubr.msk.bf16.gmra.mrb[0].mxu1 %vm2341_vm0, %v8018_v60 }
 0x330   : > { %5358 = vmatprep.mubr.msk.bf16.mxu1 %vm2341_vm0, %v8050_v18 }
 0x337   : > { %5359 = vmatmul.mubr.msk.bf16.gmra.mrb[4].mxu1 %vm2341_vm0, %v8217_v0 }
 0x338   : > { %5366 = vmatprep.mubr.msk.bf16.mxu1 %vm2341_vm0, %v8918_v20  ;;  %v8428_v20 = vld [vmem:[%s8730_s3 + $0x80] sm:$0xff]  }
 0x33f   : > { %5367 = vmatmul.mubr.msk.bf16.vlgmr.msra.gmra.mrb[8].mxu1 %vm2341_vm0, %v8077_v22  ;;  %v1693_v22 = vmul.f32 %v937_v15, %v937_v15 }
 0x340   : > { %5399 = vmatpush3.bf16.msra.mxu1 %v5759_v37  ;;  %5370 = vmatprep.mubr.msk.bf16.mxu1 %vm2341_vm0, %v8115_v57  ;;  %v1368_v57 = vadd.f32 1.4214138, %v1314_v28  ;;  %v1369_v37 = vadd.f32 1.4214138, %v1315_v52  ;;  %v5972_v52 = vpop.eup %5971 }
 0x341   : > { %5400 = vmatprep.subr.bf16.mxu1 %v5760_v1  ;;  %v1747_v3 = vsub.f32 0.0, %v1693_v22 }
 0x342   : > { %v1422_v17 = vmul.f32 %v5968_v46, %v1368_v57  ;;  %v1423_v34 = vmul.f32 %v5970_v44, %v1369_v37 }
 0x344   : > { %5401 = vmatpush3.bf16.msra.mxu1 %v5760_v1  ;;  %v1853_v1 = vmul.f32 1.442695, %v1747_v3  ;;  %v1476_v47 = vadd.f32 -0.28449672, %v1422_v17 }
 0x345   : > { %5434 = vmatprep.subr.bf16.mxu1 %v8428_v20 }
 0x346   : > { %5973 = vpow2.f32 %v1853_v1  ;;  %v1530_v15 = vmul.f32 %v5968_v46, %v1476_v47 }
 0x347   : > { %5371 = vmatmul.mubr.msk.bf16.gmra.mrb[12].mxu1 %vm2341_vm0, %v8121_v6  ;;  %v1477_v6 = vadd.f32 -0.28449672, %v1423_v34 }
 0x348   : > { %5374 = vmatprep.mubr.msk.bf16.mxu1 %vm2341_vm0, %v8137_v38 }
 0x349   : > { %v1531_v38 = vmul.f32 %v5970_v44, %v1477_v6 }
 0x34b   : > { %v1585_v28 = vadd.f32 0.2548296, %v1531_v38 }
 0x34d   : > { %v1639_v22 = vmul.f32 %v5970_v44, %v1585_v28  ;;  %v8955_v44 = vmov -1.0  }
 0x34e   : > { %v882_v17 = vsel %vm828_vm14, 1.0, %v8955_v44  ;;  %v883_v34 = vsel %vm829_vm15, 1.0, %v8955_v44 }
 0x34f   : > { %5375 = vmatmul.mubr.msk.bf16.gmra.mrb[16].mxu1 %vm2341_vm0, %v8141_v45  ;;  %v1584_v45 = vadd.f32 0.2548296, %v1530_v15 }
 0x350   : > { %5378 = vmatprep.mubr.msk.bf16.mxu1 %vm2341_vm0, %v8157_v13  ;;  %v8448_v13 = vmul.f32 0.70710677, %v8441_v10  ;;  %v5974_v37 = vpop.eup %5973 }
 0x351   : > { %v1638_v12 = vmul.f32 %v5968_v46, %v1584_v45  ;;  %v1909_v23 = vmul.f32 %v5974_v37, %v1639_v22 }
 0x352   : > { %v938_v57 = vand.u32 2147483647, %v8448_v13  ;;  %vm830_vm1 = vcmp.ge.f32.partialorder %v8448_v13, 0.0 }
 0x353   : > { %v1963_v3 = vsub.f32 1.0, %v1909_v23 }
 0x354   : > { %v1694_v49 = vmul.f32 %v938_v57, %v938_v57 }
 0x355   : > { %v2017_v1 = vmul.f32 %v1963_v3, %v883_v34 }
 0x356   : > { %v1748_v37 = vsub.f32 0.0, %v1694_v49 }
 0x357   : > { %5379 = vmatmul.mubr.msk.bf16.gmra.mrb[20].mxu1 %vm2341_vm0, %v8161_v35  ;;  %v1908_v35 = vmul.f32 %v5972_v52, %v1638_v12  ;;  %v2071_v6 = vadd.f32 1.0, %v2017_v1 }
 0x358   : > { %5382 = vmatprep.mubr.msk.bf16.mxu1 %vm2341_vm0, %v8173_v11  ;;  %v992_v11 = vmul.f32 0.3275911, %v938_v57 }
 0x359   : > { %v1962_v62 = vsub.f32 1.0, %v1908_v35  ;;  %v8471_v38 = vmul.f32 %v2071_v6, %v721_v40  ;;  %v884_v40 = vsel %vm830_vm1, 1.0, %v8955_v44 }
 0x35a   : > { %v1046_v46 = vadd.f32 1.0, %v992_v11 }
 0x35c   : > { %5975 = vrcp.f32 %v1046_v46 }
 0x35f   : > { %5383 = vmatmul.mubr.msk.bf16.gmra.mrb[24].mxu1 %vm2341_vm0, %v8177_v42  ;;  %v8957_v42 = vld [vmem:[#allocation2_spill] sm:$0xff] }
 0x360   : > { %5386 = vmatprep.mubr.msk.bf16.mxu1 %vm2341_vm0, %v8189_v63  ;;  %v2016_v63 = vmul.f32 %v1962_v62, %v882_v17 }
 0x362   : > { %v2070_v47 = vadd.f32 1.0, %v2016_v63 }
 0x364   : > { %v8469_v15 = vmul.f32 %v2070_v47, %v720_v8 }
 0x366   : > { %v5976_v33 = vpop.eup %5975  ;;  %v3818_v45 = vpack.c.bf16 %v8471_v38, %v8469_v15 }
 0x367   : > { %5387 = vmatmul.mubr.msk.bf16.gmra.mrb[28].mxu1 %vm2341_vm0, %v8956_v26  ;;  %v1208_v28 = vmul.f32 1.0614054, %v5976_v33 }
 0x368   : > { %5390 = vmatprep.mubr.msk.bf16.mxu1 %vm2341_vm0, %v8957_v42 }
 0x369   : > { %v1262_v32 = vadd.f32 -1.4531521, %v1208_v28 }
 0x36f   : > { %5391 = vmatmul.mubr.msk.bf16.gmra.mrb[0].mxu1 %vm2341_vm0, %v8099_v9  ;;  %v5762_v9 = vld [vmem:[%s8730_s3 + $0x88] sm:$0xff]  }
 0x370   : > { %5394 = vmatprep.mubr.msk.bf16.mxu1 %vm2341_vm0, %v8106_v14  ;;  %v1316_v14 = vmul.f32 %v5976_v33, %v1262_v32 }
 0x372   : > { %v1370_v52 = vadd.f32 1.4214138, %v1316_v14  ;;  %v4035_v14 = vrot.slane %v8469_v15, 1 }
 0x374   : > { %v1424_v23 = vmul.f32 %v5976_v33, %v1370_v52 }
 0x377   : > { %5395 = vmatmul.mubr.msk.bf16.gmra.mrb[4].mxu1 %vm2341_vm0, %v3818_v45  ;;  %v722_v45 = vmul.f32 0.5, %v8441_v10  ;;  %v4036_v10 = vrot.slane %v8471_v38, 1 }
 0x378   : > { %5402 = vmatprep.mubr.msk.bf16.mxu1 %vm2341_vm0, %v8938_v16 }
 0x37f   : > { %5403 = vmatmul.mubr.msk.bf16.vlgmr.msra.gmra.mrb[8].mxu1 %vm2341_vm0, %v8939_v39  ;;  %v1855_v39 = vmul.f32 1.442695, %v1748_v37 }
 0x380   : > { %5435 = vmatpush3.bf16.msra.mxu1 %v8428_v20  ;;  %5406 = vmatprep.mubr.msk.bf16.mxu1 %vm2341_vm0, %v8942_v24  ;;  %v1478_v24 = vadd.f32 -0.28449672, %v1424_v23 }
 0x381   : > { %5436 = vmatprep.subr.bf16.mxu1 %v5762_v9  ;;  %5977 = vpow2.f32 %v1855_v39 }
 0x382   : > { %v8486_v12 = vpop.f32.mrb[132].mxu0  ;;  %v1532_v3 = vmul.f32 %v5976_v33, %v1478_v24 }
 0x383   : > { %v8488_v16 = vpop.f32.mrb[133].mxu0 }
 0x384   : > { %v8490_v22 = vpop.f32.mrb[134].mxu0  ;;  %5437 = vmatpush3.bf16.msra.mxu1 %v5762_v9 }
 0x385   : > { %v8492_v35 = vpop.f32.mrb[135].mxu0 }
 0x387   : > { %5407 = vmatmul.mubr.msk.bf16.gmra.mrb[12].mxu1 %vm2341_vm0, %v8943_v25  ;;  %v1586_v25 = vadd.f32 0.2548296, %v1532_v3 }
 0x388   : > { %5410 = vmatprep.mubr.msk.bf16.mxu1 %vm2341_vm0, %v8946_v2 }
 0x389   : > { %v1640_v26 = vmul.f32 %v5976_v33, %v1586_v25 }
 0x38a   : > { %v8498_v20 = vpop.f32.mrb[136].mxu0 }
 0x38b   : > { %v8500_v57 = vpop.f32.mrb[137].mxu0  ;;  %v5978_v42 = vpop.eup %5977 }
 0x38c   : > { %v8502_v11 = vpop.f32.mrb[138].mxu0 }
 0x38d   : > { %v8504_v62 = vpop.f32.mrb[139].mxu0 }
 0x38f   : > { %5411 = vmatmul.mubr.msk.bf16.gmra.mrb[16].mxu1 %vm2341_vm0, %v8947_v30  ;;  %v1910_v30 = vmul.f32 %v5978_v42, %v1640_v26 }
 0x390   : > { %5414 = vmatprep.mubr.msk.bf16.mxu1 %vm2341_vm0, %v8948_v48 }
 0x391   : > { %v1964_v47 = vsub.f32 1.0, %v1910_v30 }
 0x392   : > { %v8510_v2 = vpop.f32.mrb[108].mxu0 }
 0x393   : > { %v8512_v46 = vpop.f32.mrb[109].mxu0 }
 0x394   : > { %v8514_v17 = vpop.f32.mrb[110].mxu0 }
 0x395   : > { %v8516_v34 = vpop.f32.mrb[111].mxu0 }
 0x397   : > { %5415 = vmatmul.mubr.msk.bf16.gmra.mrb[20].mxu1 %vm2341_vm0, %v7683_v4  ;;  %v2018_v4 = vmul.f32 %v1964_v47, %v884_v40 }
 0x398   : > { %5418 = vmatprep.mubr.msk.bf16.mxu1 %vm2341_vm0, %v7787_v59 }
 0x399   : > { %v2072_v28 = vadd.f32 1.0, %v2018_v4 }
 0x39a   : > { %v8522_v63 = vpop.f32.mrb[112].mxu0 }
 0x39b   : > { %v8524_v48 = vpop.f32.mrb[113].mxu0 }
 0x39c   : > { %v8527_v1 = vpop.f32.mrb[114].mxu0 }
 0x39d   : > { %v8529_v8 = vpop.f32.mrb[115].mxu0 }
 0x39f   : > { %5419 = vmatmul.mubr.msk.bf16.gmra.mrb[24].mxu1 %vm2341_vm0, %v7846_v36  ;;  %v2126_v36 = vmul.f32 %v2072_v28, %v722_v45 }
 0x3a0   : > { %5422 = vmatprep.mubr.msk.bf16.mxu1 %vm2341_vm0, %v8949_v56 }
 0x3a1   : > { %v4038_v49 = vrot.slane %v2126_v36, 1 }
 0x3a2   : > { %v8536_v59 = vpop.f32.mrb[116].mxu0 }
 0x3a3   : > { %v8538_v6 = vpop.f32.mrb[117].mxu0  ;;  %v4039_v52 = vsel %vm2195_vm12, %v4036_v10, %v4038_v49 }
 0x3a4   : > { %v8540_v33 = vpop.f32.mrb[118].mxu0 }
 0x3a5   : > { %v8542_v13 = vpop.f32.mrb[119].mxu0 }
 0x3a7   : > { %5423 = vmatmul.mubr.msk.bf16.gmra.mrb[28].mxu1 %vm2341_vm0, %v7976_v31 }
 0x3a8   : > { %5426 = vmatprep.mubr.msk.bf16.mxu1 %vm2341_vm0, %v8008_v43  ;;  %v4037_v43 = vsel %vm2195_vm12, %v4035_v14, %v4036_v10 }
 0x3a9   : > { %v4042_v24 = vpack.c.bf16 %v4039_v52, %v4037_v43 }
 0x3aa   : > { %v8549_v56 = vpop.f32.mrb[120].mxu0 }
 0x3ab   : > { %v8551_v44 = vpop.f32.mrb[121].mxu0 }
 0x3ac   : > { %v8553_v32 = vpop.f32.mrb[122].mxu0 }
 0x3ad   : > { %v8555_v9 = vpop.f32.mrb[123].mxu0 }
 0x3af   : > { %5427 = vmatmul.mubr.msk.bf16.gmra.mrb[0].mxu1 %vm2341_vm0, %v8048_v55 }
 0x3b0   : > { %5430 = vmatprep.mubr.msk.bf16.mxu1 %vm2341_vm0, %v8153_v53 }
 0x3b2   : > { %v8563_v31 = vpop.f32.mrb[124].mxu0 }
 0x3b3   : > { %v8567_v37 = vpop.f32.mrb[125].mxu0 }
 0x3b4   : > { %v8569_v23 = vpop.f32.mrb[126].mxu0 }
 0x3b5   : > { %v8571_v39 = vpop.f32.mrb[127].mxu0 }
 0x3b7   : > { %5431 = vmatmul.mubr.msk.bf16.gmra.mrb[4].mxu1 %vm2341_vm0, %v4042_v24 }
 0x3b8   : > { %5438 = vmatprep.mubr.msk.bf16.mxu1 %vm2341_vm0, %v8123_v58  ;;  %v4256_v58 = vrot.slane %v8469_v15, 2 }
 0x3ba   : > { %v8576_v55 = vpop.f32.mrb[128].mxu0 }
 0x3bb   : > { %v8578_v53 = vpop.f32.mrb[129].mxu0 }
 0x3bc   : > { %v8580_v3 = vpop.f32.mrb[130].mxu0 }
 0x3bd   : > { %v8582_v25 = vpop.f32.mrb[131].mxu0 }
 0x3bf   : > { %5439 = vmatmul.mubr.msk.bf16.vlgmr.msra.gmra.mrb[8].mxu1 %vm2341_vm0, %v8262_v27  ;;  %v4257_v27 = vrot.slane %v8471_v38, 2 }
 0x3c0   : > { %5442 = vmatprep.mubr.msk.bf16.mxu1 %vm2341_vm0, %v8267_v7  ;;  %v4259_v7 = vrot.slane %v2126_v36, 2 }
 0x3c7   : > { %5443 = vmatmul.mubr.msk.bf16.gmra.mrb[12].mxu1 %vm2341_vm0, %v8285_v61  ;;  %v4258_v61 = vsel %vm2772_vm8, %v4256_v58, %v4257_v27 }
 0x3c8   : > { %5446 = vmatprep.mubr.msk.bf16.mxu1 %vm2341_vm0, %v8289_v29  ;;  %v4260_v29 = vsel %vm2772_vm8, %v4257_v27, %v4259_v7 }
 0x3cf   : > { %5447 = vmatmul.mubr.msk.bf16.gmra.mrb[16].mxu1 %vm2341_vm0, %v8307_v50  ;;  %v4263_v50 = vpack.c.bf16 %v4260_v29, %v4258_v61 }
 0x3d0   : > { %5450 = vmatprep.mubr.msk.bf16.mxu1 %vm2341_vm0, %v8311_v5 }
 0x3d7   : > { %5451 = vmatmul.mubr.msk.bf16.gmra.mrb[20].mxu1 %vm2341_vm0, %v8329_v54 }
 0x3d8   : > { %5454 = vmatprep.mubr.msk.bf16.mxu1 %vm2341_vm0, %v8333_v19 }
 0x3df   : > { %5455 = vmatmul.mubr.msk.bf16.gmra.mrb[24].mxu1 %vm2341_vm0, %v8347_v51 }
 0x3e0   : > { %5458 = vmatprep.mubr.msk.bf16.mxu1 %vm2341_vm0, %v8953_v41 }
 0x3e7   : > { %5459 = vmatmul.mubr.msk.bf16.gmra.mrb[28].mxu1 %vm2341_vm0, %v7997_v21 }
 0x3e8   : > { %5462 = vmatprep.mubr.msk.bf16.mxu1 %vm2341_vm0, %v8018_v60  ;;  %v8621_v60 = vld [vmem:[%s8731_s4] ss:$0 sm:$0xff] }
 0x3ef   : > { %5463 = vmatmul.mubr.msk.bf16.gmra.mrb[0].mxu1 %vm2341_vm0, %v8050_v18 }
 0x3f0   : > { %5466 = vmatprep.mubr.msk.bf16.mxu1 %vm2341_vm0, %v8217_v0 }
 0x3f7   : > { %5467 = vmatmul.mubr.msk.bf16.gmra.mrb[4].mxu1 %vm2341_vm0, %v4263_v50 }
 0x492   : > { %v5440_v21 = vpop.f32.mrb[8].mxu1 }
 0x493   : > { %v5474_v5 = vadd.f32 %v5440_v21, %v8510_v2  ;;  %v4318_v18 = vpop.f32.mrb[9].mxu1 }
 0x494   : > { %v5475_v0 = vadd.f32 %v4318_v18, %v8512_v46  ;;  %v5441_v54 = vpop.f32.mrb[10].mxu1 }
 0x495   : > { %v4486_v19 = vadd.f32 %v5474_v5, %v8621_v60  ;;  %v5476_v51 = vadd.f32 %v5441_v54, %v8514_v17  ;;  %v4321_v41 = vpop.f32.mrb[11].mxu1 }
 0x496   : > { %v4484_v15 = vadd.f32 %v5475_v0, %v8621_v60  ;;  %v5477_v38 = vadd.f32 %v4321_v41, %v8516_v34 }
 0x497   : > { %4518 = vst [vmem:[%s8627_s12 + $0x10] sm:$0xff] %v4486_v19  ;;  %v4487_v2 = vadd.f32 %v5476_v51, %v8621_v60 }
 0x498   : > { %4516 = vst [vmem:[%s8627_s12] sm:$0xff] %v4484_v15  ;;  %v4485_v26 = vadd.f32 %v5477_v38, %v8621_v60 }
 0x499   : > { %4519 = vst [vmem:[%s8627_s12 + $0x18] sm:$0xff] %v4487_v2 }
 0x49a   : > { %4517 = vst [vmem:[%s8627_s12 + $0x8] sm:$0xff] %v4485_v26  ;;  %v5444_v46 = vpop.f32.mrb[12].mxu1 }
 0x49b   : > { %v5478_v17 = vadd.f32 %v5444_v46, %v8522_v63  ;;  %v4334_v42 = vpop.f32.mrb[13].mxu1 }
 0x49c   : > { %v5479_v30 = vadd.f32 %v4334_v42, %v8524_v48  ;;  %v5445_v47 = vpop.f32.mrb[14].mxu1 }
 0x49d   : > { %v4490_v34 = vadd.f32 %v5478_v17, %v8621_v60  ;;  %v5480_v40 = vadd.f32 %v5445_v47, %v8527_v1  ;;  %v4337_v4 = vpop.f32.mrb[15].mxu1 }
 0x49e   : > { %v4488_v45 = vadd.f32 %v5479_v30, %v8621_v60  ;;  %v5481_v28 = vadd.f32 %v4337_v4, %v8529_v8 }
 0x49f   : > { %4522 = vst [vmem:[%s8627_s12 + $0x30] sm:$0xff] %v4490_v34  ;;  %v4491_v36 = vadd.f32 %v5480_v40, %v8621_v60 }
 0x4a0   : > { %4520 = vst [vmem:[%s8627_s12 + $0x20] sm:$0xff] %v4488_v45  ;;  %v4489_v63 = vadd.f32 %v5481_v28, %v8621_v60 }
 0x4a1   : > { %4523 = vst [vmem:[%s8627_s12 + $0x38] sm:$0xff] %v4491_v36 }
 0x4a2   : > { %4521 = vst [vmem:[%s8627_s12 + $0x28] sm:$0xff] %v4489_v63  ;;  %v5448_v48 = vpop.f32.mrb[16].mxu1 }
 0x4a3   : > { %v5482_v1 = vadd.f32 %v5448_v48, %v8536_v59  ;;  %v4350_v14 = vpop.f32.mrb[17].mxu1 }
 0x4a4   : > { %v5483_v10 = vadd.f32 %v4350_v14, %v8538_v6  ;;  %v5449_v49 = vpop.f32.mrb[18].mxu1 }
 0x4a5   : > { %v4494_v8 = vadd.f32 %v5482_v1, %v8621_v60  ;;  %v5484_v43 = vadd.f32 %v5449_v49, %v8540_v33  ;;  %v4353_v52 = vpop.f32.mrb[19].mxu1 }
 0x4a6   : > { %v4492_v24 = vadd.f32 %v5483_v10, %v8621_v60  ;;  %v5485_v58 = vadd.f32 %v4353_v52, %v8542_v13 }
 0x4a7   : > { %4526 = vst [vmem:[%s8627_s12 + $0x50] sm:$0xff] %v4494_v8  ;;  %v4495_v27 = vadd.f32 %v5484_v43, %v8621_v60 }
 0x4a8   : > { %4524 = vst [vmem:[%s8627_s12 + $0x40] sm:$0xff] %v4492_v24  ;;  %v4493_v59 = vadd.f32 %v5485_v58, %v8621_v60 }
 0x4a9   : > { %4527 = vst [vmem:[%s8627_s12 + $0x58] sm:$0xff] %v4495_v27 }
 0x4aa   : > { %4525 = vst [vmem:[%s8627_s12 + $0x48] sm:$0xff] %v4493_v59  ;;  %v5452_v6 = vpop.f32.mrb[20].mxu1 }
 0x4ab   : > { %v5486_v33 = vadd.f32 %v5452_v6, %v8549_v56  ;;  %v4366_v7 = vpop.f32.mrb[21].mxu1 }
 0x4ac   : > { %v5487_v61 = vadd.f32 %v4366_v7, %v8551_v44  ;;  %v5453_v29 = vpop.f32.mrb[22].mxu1 }
 0x4ad   : > { %v4498_v13 = vadd.f32 %v5486_v33, %v8621_v60  ;;  %v5488_v50 = vadd.f32 %v5453_v29, %v8553_v32  ;;  %v4369_v21 = vpop.f32.mrb[23].mxu1 }
 0x4ae   : > { %v4496_v5 = vadd.f32 %v5487_v61, %v8621_v60  ;;  %v5489_v18 = vadd.f32 %v4369_v21, %v8555_v9 }
 0x4af   : > { %4530 = vst [vmem:[%s8627_s12 + $0x70] sm:$0xff] %v4498_v13  ;;  %v4499_v0 = vadd.f32 %v5488_v50, %v8621_v60 }
 0x4b0   : > { %4528 = vst [vmem:[%s8627_s12 + $0x60] sm:$0xff] %v4496_v5  ;;  %v4497_v56 = vadd.f32 %v5489_v18, %v8621_v60 }
 0x4b1   : > { %4531 = vst [vmem:[%s8627_s12 + $0x78] sm:$0xff] %v4499_v0 }
 0x4b2   : > { %4529 = vst [vmem:[%s8627_s12 + $0x68] sm:$0xff] %v4497_v56  ;;  %v5456_v44 = vpop.f32.mrb[24].mxu1 }
 0x4b3   : > { %v5490_v32 = vadd.f32 %v5456_v44, %v8563_v31  ;;  %v4382_v54 = vpop.f32.mrb[25].mxu1 }
 0x4b4   : > { %v5491_v19 = vadd.f32 %v4382_v54, %v8567_v37  ;;  %v5457_v51 = vpop.f32.mrb[26].mxu1 }
 0x4b5   : > { %v4502_v9 = vadd.f32 %v5490_v32, %v8621_v60  ;;  %v5492_v41 = vadd.f32 %v5457_v51, %v8569_v23  ;;  %v4385_v15 = vpop.f32.mrb[27].mxu1 }
 0x4b6   : > { %v4500_v38 = vadd.f32 %v5491_v19, %v8621_v60  ;;  %v5493_v2 = vadd.f32 %v4385_v15, %v8571_v39 }
 0x4b7   : > { %4534 = vst [vmem:[%s8627_s12 + $0x90] sm:$0xff] %v4502_v9  ;;  %v4503_v26 = vadd.f32 %v5492_v41, %v8621_v60 }
 0x4b8   : > { %4532 = vst [vmem:[%s8627_s12 + $0x80] sm:$0xff] %v4500_v38  ;;  %v4501_v31 = vadd.f32 %v5493_v2, %v8621_v60 }
 0x4b9   : > { %4535 = vst [vmem:[%s8627_s12 + $0x98] sm:$0xff] %v4503_v26 }
 0x4ba   : > { %4533 = vst [vmem:[%s8627_s12 + $0x88] sm:$0xff] %v4501_v31  ;;  %v5460_v37 = vpop.f32.mrb[28].mxu1 }
 0x4bb   : > { %v5494_v23 = vadd.f32 %v5460_v37, %v8576_v55  ;;  %v4398_v46 = vpop.f32.mrb[29].mxu1 }
 0x4bc   : > { %v5495_v17 = vadd.f32 %v4398_v46, %v8578_v53  ;;  %v5461_v42 = vpop.f32.mrb[30].mxu1 }
 0x4bd   : > { %v4506_v39 = vadd.f32 %v5494_v23, %v8621_v60  ;;  %v5496_v30 = vadd.f32 %v5461_v42, %v8580_v3  ;;  %v4401_v47 = vpop.f32.mrb[31].mxu1 }
 0x4be   : > { %v4504_v34 = vadd.f32 %v5495_v17, %v8621_v60  ;;  %v5497_v40 = vadd.f32 %v4401_v47, %v8582_v25 }
 0x4bf   : > { %4538 = vst [vmem:[%s8627_s12 + $0xb0] sm:$0xff] %v4506_v39  ;;  %v4507_v4 = vadd.f32 %v5496_v30, %v8621_v60 }
 0x4c0   : > { %4536 = vst [vmem:[%s8627_s12 + $0xa0] sm:$0xff] %v4504_v34  ;;  %v4505_v55 = vadd.f32 %v5497_v40, %v8621_v60 }
 0x4c1   : > { %4539 = vst [vmem:[%s8627_s12 + $0xb8] sm:$0xff] %v4507_v4 }
 0x4c2   : > { %4537 = vst [vmem:[%s8627_s12 + $0xa8] sm:$0xff] %v4505_v55  ;;  %v5464_v53 = vpop.f32.mrb[0].mxu1 }
 0x4c3   : > { %v5498_v3 = vadd.f32 %v5464_v53, %v8486_v12  ;;  %v4414_v45 = vpop.f32.mrb[1].mxu1 }
 0x4c4   : > { %v5499_v28 = vadd.f32 %v4414_v45, %v8488_v16  ;;  %v5465_v36 = vpop.f32.mrb[2].mxu1 }
 0x4c5   : > { %v4510_v25 = vadd.f32 %v5498_v3, %v8621_v60  ;;  %v5500_v63 = vadd.f32 %v5465_v36, %v8490_v22  ;;  %v4417_v48 = vpop.f32.mrb[3].mxu1 }
 0x4c6   : > { %v4508_v1 = vadd.f32 %v5499_v28, %v8621_v60  ;;  %v5501_v14 = vadd.f32 %v4417_v48, %v8492_v35 }
 0x4c7   : > { %4542 = vst [vmem:[%s8627_s12 + $0xd0] sm:$0xff] %v4510_v25  ;;  %v4511_v10 = vadd.f32 %v5500_v63, %v8621_v60 }
 0x4c8   : > { %4540 = vst [vmem:[%s8627_s12 + $0xc0] sm:$0xff] %v4508_v1  ;;  %v4509_v12 = vadd.f32 %v5501_v14, %v8621_v60 }
 0x4c9   : > { %4543 = vst [vmem:[%s8627_s12 + $0xd8] sm:$0xff] %v4511_v10 }
 0x4ca   : > { %4541 = vst [vmem:[%s8627_s12 + $0xc8] sm:$0xff] %v4509_v12  ;;  %v5468_v16 = vpop.f32.mrb[4].mxu1 }
 0x4cb   : > { %v5502_v22 = vadd.f32 %v5468_v16, %v8498_v20  ;;  %v4430_v49 = vpop.f32.mrb[5].mxu1 }
 0x4cc   : > { %v5503_v8 = vadd.f32 %v4430_v49, %v8500_v57  ;;  %v5469_v43 = vpop.f32.mrb[6].mxu1 }
 0x4cd   : > { %v4514_v35 = vadd.f32 %v5502_v22, %v8621_v60  ;;  %v5504_v52 = vadd.f32 %v5469_v43, %v8502_v11  ;;  %v4433_v24 = vpop.f32.mrb[7].mxu1 }
 0x4ce   : > { %v4512_v58 = vadd.f32 %v5503_v8, %v8621_v60  ;;  %v5505_v27 = vadd.f32 %v4433_v24, %v8504_v62 }
 0x4cf   : > { %4546 = vst [vmem:[%s8627_s12 + $0xf0] sm:$0xff] %v4514_v35  ;;  %v4515_v59 = vadd.f32 %v5504_v52, %v8621_v60 }
 0x4d0   : > { %4544 = vst [vmem:[%s8627_s12 + $0xe0] sm:$0xff] %v4512_v58  ;;  %v4513_v6 = vadd.f32 %v5505_v27, %v8621_v60 }
 0x4d1   : > { %4547 = vst [vmem:[%s8627_s12 + $0xf8] sm:$0xff] %v4515_v59 }
 0x4d2   : > { %4545 = vst [vmem:[%s8627_s12 + $0xe8] sm:$0xff] %v4513_v6 }
 0x4d3 PF: > { %s15_s18 = sadd.s32 1, %s5990_s18  }
 0x4d4   : > { %p12_p4 = scmp.ge.s32.totalorder %s15_s18, 4  }
 0x4d6   :  { %14 = sbr.rel (!%p12_p4) target bundleno = 1 (0x1), region = 78 }

</bundles_post_ra>
